<compile_context>
chip_gen: v5e
topology: v5e:2x2
jax: 0.10.0
libtpu: 0.0.40
codegen_flags: <defaults>
</compile_context>

<pallas_src>
import functools

import jax
import jax.numpy as jnp
from jax.experimental import pallas as pl
from jax.experimental.pallas import tpu as pltpu


def _conv2d_kernel(x_ref, w_ref, b_ref, o_ref, *, C, OC, KH, KW, OH, OW):
    """One grid step == one image.

    x_ref: (1, C, H, W)        VMEM   raw image tile (read once from HBM)
    w_ref: (OC*C*KH*KW,)       SMEM   weights, row-major (oc, c, kh, kw)
    b_ref: (OC,)               SMEM   bias
    o_ref: (1, OC, OH, OW)     VMEM   output tile (written once to HBM, NCHW)
    """
    K = C * KH * KW

    # Per-output-channel accumulators, initialized with the bias (f32 accum).
    accs = [jnp.full((OH, OW), b_ref[oc], dtype=jnp.float32) for oc in range(OC)]

    # Stream the 27 shifted windows (fused im2col, VMEM-only) and apply them to
    # all 6 accumulators as VPU scalar-broadcast FMAs. Loops are static Python
    # loops -> fully unrolled (162 FMAs on (OH, OW) tiles).
    tap = 0
    for c in range(C):
        for kh in range(KH):
            for kw in range(KW):
                patch = x_ref[0, c, kh:kh + OH, kw:kw + OW].astype(jnp.float32)
                for oc in range(OC):
                    accs[oc] = accs[oc] + w_ref[oc * K + tap] * patch
                tap += 1

    for oc in range(OC):
        o_ref[0, oc, :, :] = accs[oc].astype(o_ref.dtype)


def conv2d_pallas(x_nchw, weight_oihw, bias):
    """Conv2d(stride=1, padding=0) fused in a single Pallas kernel.

    x_nchw:      (N, Cin, H, W)
    weight_oihw: (OC, Cin, KH, KW)   (PyTorch layout)
    bias:        (OC,)
    returns      (N, OC, H-KH+1, W-KW+1)   (NCHW, written directly by the kernel)
    """
    N, C, H, W = x_nchw.shape
    OC, Cin, KH, KW = weight_oihw.shape
    assert Cin == C, (Cin, C)
    OH, OW = H - KH + 1, W - KW + 1

    # Weights/bias are tiny -> flatten to 1-D and keep them in SMEM so the
    # kernel reads them as cheap scalars (no VMEM buffer rotation, no MXU).
    w_flat = weight_oihw.reshape(OC * C * KH * KW).astype(jnp.float32)
    b_flat = bias.reshape(OC).astype(jnp.float32)

    kernel = functools.partial(
        _conv2d_kernel, C=C, OC=OC, KH=KH, KW=KW, OH=OH, OW=OW)

    return pl.pallas_call(
        kernel,
        out_shape=jax.ShapeDtypeStruct((N, OC, OH, OW), x_nchw.dtype),
        grid_spec=pl.GridSpec(
            grid=(N,),  # one big step per image; N=2 -> perfectly balanced on v7x megacore
            in_specs=[
                # Full image per step; last two block dims equal the array dims.
                pl.BlockSpec((1, C, H, W), lambda n: (n, 0, 0, 0)),
                pl.BlockSpec(memory_space=pltpu.MemorySpace.SMEM),  # weights
                pl.BlockSpec(memory_space=pltpu.MemorySpace.SMEM),  # bias
            ],
            out_specs=pl.BlockSpec((1, OC, OH, OW), lambda n: (n, 0, 0, 0)),
        ),
        compiler_params=pltpu.CompilerParams(
            dimension_semantics=("parallel",),
        ),
    )(x_nchw, w_flat, b_flat)


if __name__ == "__main__":
    key = jax.random.PRNGKey(0)
    k_x, k_w, k_b = jax.random.split(key, 3)

    # Shapes implied by LinX: Conv2d(3 -> 6, 3x3, stride=1, padding=0)
    N, C, H, W = 2, 3, 16, 16
    OC, KH, KW = 6, 3, 3

    x = jax.random.normal(k_x, (N, C, H, W), dtype=jnp.float32)
    # deterministic synthetic parameters (PyTorch-like uniform fan-in scale)
    fan_in = C * KH * KW
    bound = 1.0 / (fan_in ** 0.5)
    weight = jax.random.uniform(k_w, (OC, C, KH, KW), minval=-bound, maxval=bound,
                                dtype=jnp.float32)
    bias = jax.random.uniform(k_b, (OC,), minval=-bound, maxval=bound,
                              dtype=jnp.float32)

    y = conv2d_pallas(x, weight, bias)
    y = jax.block_until_ready(y)

    # sanity-check against XLA's native conv
    y_ref = jax.lax.conv_general_dilated(
        x, weight, window_strides=(1, 1), padding="VALID",
        dimension_numbers=("NCHW", "OIHW", "NCHW"),
    ) + bias[None, :, None, None]

    assert y.shape == (N, OC, H - KH + 1, W - KW + 1), y.shape
    assert jnp.allclose(y, y_ref, atol=1e-5, rtol=1e-5), "mismatch vs reference conv"

    print("KERNEL_OK")
</pallas_src>

<mosaic_0001>
module attributes {stable_mosaic.version = 11 : i64} {
  func.func @_conv2d_kernel(%arg0: i32, %arg1: memref<1x3x16x16xf32, #tpu.memory_space<vmem>>, %arg2: memref<162xf32, #tpu.memory_space<smem>>, %arg3: memref<6xf32, #tpu.memory_space<smem>>, %arg4: memref<1x6x14x14xf32, #tpu.memory_space<vmem>>) attributes {dimension_semantics = [#tpu.dimension_semantics<parallel>], iteration_bounds = array<i64: 2>, scalar_prefetch = 0 : i64, scratch_operands = 0 : i64, tpu.core_type = #tpu.core_type<tc>, window_params = [{transform_indices = @transform_0, window_bounds = array<i64: 1, 3, 16, 16>}, {transform_indices = @transform_1, window_bounds = array<i64: 162>}, {transform_indices = @transform_2, window_bounds = array<i64: 6>}, {transform_indices = @transform_3, window_bounds = array<i64: 1, 6, 14, 14>}]} {
    %c0 = arith.constant 0 : index
    %0 = memref.load %arg3[%c0] : memref<6xf32, #tpu.memory_space<smem>>
    %1 = vector.broadcast %0 : f32 to vector<14x14xf32>
    %c1 = arith.constant 1 : index
    %2 = memref.load %arg3[%c1] : memref<6xf32, #tpu.memory_space<smem>>
    %3 = vector.broadcast %2 : f32 to vector<14x14xf32>
    %c2 = arith.constant 2 : index
    %4 = memref.load %arg3[%c2] : memref<6xf32, #tpu.memory_space<smem>>
    %5 = vector.broadcast %4 : f32 to vector<14x14xf32>
    %c3 = arith.constant 3 : index
    %6 = memref.load %arg3[%c3] : memref<6xf32, #tpu.memory_space<smem>>
    %7 = vector.broadcast %6 : f32 to vector<14x14xf32>
    %c4 = arith.constant 4 : index
    %8 = memref.load %arg3[%c4] : memref<6xf32, #tpu.memory_space<smem>>
    %9 = vector.broadcast %8 : f32 to vector<14x14xf32>
    %c5 = arith.constant 5 : index
    %10 = memref.load %arg3[%c5] : memref<6xf32, #tpu.memory_space<smem>>
    %11 = vector.broadcast %10 : f32 to vector<14x14xf32>
    %c0_0 = arith.constant 0 : index
    %c0_1 = arith.constant 0 : index
    %c0_2 = arith.constant 0 : index
    %c0_3 = arith.constant 0 : index
    %12 = vector.load %arg1[%c0_0, %c0_1, %c0_2, %c0_3] : memref<1x3x16x16xf32, #tpu.memory_space<vmem>>, vector<1x1x14x14xf32>
    %13 = vector.shape_cast %12 : vector<1x1x14x14xf32> to vector<14x14xf32>
    %c0_4 = arith.constant 0 : index
    %14 = memref.load %arg2[%c0_4] : memref<162xf32, #tpu.memory_space<smem>>
    %15 = vector.broadcast %14 : f32 to vector<14x14xf32>
    %16 = arith.mulf %15, %13 : vector<14x14xf32>
    %17 = arith.addf %1, %16 : vector<14x14xf32>
    %c27 = arith.constant 27 : index
    %18 = memref.load %arg2[%c27] : memref<162xf32, #tpu.memory_space<smem>>
    %19 = vector.broadcast %18 : f32 to vector<14x14xf32>
    %20 = arith.mulf %19, %13 : vector<14x14xf32>
    %21 = arith.addf %3, %20 : vector<14x14xf32>
    %c54 = arith.constant 54 : index
    %22 = memref.load %arg2[%c54] : memref<162xf32, #tpu.memory_space<smem>>
    %23 = vector.broadcast %22 : f32 to vector<14x14xf32>
    %24 = arith.mulf %23, %13 : vector<14x14xf32>
    %25 = arith.addf %5, %24 : vector<14x14xf32>
    %c81 = arith.constant 81 : index
    %26 = memref.load %arg2[%c81] : memref<162xf32, #tpu.memory_space<smem>>
    %27 = vector.broadcast %26 : f32 to vector<14x14xf32>
    %28 = arith.mulf %27, %13 : vector<14x14xf32>
    %29 = arith.addf %7, %28 : vector<14x14xf32>
    %c108 = arith.constant 108 : index
    %30 = memref.load %arg2[%c108] : memref<162xf32, #tpu.memory_space<smem>>
    %31 = vector.broadcast %30 : f32 to vector<14x14xf32>
    %32 = arith.mulf %31, %13 : vector<14x14xf32>
    %33 = arith.addf %9, %32 : vector<14x14xf32>
    %c135 = arith.constant 135 : index
    %34 = memref.load %arg2[%c135] : memref<162xf32, #tpu.memory_space<smem>>
    %35 = vector.broadcast %34 : f32 to vector<14x14xf32>
    %36 = arith.mulf %35, %13 : vector<14x14xf32>
    %37 = arith.addf %11, %36 : vector<14x14xf32>
    %c0_5 = arith.constant 0 : index
    %c0_6 = arith.constant 0 : index
    %c0_7 = arith.constant 0 : index
    %c1_8 = arith.constant 1 : index
    %38 = vector.load %arg1[%c0_5, %c0_6, %c0_7, %c1_8] : memref<1x3x16x16xf32, #tpu.memory_space<vmem>>, vector<1x1x14x14xf32>
    %39 = vector.shape_cast %38 : vector<1x1x14x14xf32> to vector<14x14xf32>
    %c1_9 = arith.constant 1 : index
    %40 = memref.load %arg2[%c1_9] : memref<162xf32, #tpu.memory_space<smem>>
    %41 = vector.broadcast %40 : f32 to vector<14x14xf32>
    %42 = arith.mulf %41, %39 : vector<14x14xf32>
    %43 = arith.addf %17, %42 : vector<14x14xf32>
    %c28 = arith.constant 28 : index
    %44 = memref.load %arg2[%c28] : memref<162xf32, #tpu.memory_space<smem>>
    %45 = vector.broadcast %44 : f32 to vector<14x14xf32>
    %46 = arith.mulf %45, %39 : vector<14x14xf32>
    %47 = arith.addf %21, %46 : vector<14x14xf32>
    %c55 = arith.constant 55 : index
    %48 = memref.load %arg2[%c55] : memref<162xf32, #tpu.memory_space<smem>>
    %49 = vector.broadcast %48 : f32 to vector<14x14xf32>
    %50 = arith.mulf %49, %39 : vector<14x14xf32>
    %51 = arith.addf %25, %50 : vector<14x14xf32>
    %c82 = arith.constant 82 : index
    %52 = memref.load %arg2[%c82] : memref<162xf32, #tpu.memory_space<smem>>
    %53 = vector.broadcast %52 : f32 to vector<14x14xf32>
    %54 = arith.mulf %53, %39 : vector<14x14xf32>
    %55 = arith.addf %29, %54 : vector<14x14xf32>
    %c109 = arith.constant 109 : index
    %56 = memref.load %arg2[%c109] : memref<162xf32, #tpu.memory_space<smem>>
    %57 = vector.broadcast %56 : f32 to vector<14x14xf32>
    %58 = arith.mulf %57, %39 : vector<14x14xf32>
    %59 = arith.addf %33, %58 : vector<14x14xf32>
    %c136 = arith.constant 136 : index
    %60 = memref.load %arg2[%c136] : memref<162xf32, #tpu.memory_space<smem>>
    %61 = vector.broadcast %60 : f32 to vector<14x14xf32>
    %62 = arith.mulf %61, %39 : vector<14x14xf32>
    %63 = arith.addf %37, %62 : vector<14x14xf32>
    %c0_10 = arith.constant 0 : index
    %c0_11 = arith.constant 0 : index
    %c0_12 = arith.constant 0 : index
    %c2_13 = arith.constant 2 : index
    %64 = vector.load %arg1[%c0_10, %c0_11, %c0_12, %c2_13] : memref<1x3x16x16xf32, #tpu.memory_space<vmem>>, vector<1x1x14x14xf32>
    %65 = vector.shape_cast %64 : vector<1x1x14x14xf32> to vector<14x14xf32>
    %c2_14 = arith.constant 2 : index
    %66 = memref.load %arg2[%c2_14] : memref<162xf32, #tpu.memory_space<smem>>
    %67 = vector.broadcast %66 : f32 to vector<14x14xf32>
    %68 = arith.mulf %67, %65 : vector<14x14xf32>
    %69 = arith.addf %43, %68 : vector<14x14xf32>
    %c29 = arith.constant 29 : index
    %70 = memref.load %arg2[%c29] : memref<162xf32, #tpu.memory_space<smem>>
    %71 = vector.broadcast %70 : f32 to vector<14x14xf32>
    %72 = arith.mulf %71, %65 : vector<14x14xf32>
    %73 = arith.addf %47, %72 : vector<14x14xf32>
    %c56 = arith.constant 56 : index
    %74 = memref.load %arg2[%c56] : memref<162xf32, #tpu.memory_space<smem>>
    %75 = vector.broadcast %74 : f32 to vector<14x14xf32>
    %76 = arith.mulf %75, %65 : vector<14x14xf32>
    %77 = arith.addf %51, %76 : vector<14x14xf32>
    %c83 = arith.constant 83 : index
    %78 = memref.load %arg2[%c83] : memref<162xf32, #tpu.memory_space<smem>>
    %79 = vector.broadcast %78 : f32 to vector<14x14xf32>
    %80 = arith.mulf %79, %65 : vector<14x14xf32>
    %81 = arith.addf %55, %80 : vector<14x14xf32>
    %c110 = arith.constant 110 : index
    %82 = memref.load %arg2[%c110] : memref<162xf32, #tpu.memory_space<smem>>
    %83 = vector.broadcast %82 : f32 to vector<14x14xf32>
    %84 = arith.mulf %83, %65 : vector<14x14xf32>
    %85 = arith.addf %59, %84 : vector<14x14xf32>
    %c137 = arith.constant 137 : index
    %86 = memref.load %arg2[%c137] : memref<162xf32, #tpu.memory_space<smem>>
    %87 = vector.broadcast %86 : f32 to vector<14x14xf32>
    %88 = arith.mulf %87, %65 : vector<14x14xf32>
    %89 = arith.addf %63, %88 : vector<14x14xf32>
    %c0_15 = arith.constant 0 : index
    %c0_16 = arith.constant 0 : index
    %c1_17 = arith.constant 1 : index
    %c0_18 = arith.constant 0 : index
    %90 = vector.load %arg1[%c0_15, %c0_16, %c1_17, %c0_18] : memref<1x3x16x16xf32, #tpu.memory_space<vmem>>, vector<1x1x14x14xf32>
    %91 = vector.shape_cast %90 : vector<1x1x14x14xf32> to vector<14x14xf32>
    %c3_19 = arith.constant 3 : index
    %92 = memref.load %arg2[%c3_19] : memref<162xf32, #tpu.memory_space<smem>>
    %93 = vector.broadcast %92 : f32 to vector<14x14xf32>
    %94 = arith.mulf %93, %91 : vector<14x14xf32>
    %95 = arith.addf %69, %94 : vector<14x14xf32>
    %c30 = arith.constant 30 : index
    %96 = memref.load %arg2[%c30] : memref<162xf32, #tpu.memory_space<smem>>
    %97 = vector.broadcast %96 : f32 to vector<14x14xf32>
    %98 = arith.mulf %97, %91 : vector<14x14xf32>
    %99 = arith.addf %73, %98 : vector<14x14xf32>
    %c57 = arith.constant 57 : index
    %100 = memref.load %arg2[%c57] : memref<162xf32, #tpu.memory_space<smem>>
    %101 = vector.broadcast %100 : f32 to vector<14x14xf32>
    %102 = arith.mulf %101, %91 : vector<14x14xf32>
    %103 = arith.addf %77, %102 : vector<14x14xf32>
    %c84 = arith.constant 84 : index
    %104 = memref.load %arg2[%c84] : memref<162xf32, #tpu.memory_space<smem>>
    %105 = vector.broadcast %104 : f32 to vector<14x14xf32>
    %106 = arith.mulf %105, %91 : vector<14x14xf32>
    %107 = arith.addf %81, %106 : vector<14x14xf32>
    %c111 = arith.constant 111 : index
    %108 = memref.load %arg2[%c111] : memref<162xf32, #tpu.memory_space<smem>>
    %109 = vector.broadcast %108 : f32 to vector<14x14xf32>
    %110 = arith.mulf %109, %91 : vector<14x14xf32>
    %111 = arith.addf %85, %110 : vector<14x14xf32>
    %c138 = arith.constant 138 : index
    %112 = memref.load %arg2[%c138] : memref<162xf32, #tpu.memory_space<smem>>
    %113 = vector.broadcast %112 : f32 to vector<14x14xf32>
    %114 = arith.mulf %113, %91 : vector<14x14xf32>
    %115 = arith.addf %89, %114 : vector<14x14xf32>
    %c0_20 = arith.constant 0 : index
    %c0_21 = arith.constant 0 : index
    %c1_22 = arith.constant 1 : index
    %c1_23 = arith.constant 1 : index
    %116 = vector.load %arg1[%c0_20, %c0_21, %c1_22, %c1_23] : memref<1x3x16x16xf32, #tpu.memory_space<vmem>>, vector<1x1x14x14xf32>
    %117 = vector.shape_cast %116 : vector<1x1x14x14xf32> to vector<14x14xf32>
    %c4_24 = arith.constant 4 : index
    %118 = memref.load %arg2[%c4_24] : memref<162xf32, #tpu.memory_space<smem>>
    %119 = vector.broadcast %118 : f32 to vector<14x14xf32>
    %120 = arith.mulf %119, %117 : vector<14x14xf32>
    %121 = arith.addf %95, %120 : vector<14x14xf32>
    %c31 = arith.constant 31 : index
    %122 = memref.load %arg2[%c31] : memref<162xf32, #tpu.memory_space<smem>>
    %123 = vector.broadcast %122 : f32 to vector<14x14xf32>
    %124 = arith.mulf %123, %117 : vector<14x14xf32>
    %125 = arith.addf %99, %124 : vector<14x14xf32>
    %c58 = arith.constant 58 : index
    %126 = memref.load %arg2[%c58] : memref<162xf32, #tpu.memory_space<smem>>
    %127 = vector.broadcast %126 : f32 to vector<14x14xf32>
    %128 = arith.mulf %127, %117 : vector<14x14xf32>
    %129 = arith.addf %103, %128 : vector<14x14xf32>
    %c85 = arith.constant 85 : index
    %130 = memref.load %arg2[%c85] : memref<162xf32, #tpu.memory_space<smem>>
    %131 = vector.broadcast %130 : f32 to vector<14x14xf32>
    %132 = arith.mulf %131, %117 : vector<14x14xf32>
    %133 = arith.addf %107, %132 : vector<14x14xf32>
    %c112 = arith.constant 112 : index
    %134 = memref.load %arg2[%c112] : memref<162xf32, #tpu.memory_space<smem>>
    %135 = vector.broadcast %134 : f32 to vector<14x14xf32>
    %136 = arith.mulf %135, %117 : vector<14x14xf32>
    %137 = arith.addf %111, %136 : vector<14x14xf32>
    %c139 = arith.constant 139 : index
    %138 = memref.load %arg2[%c139] : memref<162xf32, #tpu.memory_space<smem>>
    %139 = vector.broadcast %138 : f32 to vector<14x14xf32>
    %140 = arith.mulf %139, %117 : vector<14x14xf32>
    %141 = arith.addf %115, %140 : vector<14x14xf32>
    %c0_25 = arith.constant 0 : index
    %c0_26 = arith.constant 0 : index
    %c1_27 = arith.constant 1 : index
    %c2_28 = arith.constant 2 : index
    %142 = vector.load %arg1[%c0_25, %c0_26, %c1_27, %c2_28] : memref<1x3x16x16xf32, #tpu.memory_space<vmem>>, vector<1x1x14x14xf32>
    %143 = vector.shape_cast %142 : vector<1x1x14x14xf32> to vector<14x14xf32>
    %c5_29 = arith.constant 5 : index
    %144 = memref.load %arg2[%c5_29] : memref<162xf32, #tpu.memory_space<smem>>
    %145 = vector.broadcast %144 : f32 to vector<14x14xf32>
    %146 = arith.mulf %145, %143 : vector<14x14xf32>
    %147 = arith.addf %121, %146 : vector<14x14xf32>
    %c32 = arith.constant 32 : index
    %148 = memref.load %arg2[%c32] : memref<162xf32, #tpu.memory_space<smem>>
    %149 = vector.broadcast %148 : f32 to vector<14x14xf32>
    %150 = arith.mulf %149, %143 : vector<14x14xf32>
    %151 = arith.addf %125, %150 : vector<14x14xf32>
    %c59 = arith.constant 59 : index
    %152 = memref.load %arg2[%c59] : memref<162xf32, #tpu.memory_space<smem>>
    %153 = vector.broadcast %152 : f32 to vector<14x14xf32>
    %154 = arith.mulf %153, %143 : vector<14x14xf32>
    %155 = arith.addf %129, %154 : vector<14x14xf32>
    %c86 = arith.constant 86 : index
    %156 = memref.load %arg2[%c86] : memref<162xf32, #tpu.memory_space<smem>>
    %157 = vector.broadcast %156 : f32 to vector<14x14xf32>
    %158 = arith.mulf %157, %143 : vector<14x14xf32>
    %159 = arith.addf %133, %158 : vector<14x14xf32>
    %c113 = arith.constant 113 : index
    %160 = memref.load %arg2[%c113] : memref<162xf32, #tpu.memory_space<smem>>
    %161 = vector.broadcast %160 : f32 to vector<14x14xf32>
    %162 = arith.mulf %161, %143 : vector<14x14xf32>
    %163 = arith.addf %137, %162 : vector<14x14xf32>
    %c140 = arith.constant 140 : index
    %164 = memref.load %arg2[%c140] : memref<162xf32, #tpu.memory_space<smem>>
    %165 = vector.broadcast %164 : f32 to vector<14x14xf32>
    %166 = arith.mulf %165, %143 : vector<14x14xf32>
    %167 = arith.addf %141, %166 : vector<14x14xf32>
    %c0_30 = arith.constant 0 : index
    %c0_31 = arith.constant 0 : index
    %c2_32 = arith.constant 2 : index
    %c0_33 = arith.constant 0 : index
    %168 = vector.load %arg1[%c0_30, %c0_31, %c2_32, %c0_33] : memref<1x3x16x16xf32, #tpu.memory_space<vmem>>, vector<1x1x14x14xf32>
    %169 = vector.shape_cast %168 : vector<1x1x14x14xf32> to vector<14x14xf32>
    %c6 = arith.constant 6 : index
    %170 = memref.load %arg2[%c6] : memref<162xf32, #tpu.memory_space<smem>>
    %171 = vector.broadcast %170 : f32 to vector<14x14xf32>
    %172 = arith.mulf %171, %169 : vector<14x14xf32>
    %173 = arith.addf %147, %172 : vector<14x14xf32>
    %c33 = arith.constant 33 : index
    %174 = memref.load %arg2[%c33] : memref<162xf32, #tpu.memory_space<smem>>
    %175 = vector.broadcast %174 : f32 to vector<14x14xf32>
    %176 = arith.mulf %175, %169 : vector<14x14xf32>
    %177 = arith.addf %151, %176 : vector<14x14xf32>
    %c60 = arith.constant 60 : index
    %178 = memref.load %arg2[%c60] : memref<162xf32, #tpu.memory_space<smem>>
    %179 = vector.broadcast %178 : f32 to vector<14x14xf32>
    %180 = arith.mulf %179, %169 : vector<14x14xf32>
    %181 = arith.addf %155, %180 : vector<14x14xf32>
    %c87 = arith.constant 87 : index
    %182 = memref.load %arg2[%c87] : memref<162xf32, #tpu.memory_space<smem>>
    %183 = vector.broadcast %182 : f32 to vector<14x14xf32>
    %184 = arith.mulf %183, %169 : vector<14x14xf32>
    %185 = arith.addf %159, %184 : vector<14x14xf32>
    %c114 = arith.constant 114 : index
    %186 = memref.load %arg2[%c114] : memref<162xf32, #tpu.memory_space<smem>>
    %187 = vector.broadcast %186 : f32 to vector<14x14xf32>
    %188 = arith.mulf %187, %169 : vector<14x14xf32>
    %189 = arith.addf %163, %188 : vector<14x14xf32>
    %c141 = arith.constant 141 : index
    %190 = memref.load %arg2[%c141] : memref<162xf32, #tpu.memory_space<smem>>
    %191 = vector.broadcast %190 : f32 to vector<14x14xf32>
    %192 = arith.mulf %191, %169 : vector<14x14xf32>
    %193 = arith.addf %167, %192 : vector<14x14xf32>
    %c0_34 = arith.constant 0 : index
    %c0_35 = arith.constant 0 : index
    %c2_36 = arith.constant 2 : index
    %c1_37 = arith.constant 1 : index
    %194 = vector.load %arg1[%c0_34, %c0_35, %c2_36, %c1_37] : memref<1x3x16x16xf32, #tpu.memory_space<vmem>>, vector<1x1x14x14xf32>
    %195 = vector.shape_cast %194 : vector<1x1x14x14xf32> to vector<14x14xf32>
    %c7 = arith.constant 7 : index
    %196 = memref.load %arg2[%c7] : memref<162xf32, #tpu.memory_space<smem>>
    %197 = vector.broadcast %196 : f32 to vector<14x14xf32>
    %198 = arith.mulf %197, %195 : vector<14x14xf32>
    %199 = arith.addf %173, %198 : vector<14x14xf32>
    %c34 = arith.constant 34 : index
    %200 = memref.load %arg2[%c34] : memref<162xf32, #tpu.memory_space<smem>>
    %201 = vector.broadcast %200 : f32 to vector<14x14xf32>
    %202 = arith.mulf %201, %195 : vector<14x14xf32>
    %203 = arith.addf %177, %202 : vector<14x14xf32>
    %c61 = arith.constant 61 : index
    %204 = memref.load %arg2[%c61] : memref<162xf32, #tpu.memory_space<smem>>
    %205 = vector.broadcast %204 : f32 to vector<14x14xf32>
    %206 = arith.mulf %205, %195 : vector<14x14xf32>
    %207 = arith.addf %181, %206 : vector<14x14xf32>
    %c88 = arith.constant 88 : index
    %208 = memref.load %arg2[%c88] : memref<162xf32, #tpu.memory_space<smem>>
    %209 = vector.broadcast %208 : f32 to vector<14x14xf32>
    %210 = arith.mulf %209, %195 : vector<14x14xf32>
    %211 = arith.addf %185, %210 : vector<14x14xf32>
    %c115 = arith.constant 115 : index
    %212 = memref.load %arg2[%c115] : memref<162xf32, #tpu.memory_space<smem>>
    %213 = vector.broadcast %212 : f32 to vector<14x14xf32>
    %214 = arith.mulf %213, %195 : vector<14x14xf32>
    %215 = arith.addf %189, %214 : vector<14x14xf32>
    %c142 = arith.constant 142 : index
    %216 = memref.load %arg2[%c142] : memref<162xf32, #tpu.memory_space<smem>>
    %217 = vector.broadcast %216 : f32 to vector<14x14xf32>
    %218 = arith.mulf %217, %195 : vector<14x14xf32>
    %219 = arith.addf %193, %218 : vector<14x14xf32>
    %c0_38 = arith.constant 0 : index
    %c0_39 = arith.constant 0 : index
    %c2_40 = arith.constant 2 : index
    %c2_41 = arith.constant 2 : index
    %220 = vector.load %arg1[%c0_38, %c0_39, %c2_40, %c2_41] : memref<1x3x16x16xf32, #tpu.memory_space<vmem>>, vector<1x1x14x14xf32>
    %221 = vector.shape_cast %220 : vector<1x1x14x14xf32> to vector<14x14xf32>
    %c8 = arith.constant 8 : index
    %222 = memref.load %arg2[%c8] : memref<162xf32, #tpu.memory_space<smem>>
    %223 = vector.broadcast %222 : f32 to vector<14x14xf32>
    %224 = arith.mulf %223, %221 : vector<14x14xf32>
    %225 = arith.addf %199, %224 : vector<14x14xf32>
    %c35 = arith.constant 35 : index
    %226 = memref.load %arg2[%c35] : memref<162xf32, #tpu.memory_space<smem>>
    %227 = vector.broadcast %226 : f32 to vector<14x14xf32>
    %228 = arith.mulf %227, %221 : vector<14x14xf32>
    %229 = arith.addf %203, %228 : vector<14x14xf32>
    %c62 = arith.constant 62 : index
    %230 = memref.load %arg2[%c62] : memref<162xf32, #tpu.memory_space<smem>>
    %231 = vector.broadcast %230 : f32 to vector<14x14xf32>
    %232 = arith.mulf %231, %221 : vector<14x14xf32>
    %233 = arith.addf %207, %232 : vector<14x14xf32>
    %c89 = arith.constant 89 : index
    %234 = memref.load %arg2[%c89] : memref<162xf32, #tpu.memory_space<smem>>
    %235 = vector.broadcast %234 : f32 to vector<14x14xf32>
    %236 = arith.mulf %235, %221 : vector<14x14xf32>
    %237 = arith.addf %211, %236 : vector<14x14xf32>
    %c116 = arith.constant 116 : index
    %238 = memref.load %arg2[%c116] : memref<162xf32, #tpu.memory_space<smem>>
    %239 = vector.broadcast %238 : f32 to vector<14x14xf32>
    %240 = arith.mulf %239, %221 : vector<14x14xf32>
    %241 = arith.addf %215, %240 : vector<14x14xf32>
    %c143 = arith.constant 143 : index
    %242 = memref.load %arg2[%c143] : memref<162xf32, #tpu.memory_space<smem>>
    %243 = vector.broadcast %242 : f32 to vector<14x14xf32>
    %244 = arith.mulf %243, %221 : vector<14x14xf32>
    %245 = arith.addf %219, %244 : vector<14x14xf32>
    %c0_42 = arith.constant 0 : index
    %c1_43 = arith.constant 1 : index
    %c0_44 = arith.constant 0 : index
    %c0_45 = arith.constant 0 : index
    %246 = vector.load %arg1[%c0_42, %c1_43, %c0_44, %c0_45] : memref<1x3x16x16xf32, #tpu.memory_space<vmem>>, vector<1x1x14x14xf32>
    %247 = vector.shape_cast %246 : vector<1x1x14x14xf32> to vector<14x14xf32>
    %c9 = arith.constant 9 : index
    %248 = memref.load %arg2[%c9] : memref<162xf32, #tpu.memory_space<smem>>
    %249 = vector.broadcast %248 : f32 to vector<14x14xf32>
    %250 = arith.mulf %249, %247 : vector<14x14xf32>
    %251 = arith.addf %225, %250 : vector<14x14xf32>
    %c36 = arith.constant 36 : index
    %252 = memref.load %arg2[%c36] : memref<162xf32, #tpu.memory_space<smem>>
    %253 = vector.broadcast %252 : f32 to vector<14x14xf32>
    %254 = arith.mulf %253, %247 : vector<14x14xf32>
    %255 = arith.addf %229, %254 : vector<14x14xf32>
    %c63 = arith.constant 63 : index
    %256 = memref.load %arg2[%c63] : memref<162xf32, #tpu.memory_space<smem>>
    %257 = vector.broadcast %256 : f32 to vector<14x14xf32>
    %258 = arith.mulf %257, %247 : vector<14x14xf32>
    %259 = arith.addf %233, %258 : vector<14x14xf32>
    %c90 = arith.constant 90 : index
    %260 = memref.load %arg2[%c90] : memref<162xf32, #tpu.memory_space<smem>>
    %261 = vector.broadcast %260 : f32 to vector<14x14xf32>
    %262 = arith.mulf %261, %247 : vector<14x14xf32>
    %263 = arith.addf %237, %262 : vector<14x14xf32>
    %c117 = arith.constant 117 : index
    %264 = memref.load %arg2[%c117] : memref<162xf32, #tpu.memory_space<smem>>
    %265 = vector.broadcast %264 : f32 to vector<14x14xf32>
    %266 = arith.mulf %265, %247 : vector<14x14xf32>
    %267 = arith.addf %241, %266 : vector<14x14xf32>
    %c144 = arith.constant 144 : index
    %268 = memref.load %arg2[%c144] : memref<162xf32, #tpu.memory_space<smem>>
    %269 = vector.broadcast %268 : f32 to vector<14x14xf32>
    %270 = arith.mulf %269, %247 : vector<14x14xf32>
    %271 = arith.addf %245, %270 : vector<14x14xf32>
    %c0_46 = arith.constant 0 : index
    %c1_47 = arith.constant 1 : index
    %c0_48 = arith.constant 0 : index
    %c1_49 = arith.constant 1 : index
    %272 = vector.load %arg1[%c0_46, %c1_47, %c0_48, %c1_49] : memref<1x3x16x16xf32, #tpu.memory_space<vmem>>, vector<1x1x14x14xf32>
    %273 = vector.shape_cast %272 : vector<1x1x14x14xf32> to vector<14x14xf32>
    %c10 = arith.constant 10 : index
    %274 = memref.load %arg2[%c10] : memref<162xf32, #tpu.memory_space<smem>>
    %275 = vector.broadcast %274 : f32 to vector<14x14xf32>
    %276 = arith.mulf %275, %273 : vector<14x14xf32>
    %277 = arith.addf %251, %276 : vector<14x14xf32>
    %c37 = arith.constant 37 : index
    %278 = memref.load %arg2[%c37] : memref<162xf32, #tpu.memory_space<smem>>
    %279 = vector.broadcast %278 : f32 to vector<14x14xf32>
    %280 = arith.mulf %279, %273 : vector<14x14xf32>
    %281 = arith.addf %255, %280 : vector<14x14xf32>
    %c64 = arith.constant 64 : index
    %282 = memref.load %arg2[%c64] : memref<162xf32, #tpu.memory_space<smem>>
    %283 = vector.broadcast %282 : f32 to vector<14x14xf32>
    %284 = arith.mulf %283, %273 : vector<14x14xf32>
    %285 = arith.addf %259, %284 : vector<14x14xf32>
    %c91 = arith.constant 91 : index
    %286 = memref.load %arg2[%c91] : memref<162xf32, #tpu.memory_space<smem>>
    %287 = vector.broadcast %286 : f32 to vector<14x14xf32>
    %288 = arith.mulf %287, %273 : vector<14x14xf32>
    %289 = arith.addf %263, %288 : vector<14x14xf32>
    %c118 = arith.constant 118 : index
    %290 = memref.load %arg2[%c118] : memref<162xf32, #tpu.memory_space<smem>>
    %291 = vector.broadcast %290 : f32 to vector<14x14xf32>
    %292 = arith.mulf %291, %273 : vector<14x14xf32>
    %293 = arith.addf %267, %292 : vector<14x14xf32>
    %c145 = arith.constant 145 : index
    %294 = memref.load %arg2[%c145] : memref<162xf32, #tpu.memory_space<smem>>
    %295 = vector.broadcast %294 : f32 to vector<14x14xf32>
    %296 = arith.mulf %295, %273 : vector<14x14xf32>
    %297 = arith.addf %271, %296 : vector<14x14xf32>
    %c0_50 = arith.constant 0 : index
    %c1_51 = arith.constant 1 : index
    %c0_52 = arith.constant 0 : index
    %c2_53 = arith.constant 2 : index
    %298 = vector.load %arg1[%c0_50, %c1_51, %c0_52, %c2_53] : memref<1x3x16x16xf32, #tpu.memory_space<vmem>>, vector<1x1x14x14xf32>
    %299 = vector.shape_cast %298 : vector<1x1x14x14xf32> to vector<14x14xf32>
    %c11 = arith.constant 11 : index
    %300 = memref.load %arg2[%c11] : memref<162xf32, #tpu.memory_space<smem>>
    %301 = vector.broadcast %300 : f32 to vector<14x14xf32>
    %302 = arith.mulf %301, %299 : vector<14x14xf32>
    %303 = arith.addf %277, %302 : vector<14x14xf32>
    %c38 = arith.constant 38 : index
    %304 = memref.load %arg2[%c38] : memref<162xf32, #tpu.memory_space<smem>>
    %305 = vector.broadcast %304 : f32 to vector<14x14xf32>
    %306 = arith.mulf %305, %299 : vector<14x14xf32>
    %307 = arith.addf %281, %306 : vector<14x14xf32>
    %c65 = arith.constant 65 : index
    %308 = memref.load %arg2[%c65] : memref<162xf32, #tpu.memory_space<smem>>
    %309 = vector.broadcast %308 : f32 to vector<14x14xf32>
    %310 = arith.mulf %309, %299 : vector<14x14xf32>
    %311 = arith.addf %285, %310 : vector<14x14xf32>
    %c92 = arith.constant 92 : index
    %312 = memref.load %arg2[%c92] : memref<162xf32, #tpu.memory_space<smem>>
    %313 = vector.broadcast %312 : f32 to vector<14x14xf32>
    %314 = arith.mulf %313, %299 : vector<14x14xf32>
    %315 = arith.addf %289, %314 : vector<14x14xf32>
    %c119 = arith.constant 119 : index
    %316 = memref.load %arg2[%c119] : memref<162xf32, #tpu.memory_space<smem>>
    %317 = vector.broadcast %316 : f32 to vector<14x14xf32>
    %318 = arith.mulf %317, %299 : vector<14x14xf32>
    %319 = arith.addf %293, %318 : vector<14x14xf32>
    %c146 = arith.constant 146 : index
    %320 = memref.load %arg2[%c146] : memref<162xf32, #tpu.memory_space<smem>>
    %321 = vector.broadcast %320 : f32 to vector<14x14xf32>
    %322 = arith.mulf %321, %299 : vector<14x14xf32>
    %323 = arith.addf %297, %322 : vector<14x14xf32>
    %c0_54 = arith.constant 0 : index
    %c1_55 = arith.constant 1 : index
    %c1_56 = arith.constant 1 : index
    %c0_57 = arith.constant 0 : index
    %324 = vector.load %arg1[%c0_54, %c1_55, %c1_56, %c0_57] : memref<1x3x16x16xf32, #tpu.memory_space<vmem>>, vector<1x1x14x14xf32>
    %325 = vector.shape_cast %324 : vector<1x1x14x14xf32> to vector<14x14xf32>
    %c12 = arith.constant 12 : index
    %326 = memref.load %arg2[%c12] : memref<162xf32, #tpu.memory_space<smem>>
    %327 = vector.broadcast %326 : f32 to vector<14x14xf32>
    %328 = arith.mulf %327, %325 : vector<14x14xf32>
    %329 = arith.addf %303, %328 : vector<14x14xf32>
    %c39 = arith.constant 39 : index
    %330 = memref.load %arg2[%c39] : memref<162xf32, #tpu.memory_space<smem>>
    %331 = vector.broadcast %330 : f32 to vector<14x14xf32>
    %332 = arith.mulf %331, %325 : vector<14x14xf32>
    %333 = arith.addf %307, %332 : vector<14x14xf32>
    %c66 = arith.constant 66 : index
    %334 = memref.load %arg2[%c66] : memref<162xf32, #tpu.memory_space<smem>>
    %335 = vector.broadcast %334 : f32 to vector<14x14xf32>
    %336 = arith.mulf %335, %325 : vector<14x14xf32>
    %337 = arith.addf %311, %336 : vector<14x14xf32>
    %c93 = arith.constant 93 : index
    %338 = memref.load %arg2[%c93] : memref<162xf32, #tpu.memory_space<smem>>
    %339 = vector.broadcast %338 : f32 to vector<14x14xf32>
    %340 = arith.mulf %339, %325 : vector<14x14xf32>
    %341 = arith.addf %315, %340 : vector<14x14xf32>
    %c120 = arith.constant 120 : index
    %342 = memref.load %arg2[%c120] : memref<162xf32, #tpu.memory_space<smem>>
    %343 = vector.broadcast %342 : f32 to vector<14x14xf32>
    %344 = arith.mulf %343, %325 : vector<14x14xf32>
    %345 = arith.addf %319, %344 : vector<14x14xf32>
    %c147 = arith.constant 147 : index
    %346 = memref.load %arg2[%c147] : memref<162xf32, #tpu.memory_space<smem>>
    %347 = vector.broadcast %346 : f32 to vector<14x14xf32>
    %348 = arith.mulf %347, %325 : vector<14x14xf32>
    %349 = arith.addf %323, %348 : vector<14x14xf32>
    %c0_58 = arith.constant 0 : index
    %c1_59 = arith.constant 1 : index
    %c1_60 = arith.constant 1 : index
    %c1_61 = arith.constant 1 : index
    %350 = vector.load %arg1[%c0_58, %c1_59, %c1_60, %c1_61] : memref<1x3x16x16xf32, #tpu.memory_space<vmem>>, vector<1x1x14x14xf32>
    %351 = vector.shape_cast %350 : vector<1x1x14x14xf32> to vector<14x14xf32>
    %c13 = arith.constant 13 : index
    %352 = memref.load %arg2[%c13] : memref<162xf32, #tpu.memory_space<smem>>
    %353 = vector.broadcast %352 : f32 to vector<14x14xf32>
    %354 = arith.mulf %353, %351 : vector<14x14xf32>
    %355 = arith.addf %329, %354 : vector<14x14xf32>
    %c40 = arith.constant 40 : index
    %356 = memref.load %arg2[%c40] : memref<162xf32, #tpu.memory_space<smem>>
    %357 = vector.broadcast %356 : f32 to vector<14x14xf32>
    %358 = arith.mulf %357, %351 : vector<14x14xf32>
    %359 = arith.addf %333, %358 : vector<14x14xf32>
    %c67 = arith.constant 67 : index
    %360 = memref.load %arg2[%c67] : memref<162xf32, #tpu.memory_space<smem>>
    %361 = vector.broadcast %360 : f32 to vector<14x14xf32>
    %362 = arith.mulf %361, %351 : vector<14x14xf32>
    %363 = arith.addf %337, %362 : vector<14x14xf32>
    %c94 = arith.constant 94 : index
    %364 = memref.load %arg2[%c94] : memref<162xf32, #tpu.memory_space<smem>>
    %365 = vector.broadcast %364 : f32 to vector<14x14xf32>
    %366 = arith.mulf %365, %351 : vector<14x14xf32>
    %367 = arith.addf %341, %366 : vector<14x14xf32>
    %c121 = arith.constant 121 : index
    %368 = memref.load %arg2[%c121] : memref<162xf32, #tpu.memory_space<smem>>
    %369 = vector.broadcast %368 : f32 to vector<14x14xf32>
    %370 = arith.mulf %369, %351 : vector<14x14xf32>
    %371 = arith.addf %345, %370 : vector<14x14xf32>
    %c148 = arith.constant 148 : index
    %372 = memref.load %arg2[%c148] : memref<162xf32, #tpu.memory_space<smem>>
    %373 = vector.broadcast %372 : f32 to vector<14x14xf32>
    %374 = arith.mulf %373, %351 : vector<14x14xf32>
    %375 = arith.addf %349, %374 : vector<14x14xf32>
    %c0_62 = arith.constant 0 : index
    %c1_63 = arith.constant 1 : index
    %c1_64 = arith.constant 1 : index
    %c2_65 = arith.constant 2 : index
    %376 = vector.load %arg1[%c0_62, %c1_63, %c1_64, %c2_65] : memref<1x3x16x16xf32, #tpu.memory_space<vmem>>, vector<1x1x14x14xf32>
    %377 = vector.shape_cast %376 : vector<1x1x14x14xf32> to vector<14x14xf32>
    %c14 = arith.constant 14 : index
    %378 = memref.load %arg2[%c14] : memref<162xf32, #tpu.memory_space<smem>>
    %379 = vector.broadcast %378 : f32 to vector<14x14xf32>
    %380 = arith.mulf %379, %377 : vector<14x14xf32>
    %381 = arith.addf %355, %380 : vector<14x14xf32>
    %c41 = arith.constant 41 : index
    %382 = memref.load %arg2[%c41] : memref<162xf32, #tpu.memory_space<smem>>
    %383 = vector.broadcast %382 : f32 to vector<14x14xf32>
    %384 = arith.mulf %383, %377 : vector<14x14xf32>
    %385 = arith.addf %359, %384 : vector<14x14xf32>
    %c68 = arith.constant 68 : index
    %386 = memref.load %arg2[%c68] : memref<162xf32, #tpu.memory_space<smem>>
    %387 = vector.broadcast %386 : f32 to vector<14x14xf32>
    %388 = arith.mulf %387, %377 : vector<14x14xf32>
    %389 = arith.addf %363, %388 : vector<14x14xf32>
    %c95 = arith.constant 95 : index
    %390 = memref.load %arg2[%c95] : memref<162xf32, #tpu.memory_space<smem>>
    %391 = vector.broadcast %390 : f32 to vector<14x14xf32>
    %392 = arith.mulf %391, %377 : vector<14x14xf32>
    %393 = arith.addf %367, %392 : vector<14x14xf32>
    %c122 = arith.constant 122 : index
    %394 = memref.load %arg2[%c122] : memref<162xf32, #tpu.memory_space<smem>>
    %395 = vector.broadcast %394 : f32 to vector<14x14xf32>
    %396 = arith.mulf %395, %377 : vector<14x14xf32>
    %397 = arith.addf %371, %396 : vector<14x14xf32>
    %c149 = arith.constant 149 : index
    %398 = memref.load %arg2[%c149] : memref<162xf32, #tpu.memory_space<smem>>
    %399 = vector.broadcast %398 : f32 to vector<14x14xf32>
    %400 = arith.mulf %399, %377 : vector<14x14xf32>
    %401 = arith.addf %375, %400 : vector<14x14xf32>
    %c0_66 = arith.constant 0 : index
    %c1_67 = arith.constant 1 : index
    %c2_68 = arith.constant 2 : index
    %c0_69 = arith.constant 0 : index
    %402 = vector.load %arg1[%c0_66, %c1_67, %c2_68, %c0_69] : memref<1x3x16x16xf32, #tpu.memory_space<vmem>>, vector<1x1x14x14xf32>
    %403 = vector.shape_cast %402 : vector<1x1x14x14xf32> to vector<14x14xf32>
    %c15 = arith.constant 15 : index
    %404 = memref.load %arg2[%c15] : memref<162xf32, #tpu.memory_space<smem>>
    %405 = vector.broadcast %404 : f32 to vector<14x14xf32>
    %406 = arith.mulf %405, %403 : vector<14x14xf32>
    %407 = arith.addf %381, %406 : vector<14x14xf32>
    %c42 = arith.constant 42 : index
    %408 = memref.load %arg2[%c42] : memref<162xf32, #tpu.memory_space<smem>>
    %409 = vector.broadcast %408 : f32 to vector<14x14xf32>
    %410 = arith.mulf %409, %403 : vector<14x14xf32>
    %411 = arith.addf %385, %410 : vector<14x14xf32>
    %c69 = arith.constant 69 : index
    %412 = memref.load %arg2[%c69] : memref<162xf32, #tpu.memory_space<smem>>
    %413 = vector.broadcast %412 : f32 to vector<14x14xf32>
    %414 = arith.mulf %413, %403 : vector<14x14xf32>
    %415 = arith.addf %389, %414 : vector<14x14xf32>
    %c96 = arith.constant 96 : index
    %416 = memref.load %arg2[%c96] : memref<162xf32, #tpu.memory_space<smem>>
    %417 = vector.broadcast %416 : f32 to vector<14x14xf32>
    %418 = arith.mulf %417, %403 : vector<14x14xf32>
    %419 = arith.addf %393, %418 : vector<14x14xf32>
    %c123 = arith.constant 123 : index
    %420 = memref.load %arg2[%c123] : memref<162xf32, #tpu.memory_space<smem>>
    %421 = vector.broadcast %420 : f32 to vector<14x14xf32>
    %422 = arith.mulf %421, %403 : vector<14x14xf32>
    %423 = arith.addf %397, %422 : vector<14x14xf32>
    %c150 = arith.constant 150 : index
    %424 = memref.load %arg2[%c150] : memref<162xf32, #tpu.memory_space<smem>>
    %425 = vector.broadcast %424 : f32 to vector<14x14xf32>
    %426 = arith.mulf %425, %403 : vector<14x14xf32>
    %427 = arith.addf %401, %426 : vector<14x14xf32>
    %c0_70 = arith.constant 0 : index
    %c1_71 = arith.constant 1 : index
    %c2_72 = arith.constant 2 : index
    %c1_73 = arith.constant 1 : index
    %428 = vector.load %arg1[%c0_70, %c1_71, %c2_72, %c1_73] : memref<1x3x16x16xf32, #tpu.memory_space<vmem>>, vector<1x1x14x14xf32>
    %429 = vector.shape_cast %428 : vector<1x1x14x14xf32> to vector<14x14xf32>
    %c16 = arith.constant 16 : index
    %430 = memref.load %arg2[%c16] : memref<162xf32, #tpu.memory_space<smem>>
    %431 = vector.broadcast %430 : f32 to vector<14x14xf32>
    %432 = arith.mulf %431, %429 : vector<14x14xf32>
    %433 = arith.addf %407, %432 : vector<14x14xf32>
    %c43 = arith.constant 43 : index
    %434 = memref.load %arg2[%c43] : memref<162xf32, #tpu.memory_space<smem>>
    %435 = vector.broadcast %434 : f32 to vector<14x14xf32>
    %436 = arith.mulf %435, %429 : vector<14x14xf32>
    %437 = arith.addf %411, %436 : vector<14x14xf32>
    %c70 = arith.constant 70 : index
    %438 = memref.load %arg2[%c70] : memref<162xf32, #tpu.memory_space<smem>>
    %439 = vector.broadcast %438 : f32 to vector<14x14xf32>
    %440 = arith.mulf %439, %429 : vector<14x14xf32>
    %441 = arith.addf %415, %440 : vector<14x14xf32>
    %c97 = arith.constant 97 : index
    %442 = memref.load %arg2[%c97] : memref<162xf32, #tpu.memory_space<smem>>
    %443 = vector.broadcast %442 : f32 to vector<14x14xf32>
    %444 = arith.mulf %443, %429 : vector<14x14xf32>
    %445 = arith.addf %419, %444 : vector<14x14xf32>
    %c124 = arith.constant 124 : index
    %446 = memref.load %arg2[%c124] : memref<162xf32, #tpu.memory_space<smem>>
    %447 = vector.broadcast %446 : f32 to vector<14x14xf32>
    %448 = arith.mulf %447, %429 : vector<14x14xf32>
    %449 = arith.addf %423, %448 : vector<14x14xf32>
    %c151 = arith.constant 151 : index
    %450 = memref.load %arg2[%c151] : memref<162xf32, #tpu.memory_space<smem>>
    %451 = vector.broadcast %450 : f32 to vector<14x14xf32>
    %452 = arith.mulf %451, %429 : vector<14x14xf32>
    %453 = arith.addf %427, %452 : vector<14x14xf32>
    %c0_74 = arith.constant 0 : index
    %c1_75 = arith.constant 1 : index
    %c2_76 = arith.constant 2 : index
    %c2_77 = arith.constant 2 : index
    %454 = vector.load %arg1[%c0_74, %c1_75, %c2_76, %c2_77] : memref<1x3x16x16xf32, #tpu.memory_space<vmem>>, vector<1x1x14x14xf32>
    %455 = vector.shape_cast %454 : vector<1x1x14x14xf32> to vector<14x14xf32>
    %c17 = arith.constant 17 : index
    %456 = memref.load %arg2[%c17] : memref<162xf32, #tpu.memory_space<smem>>
    %457 = vector.broadcast %456 : f32 to vector<14x14xf32>
    %458 = arith.mulf %457, %455 : vector<14x14xf32>
    %459 = arith.addf %433, %458 : vector<14x14xf32>
    %c44 = arith.constant 44 : index
    %460 = memref.load %arg2[%c44] : memref<162xf32, #tpu.memory_space<smem>>
    %461 = vector.broadcast %460 : f32 to vector<14x14xf32>
    %462 = arith.mulf %461, %455 : vector<14x14xf32>
    %463 = arith.addf %437, %462 : vector<14x14xf32>
    %c71 = arith.constant 71 : index
    %464 = memref.load %arg2[%c71] : memref<162xf32, #tpu.memory_space<smem>>
    %465 = vector.broadcast %464 : f32 to vector<14x14xf32>
    %466 = arith.mulf %465, %455 : vector<14x14xf32>
    %467 = arith.addf %441, %466 : vector<14x14xf32>
    %c98 = arith.constant 98 : index
    %468 = memref.load %arg2[%c98] : memref<162xf32, #tpu.memory_space<smem>>
    %469 = vector.broadcast %468 : f32 to vector<14x14xf32>
    %470 = arith.mulf %469, %455 : vector<14x14xf32>
    %471 = arith.addf %445, %470 : vector<14x14xf32>
    %c125 = arith.constant 125 : index
    %472 = memref.load %arg2[%c125] : memref<162xf32, #tpu.memory_space<smem>>
    %473 = vector.broadcast %472 : f32 to vector<14x14xf32>
    %474 = arith.mulf %473, %455 : vector<14x14xf32>
    %475 = arith.addf %449, %474 : vector<14x14xf32>
    %c152 = arith.constant 152 : index
    %476 = memref.load %arg2[%c152] : memref<162xf32, #tpu.memory_space<smem>>
    %477 = vector.broadcast %476 : f32 to vector<14x14xf32>
    %478 = arith.mulf %477, %455 : vector<14x14xf32>
    %479 = arith.addf %453, %478 : vector<14x14xf32>
    %c0_78 = arith.constant 0 : index
    %c2_79 = arith.constant 2 : index
    %c0_80 = arith.constant 0 : index
    %c0_81 = arith.constant 0 : index
    %480 = vector.load %arg1[%c0_78, %c2_79, %c0_80, %c0_81] : memref<1x3x16x16xf32, #tpu.memory_space<vmem>>, vector<1x1x14x14xf32>
    %481 = vector.shape_cast %480 : vector<1x1x14x14xf32> to vector<14x14xf32>
    %c18 = arith.constant 18 : index
    %482 = memref.load %arg2[%c18] : memref<162xf32, #tpu.memory_space<smem>>
    %483 = vector.broadcast %482 : f32 to vector<14x14xf32>
    %484 = arith.mulf %483, %481 : vector<14x14xf32>
    %485 = arith.addf %459, %484 : vector<14x14xf32>
    %c45 = arith.constant 45 : index
    %486 = memref.load %arg2[%c45] : memref<162xf32, #tpu.memory_space<smem>>
    %487 = vector.broadcast %486 : f32 to vector<14x14xf32>
    %488 = arith.mulf %487, %481 : vector<14x14xf32>
    %489 = arith.addf %463, %488 : vector<14x14xf32>
    %c72 = arith.constant 72 : index
    %490 = memref.load %arg2[%c72] : memref<162xf32, #tpu.memory_space<smem>>
    %491 = vector.broadcast %490 : f32 to vector<14x14xf32>
    %492 = arith.mulf %491, %481 : vector<14x14xf32>
    %493 = arith.addf %467, %492 : vector<14x14xf32>
    %c99 = arith.constant 99 : index
    %494 = memref.load %arg2[%c99] : memref<162xf32, #tpu.memory_space<smem>>
    %495 = vector.broadcast %494 : f32 to vector<14x14xf32>
    %496 = arith.mulf %495, %481 : vector<14x14xf32>
    %497 = arith.addf %471, %496 : vector<14x14xf32>
    %c126 = arith.constant 126 : index
    %498 = memref.load %arg2[%c126] : memref<162xf32, #tpu.memory_space<smem>>
    %499 = vector.broadcast %498 : f32 to vector<14x14xf32>
    %500 = arith.mulf %499, %481 : vector<14x14xf32>
    %501 = arith.addf %475, %500 : vector<14x14xf32>
    %c153 = arith.constant 153 : index
    %502 = memref.load %arg2[%c153] : memref<162xf32, #tpu.memory_space<smem>>
    %503 = vector.broadcast %502 : f32 to vector<14x14xf32>
    %504 = arith.mulf %503, %481 : vector<14x14xf32>
    %505 = arith.addf %479, %504 : vector<14x14xf32>
    %c0_82 = arith.constant 0 : index
    %c2_83 = arith.constant 2 : index
    %c0_84 = arith.constant 0 : index
    %c1_85 = arith.constant 1 : index
    %506 = vector.load %arg1[%c0_82, %c2_83, %c0_84, %c1_85] : memref<1x3x16x16xf32, #tpu.memory_space<vmem>>, vector<1x1x14x14xf32>
    %507 = vector.shape_cast %506 : vector<1x1x14x14xf32> to vector<14x14xf32>
    %c19 = arith.constant 19 : index
    %508 = memref.load %arg2[%c19] : memref<162xf32, #tpu.memory_space<smem>>
    %509 = vector.broadcast %508 : f32 to vector<14x14xf32>
    %510 = arith.mulf %509, %507 : vector<14x14xf32>
    %511 = arith.addf %485, %510 : vector<14x14xf32>
    %c46 = arith.constant 46 : index
    %512 = memref.load %arg2[%c46] : memref<162xf32, #tpu.memory_space<smem>>
    %513 = vector.broadcast %512 : f32 to vector<14x14xf32>
    %514 = arith.mulf %513, %507 : vector<14x14xf32>
    %515 = arith.addf %489, %514 : vector<14x14xf32>
    %c73 = arith.constant 73 : index
    %516 = memref.load %arg2[%c73] : memref<162xf32, #tpu.memory_space<smem>>
    %517 = vector.broadcast %516 : f32 to vector<14x14xf32>
    %518 = arith.mulf %517, %507 : vector<14x14xf32>
    %519 = arith.addf %493, %518 : vector<14x14xf32>
    %c100 = arith.constant 100 : index
    %520 = memref.load %arg2[%c100] : memref<162xf32, #tpu.memory_space<smem>>
    %521 = vector.broadcast %520 : f32 to vector<14x14xf32>
    %522 = arith.mulf %521, %507 : vector<14x14xf32>
    %523 = arith.addf %497, %522 : vector<14x14xf32>
    %c127 = arith.constant 127 : index
    %524 = memref.load %arg2[%c127] : memref<162xf32, #tpu.memory_space<smem>>
    %525 = vector.broadcast %524 : f32 to vector<14x14xf32>
    %526 = arith.mulf %525, %507 : vector<14x14xf32>
    %527 = arith.addf %501, %526 : vector<14x14xf32>
    %c154 = arith.constant 154 : index
    %528 = memref.load %arg2[%c154] : memref<162xf32, #tpu.memory_space<smem>>
    %529 = vector.broadcast %528 : f32 to vector<14x14xf32>
    %530 = arith.mulf %529, %507 : vector<14x14xf32>
    %531 = arith.addf %505, %530 : vector<14x14xf32>
    %c0_86 = arith.constant 0 : index
    %c2_87 = arith.constant 2 : index
    %c0_88 = arith.constant 0 : index
    %c2_89 = arith.constant 2 : index
    %532 = vector.load %arg1[%c0_86, %c2_87, %c0_88, %c2_89] : memref<1x3x16x16xf32, #tpu.memory_space<vmem>>, vector<1x1x14x14xf32>
    %533 = vector.shape_cast %532 : vector<1x1x14x14xf32> to vector<14x14xf32>
    %c20 = arith.constant 20 : index
    %534 = memref.load %arg2[%c20] : memref<162xf32, #tpu.memory_space<smem>>
    %535 = vector.broadcast %534 : f32 to vector<14x14xf32>
    %536 = arith.mulf %535, %533 : vector<14x14xf32>
    %537 = arith.addf %511, %536 : vector<14x14xf32>
    %c47 = arith.constant 47 : index
    %538 = memref.load %arg2[%c47] : memref<162xf32, #tpu.memory_space<smem>>
    %539 = vector.broadcast %538 : f32 to vector<14x14xf32>
    %540 = arith.mulf %539, %533 : vector<14x14xf32>
    %541 = arith.addf %515, %540 : vector<14x14xf32>
    %c74 = arith.constant 74 : index
    %542 = memref.load %arg2[%c74] : memref<162xf32, #tpu.memory_space<smem>>
    %543 = vector.broadcast %542 : f32 to vector<14x14xf32>
    %544 = arith.mulf %543, %533 : vector<14x14xf32>
    %545 = arith.addf %519, %544 : vector<14x14xf32>
    %c101 = arith.constant 101 : index
    %546 = memref.load %arg2[%c101] : memref<162xf32, #tpu.memory_space<smem>>
    %547 = vector.broadcast %546 : f32 to vector<14x14xf32>
    %548 = arith.mulf %547, %533 : vector<14x14xf32>
    %549 = arith.addf %523, %548 : vector<14x14xf32>
    %c128 = arith.constant 128 : index
    %550 = memref.load %arg2[%c128] : memref<162xf32, #tpu.memory_space<smem>>
    %551 = vector.broadcast %550 : f32 to vector<14x14xf32>
    %552 = arith.mulf %551, %533 : vector<14x14xf32>
    %553 = arith.addf %527, %552 : vector<14x14xf32>
    %c155 = arith.constant 155 : index
    %554 = memref.load %arg2[%c155] : memref<162xf32, #tpu.memory_space<smem>>
    %555 = vector.broadcast %554 : f32 to vector<14x14xf32>
    %556 = arith.mulf %555, %533 : vector<14x14xf32>
    %557 = arith.addf %531, %556 : vector<14x14xf32>
    %c0_90 = arith.constant 0 : index
    %c2_91 = arith.constant 2 : index
    %c1_92 = arith.constant 1 : index
    %c0_93 = arith.constant 0 : index
    %558 = vector.load %arg1[%c0_90, %c2_91, %c1_92, %c0_93] : memref<1x3x16x16xf32, #tpu.memory_space<vmem>>, vector<1x1x14x14xf32>
    %559 = vector.shape_cast %558 : vector<1x1x14x14xf32> to vector<14x14xf32>
    %c21 = arith.constant 21 : index
    %560 = memref.load %arg2[%c21] : memref<162xf32, #tpu.memory_space<smem>>
    %561 = vector.broadcast %560 : f32 to vector<14x14xf32>
    %562 = arith.mulf %561, %559 : vector<14x14xf32>
    %563 = arith.addf %537, %562 : vector<14x14xf32>
    %c48 = arith.constant 48 : index
    %564 = memref.load %arg2[%c48] : memref<162xf32, #tpu.memory_space<smem>>
    %565 = vector.broadcast %564 : f32 to vector<14x14xf32>
    %566 = arith.mulf %565, %559 : vector<14x14xf32>
    %567 = arith.addf %541, %566 : vector<14x14xf32>
    %c75 = arith.constant 75 : index
    %568 = memref.load %arg2[%c75] : memref<162xf32, #tpu.memory_space<smem>>
    %569 = vector.broadcast %568 : f32 to vector<14x14xf32>
    %570 = arith.mulf %569, %559 : vector<14x14xf32>
    %571 = arith.addf %545, %570 : vector<14x14xf32>
    %c102 = arith.constant 102 : index
    %572 = memref.load %arg2[%c102] : memref<162xf32, #tpu.memory_space<smem>>
    %573 = vector.broadcast %572 : f32 to vector<14x14xf32>
    %574 = arith.mulf %573, %559 : vector<14x14xf32>
    %575 = arith.addf %549, %574 : vector<14x14xf32>
    %c129 = arith.constant 129 : index
    %576 = memref.load %arg2[%c129] : memref<162xf32, #tpu.memory_space<smem>>
    %577 = vector.broadcast %576 : f32 to vector<14x14xf32>
    %578 = arith.mulf %577, %559 : vector<14x14xf32>
    %579 = arith.addf %553, %578 : vector<14x14xf32>
    %c156 = arith.constant 156 : index
    %580 = memref.load %arg2[%c156] : memref<162xf32, #tpu.memory_space<smem>>
    %581 = vector.broadcast %580 : f32 to vector<14x14xf32>
    %582 = arith.mulf %581, %559 : vector<14x14xf32>
    %583 = arith.addf %557, %582 : vector<14x14xf32>
    %c0_94 = arith.constant 0 : index
    %c2_95 = arith.constant 2 : index
    %c1_96 = arith.constant 1 : index
    %c1_97 = arith.constant 1 : index
    %584 = vector.load %arg1[%c0_94, %c2_95, %c1_96, %c1_97] : memref<1x3x16x16xf32, #tpu.memory_space<vmem>>, vector<1x1x14x14xf32>
    %585 = vector.shape_cast %584 : vector<1x1x14x14xf32> to vector<14x14xf32>
    %c22 = arith.constant 22 : index
    %586 = memref.load %arg2[%c22] : memref<162xf32, #tpu.memory_space<smem>>
    %587 = vector.broadcast %586 : f32 to vector<14x14xf32>
    %588 = arith.mulf %587, %585 : vector<14x14xf32>
    %589 = arith.addf %563, %588 : vector<14x14xf32>
    %c49 = arith.constant 49 : index
    %590 = memref.load %arg2[%c49] : memref<162xf32, #tpu.memory_space<smem>>
    %591 = vector.broadcast %590 : f32 to vector<14x14xf32>
    %592 = arith.mulf %591, %585 : vector<14x14xf32>
    %593 = arith.addf %567, %592 : vector<14x14xf32>
    %c76 = arith.constant 76 : index
    %594 = memref.load %arg2[%c76] : memref<162xf32, #tpu.memory_space<smem>>
    %595 = vector.broadcast %594 : f32 to vector<14x14xf32>
    %596 = arith.mulf %595, %585 : vector<14x14xf32>
    %597 = arith.addf %571, %596 : vector<14x14xf32>
    %c103 = arith.constant 103 : index
    %598 = memref.load %arg2[%c103] : memref<162xf32, #tpu.memory_space<smem>>
    %599 = vector.broadcast %598 : f32 to vector<14x14xf32>
    %600 = arith.mulf %599, %585 : vector<14x14xf32>
    %601 = arith.addf %575, %600 : vector<14x14xf32>
    %c130 = arith.constant 130 : index
    %602 = memref.load %arg2[%c130] : memref<162xf32, #tpu.memory_space<smem>>
    %603 = vector.broadcast %602 : f32 to vector<14x14xf32>
    %604 = arith.mulf %603, %585 : vector<14x14xf32>
    %605 = arith.addf %579, %604 : vector<14x14xf32>
    %c157 = arith.constant 157 : index
    %606 = memref.load %arg2[%c157] : memref<162xf32, #tpu.memory_space<smem>>
    %607 = vector.broadcast %606 : f32 to vector<14x14xf32>
    %608 = arith.mulf %607, %585 : vector<14x14xf32>
    %609 = arith.addf %583, %608 : vector<14x14xf32>
    %c0_98 = arith.constant 0 : index
    %c2_99 = arith.constant 2 : index
    %c1_100 = arith.constant 1 : index
    %c2_101 = arith.constant 2 : index
    %610 = vector.load %arg1[%c0_98, %c2_99, %c1_100, %c2_101] : memref<1x3x16x16xf32, #tpu.memory_space<vmem>>, vector<1x1x14x14xf32>
    %611 = vector.shape_cast %610 : vector<1x1x14x14xf32> to vector<14x14xf32>
    %c23 = arith.constant 23 : index
    %612 = memref.load %arg2[%c23] : memref<162xf32, #tpu.memory_space<smem>>
    %613 = vector.broadcast %612 : f32 to vector<14x14xf32>
    %614 = arith.mulf %613, %611 : vector<14x14xf32>
    %615 = arith.addf %589, %614 : vector<14x14xf32>
    %c50 = arith.constant 50 : index
    %616 = memref.load %arg2[%c50] : memref<162xf32, #tpu.memory_space<smem>>
    %617 = vector.broadcast %616 : f32 to vector<14x14xf32>
    %618 = arith.mulf %617, %611 : vector<14x14xf32>
    %619 = arith.addf %593, %618 : vector<14x14xf32>
    %c77 = arith.constant 77 : index
    %620 = memref.load %arg2[%c77] : memref<162xf32, #tpu.memory_space<smem>>
    %621 = vector.broadcast %620 : f32 to vector<14x14xf32>
    %622 = arith.mulf %621, %611 : vector<14x14xf32>
    %623 = arith.addf %597, %622 : vector<14x14xf32>
    %c104 = arith.constant 104 : index
    %624 = memref.load %arg2[%c104] : memref<162xf32, #tpu.memory_space<smem>>
    %625 = vector.broadcast %624 : f32 to vector<14x14xf32>
    %626 = arith.mulf %625, %611 : vector<14x14xf32>
    %627 = arith.addf %601, %626 : vector<14x14xf32>
    %c131 = arith.constant 131 : index
    %628 = memref.load %arg2[%c131] : memref<162xf32, #tpu.memory_space<smem>>
    %629 = vector.broadcast %628 : f32 to vector<14x14xf32>
    %630 = arith.mulf %629, %611 : vector<14x14xf32>
    %631 = arith.addf %605, %630 : vector<14x14xf32>
    %c158 = arith.constant 158 : index
    %632 = memref.load %arg2[%c158] : memref<162xf32, #tpu.memory_space<smem>>
    %633 = vector.broadcast %632 : f32 to vector<14x14xf32>
    %634 = arith.mulf %633, %611 : vector<14x14xf32>
    %635 = arith.addf %609, %634 : vector<14x14xf32>
    %c0_102 = arith.constant 0 : index
    %c2_103 = arith.constant 2 : index
    %c2_104 = arith.constant 2 : index
    %c0_105 = arith.constant 0 : index
    %636 = vector.load %arg1[%c0_102, %c2_103, %c2_104, %c0_105] : memref<1x3x16x16xf32, #tpu.memory_space<vmem>>, vector<1x1x14x14xf32>
    %637 = vector.shape_cast %636 : vector<1x1x14x14xf32> to vector<14x14xf32>
    %c24 = arith.constant 24 : index
    %638 = memref.load %arg2[%c24] : memref<162xf32, #tpu.memory_space<smem>>
    %639 = vector.broadcast %638 : f32 to vector<14x14xf32>
    %640 = arith.mulf %639, %637 : vector<14x14xf32>
    %641 = arith.addf %615, %640 : vector<14x14xf32>
    %c51 = arith.constant 51 : index
    %642 = memref.load %arg2[%c51] : memref<162xf32, #tpu.memory_space<smem>>
    %643 = vector.broadcast %642 : f32 to vector<14x14xf32>
    %644 = arith.mulf %643, %637 : vector<14x14xf32>
    %645 = arith.addf %619, %644 : vector<14x14xf32>
    %c78 = arith.constant 78 : index
    %646 = memref.load %arg2[%c78] : memref<162xf32, #tpu.memory_space<smem>>
    %647 = vector.broadcast %646 : f32 to vector<14x14xf32>
    %648 = arith.mulf %647, %637 : vector<14x14xf32>
    %649 = arith.addf %623, %648 : vector<14x14xf32>
    %c105 = arith.constant 105 : index
    %650 = memref.load %arg2[%c105] : memref<162xf32, #tpu.memory_space<smem>>
    %651 = vector.broadcast %650 : f32 to vector<14x14xf32>
    %652 = arith.mulf %651, %637 : vector<14x14xf32>
    %653 = arith.addf %627, %652 : vector<14x14xf32>
    %c132 = arith.constant 132 : index
    %654 = memref.load %arg2[%c132] : memref<162xf32, #tpu.memory_space<smem>>
    %655 = vector.broadcast %654 : f32 to vector<14x14xf32>
    %656 = arith.mulf %655, %637 : vector<14x14xf32>
    %657 = arith.addf %631, %656 : vector<14x14xf32>
    %c159 = arith.constant 159 : index
    %658 = memref.load %arg2[%c159] : memref<162xf32, #tpu.memory_space<smem>>
    %659 = vector.broadcast %658 : f32 to vector<14x14xf32>
    %660 = arith.mulf %659, %637 : vector<14x14xf32>
    %661 = arith.addf %635, %660 : vector<14x14xf32>
    %c0_106 = arith.constant 0 : index
    %c2_107 = arith.constant 2 : index
    %c2_108 = arith.constant 2 : index
    %c1_109 = arith.constant 1 : index
    %662 = vector.load %arg1[%c0_106, %c2_107, %c2_108, %c1_109] : memref<1x3x16x16xf32, #tpu.memory_space<vmem>>, vector<1x1x14x14xf32>
    %663 = vector.shape_cast %662 : vector<1x1x14x14xf32> to vector<14x14xf32>
    %c25 = arith.constant 25 : index
    %664 = memref.load %arg2[%c25] : memref<162xf32, #tpu.memory_space<smem>>
    %665 = vector.broadcast %664 : f32 to vector<14x14xf32>
    %666 = arith.mulf %665, %663 : vector<14x14xf32>
    %667 = arith.addf %641, %666 : vector<14x14xf32>
    %c52 = arith.constant 52 : index
    %668 = memref.load %arg2[%c52] : memref<162xf32, #tpu.memory_space<smem>>
    %669 = vector.broadcast %668 : f32 to vector<14x14xf32>
    %670 = arith.mulf %669, %663 : vector<14x14xf32>
    %671 = arith.addf %645, %670 : vector<14x14xf32>
    %c79 = arith.constant 79 : index
    %672 = memref.load %arg2[%c79] : memref<162xf32, #tpu.memory_space<smem>>
    %673 = vector.broadcast %672 : f32 to vector<14x14xf32>
    %674 = arith.mulf %673, %663 : vector<14x14xf32>
    %675 = arith.addf %649, %674 : vector<14x14xf32>
    %c106 = arith.constant 106 : index
    %676 = memref.load %arg2[%c106] : memref<162xf32, #tpu.memory_space<smem>>
    %677 = vector.broadcast %676 : f32 to vector<14x14xf32>
    %678 = arith.mulf %677, %663 : vector<14x14xf32>
    %679 = arith.addf %653, %678 : vector<14x14xf32>
    %c133 = arith.constant 133 : index
    %680 = memref.load %arg2[%c133] : memref<162xf32, #tpu.memory_space<smem>>
    %681 = vector.broadcast %680 : f32 to vector<14x14xf32>
    %682 = arith.mulf %681, %663 : vector<14x14xf32>
    %683 = arith.addf %657, %682 : vector<14x14xf32>
    %c160 = arith.constant 160 : index
    %684 = memref.load %arg2[%c160] : memref<162xf32, #tpu.memory_space<smem>>
    %685 = vector.broadcast %684 : f32 to vector<14x14xf32>
    %686 = arith.mulf %685, %663 : vector<14x14xf32>
    %687 = arith.addf %661, %686 : vector<14x14xf32>
    %c0_110 = arith.constant 0 : index
    %c2_111 = arith.constant 2 : index
    %c2_112 = arith.constant 2 : index
    %c2_113 = arith.constant 2 : index
    %688 = vector.load %arg1[%c0_110, %c2_111, %c2_112, %c2_113] : memref<1x3x16x16xf32, #tpu.memory_space<vmem>>, vector<1x1x14x14xf32>
    %689 = vector.shape_cast %688 : vector<1x1x14x14xf32> to vector<14x14xf32>
    %c26 = arith.constant 26 : index
    %690 = memref.load %arg2[%c26] : memref<162xf32, #tpu.memory_space<smem>>
    %691 = vector.broadcast %690 : f32 to vector<14x14xf32>
    %692 = arith.mulf %691, %689 : vector<14x14xf32>
    %693 = arith.addf %667, %692 : vector<14x14xf32>
    %c53 = arith.constant 53 : index
    %694 = memref.load %arg2[%c53] : memref<162xf32, #tpu.memory_space<smem>>
    %695 = vector.broadcast %694 : f32 to vector<14x14xf32>
    %696 = arith.mulf %695, %689 : vector<14x14xf32>
    %697 = arith.addf %671, %696 : vector<14x14xf32>
    %c80 = arith.constant 80 : index
    %698 = memref.load %arg2[%c80] : memref<162xf32, #tpu.memory_space<smem>>
    %699 = vector.broadcast %698 : f32 to vector<14x14xf32>
    %700 = arith.mulf %699, %689 : vector<14x14xf32>
    %701 = arith.addf %675, %700 : vector<14x14xf32>
    %c107 = arith.constant 107 : index
    %702 = memref.load %arg2[%c107] : memref<162xf32, #tpu.memory_space<smem>>
    %703 = vector.broadcast %702 : f32 to vector<14x14xf32>
    %704 = arith.mulf %703, %689 : vector<14x14xf32>
    %705 = arith.addf %679, %704 : vector<14x14xf32>
    %c134 = arith.constant 134 : index
    %706 = memref.load %arg2[%c134] : memref<162xf32, #tpu.memory_space<smem>>
    %707 = vector.broadcast %706 : f32 to vector<14x14xf32>
    %708 = arith.mulf %707, %689 : vector<14x14xf32>
    %709 = arith.addf %683, %708 : vector<14x14xf32>
    %c161 = arith.constant 161 : index
    %710 = memref.load %arg2[%c161] : memref<162xf32, #tpu.memory_space<smem>>
    %711 = vector.broadcast %710 : f32 to vector<14x14xf32>
    %712 = arith.mulf %711, %689 : vector<14x14xf32>
    %713 = arith.addf %687, %712 : vector<14x14xf32>
    %c0_114 = arith.constant 0 : index
    %c0_115 = arith.constant 0 : index
    %c0_116 = arith.constant 0 : index
    %c0_117 = arith.constant 0 : index
    %714 = vector.load %arg4[%c0_114, %c0_115, %c0_116, %c0_117] : memref<1x6x14x14xf32, #tpu.memory_space<vmem>>, vector<1x1x14x14xf32>
    %715 = vector.shape_cast %714 : vector<1x1x14x14xf32> to vector<14x14xf32>
    %716 = vector.shape_cast %693 : vector<14x14xf32> to vector<1x1x14x14xf32>
    tpu.vector_store %arg4[%c0_114, %c0_115, %c0_116, %c0_117], %716 {strides = array<i32>} : memref<1x6x14x14xf32, #tpu.memory_space<vmem>>, vector<1x1x14x14xf32>,
    %c0_118 = arith.constant 0 : index
    %c1_119 = arith.constant 1 : index
    %c0_120 = arith.constant 0 : index
    %c0_121 = arith.constant 0 : index
    %717 = vector.load %arg4[%c0_118, %c1_119, %c0_120, %c0_121] : memref<1x6x14x14xf32, #tpu.memory_space<vmem>>, vector<1x1x14x14xf32>
    %718 = vector.shape_cast %717 : vector<1x1x14x14xf32> to vector<14x14xf32>
    %719 = vector.shape_cast %697 : vector<14x14xf32> to vector<1x1x14x14xf32>
    tpu.vector_store %arg4[%c0_118, %c1_119, %c0_120, %c0_121], %719 {strides = array<i32>} : memref<1x6x14x14xf32, #tpu.memory_space<vmem>>, vector<1x1x14x14xf32>,
    %c0_122 = arith.constant 0 : index
    %c2_123 = arith.constant 2 : index
    %c0_124 = arith.constant 0 : index
    %c0_125 = arith.constant 0 : index
    %720 = vector.load %arg4[%c0_122, %c2_123, %c0_124, %c0_125] : memref<1x6x14x14xf32, #tpu.memory_space<vmem>>, vector<1x1x14x14xf32>
    %721 = vector.shape_cast %720 : vector<1x1x14x14xf32> to vector<14x14xf32>
    %722 = vector.shape_cast %701 : vector<14x14xf32> to vector<1x1x14x14xf32>
    tpu.vector_store %arg4[%c0_122, %c2_123, %c0_124, %c0_125], %722 {strides = array<i32>} : memref<1x6x14x14xf32, #tpu.memory_space<vmem>>, vector<1x1x14x14xf32>,
    %c0_126 = arith.constant 0 : index
    %c3_127 = arith.constant 3 : index
    %c0_128 = arith.constant 0 : index
    %c0_129 = arith.constant 0 : index
    %723 = vector.load %arg4[%c0_126, %c3_127, %c0_128, %c0_129] : memref<1x6x14x14xf32, #tpu.memory_space<vmem>>, vector<1x1x14x14xf32>
    %724 = vector.shape_cast %723 : vector<1x1x14x14xf32> to vector<14x14xf32>
    %725 = vector.shape_cast %705 : vector<14x14xf32> to vector<1x1x14x14xf32>
    tpu.vector_store %arg4[%c0_126, %c3_127, %c0_128, %c0_129], %725 {strides = array<i32>} : memref<1x6x14x14xf32, #tpu.memory_space<vmem>>, vector<1x1x14x14xf32>,
    %c0_130 = arith.constant 0 : index
    %c4_131 = arith.constant 4 : index
    %c0_132 = arith.constant 0 : index
    %c0_133 = arith.constant 0 : index
    %726 = vector.load %arg4[%c0_130, %c4_131, %c0_132, %c0_133] : memref<1x6x14x14xf32, #tpu.memory_space<vmem>>, vector<1x1x14x14xf32>
    %727 = vector.shape_cast %726 : vector<1x1x14x14xf32> to vector<14x14xf32>
    %728 = vector.shape_cast %709 : vector<14x14xf32> to vector<1x1x14x14xf32>
    tpu.vector_store %arg4[%c0_130, %c4_131, %c0_132, %c0_133], %728 {strides = array<i32>} : memref<1x6x14x14xf32, #tpu.memory_space<vmem>>, vector<1x1x14x14xf32>,
    %c0_134 = arith.constant 0 : index
    %c5_135 = arith.constant 5 : index
    %c0_136 = arith.constant 0 : index
    %c0_137 = arith.constant 0 : index
    %729 = vector.load %arg4[%c0_134, %c5_135, %c0_136, %c0_137] : memref<1x6x14x14xf32, #tpu.memory_space<vmem>>, vector<1x1x14x14xf32>
    %730 = vector.shape_cast %729 : vector<1x1x14x14xf32> to vector<14x14xf32>
    %731 = vector.shape_cast %713 : vector<14x14xf32> to vector<1x1x14x14xf32>
    tpu.vector_store %arg4[%c0_134, %c5_135, %c0_136, %c0_137], %731 {strides = array<i32>} : memref<1x6x14x14xf32, #tpu.memory_space<vmem>>, vector<1x1x14x14xf32>,
    return
  }
  func.func @transform_0(%arg0: i32) -> (i32, i32, i32, i32) {
    %c0_i32 = arith.constant 0 : i32
    %c0_i32_0 = arith.constant 0 : i32
    %c0_i32_1 = arith.constant 0 : i32
    %c0_i32_2 = arith.constant 0 : i32
    return %arg0, %c0_i32, %c0_i32_0, %c0_i32_1 : i32, i32, i32, i32
  }
  func.func @transform_1(%arg0: i32) -> i32 {
    %c0_i32 = arith.constant 0 : i32
    %c0_i32_0 = arith.constant 0 : i32
    return %c0_i32 : i32
  }
  func.func @transform_2(%arg0: i32) -> i32 {
    %c0_i32 = arith.constant 0 : i32
    %c0_i32_0 = arith.constant 0 : i32
    return %c0_i32 : i32
  }
  func.func @transform_3(%arg0: i32) -> (i32, i32, i32, i32) {
    %c0_i32 = arith.constant 0 : i32
    %c0_i32_0 = arith.constant 0 : i32
    %c0_i32_1 = arith.constant 0 : i32
    %c0_i32_2 = arith.constant 0 : i32
    return %arg0, %c0_i32, %c0_i32_0, %c0_i32_1 : i32, i32, i32, i32
  }
}

</mosaic_0001>

<bundles_post_ra>
// kernel: tpu_custom_call.1
= control target key start
LH: loop header
LB: loop body
LE: loop exit
PB: predicated region body
PF: predicated region fallthrough
CT: control target
= control target key end

     0   :  { %8 = vsyncpa [#allocation3], 0  ;;  %s4348_s0 = inlined_call_operand.hbm [shape: f32[2,3,16,16], index: 0, kind: input, shape index: {}]   ;;  %s4349_s1 = inlined_call_operand.hbm [shape: f32[162], index: 1, kind: input, shape index: {}]   ;;  %s4350_s2 = inlined_call_operand.vmem [shape: f32[6], index: 2, kind: input, shape index: {}]   ;;  %s4351_s3 = inlined_call_operand.vmem [shape: f32[2,6,14,14], index: 3, kind: output, shape index: {}]  }
   0x1   :  { %10 = vsyncpa [#allocation3 + $0x1], 0 }
   0x2   :  { %11 = vsyncpa [#allocation4], 0 }
   0x3   :  { %12 = vsyncpa [#allocation5], 0  ;;  %s2600_s12 = smov 0   ;;  %s2602_s13 = smov 0  }
   0x4   :  { %s2604_s14 = smov 0   ;;  %s2606_s15 = smov 0  }
   0x5 LB: > { %s2619_s16 = sadd.s32 4294967295, %s2572_s15   ;;  %s2622_s17 = sadd.s32 1, %s2572_s15   ;;  %s2572_s15 = sphi %s2606_s15, %s4457_s15   ;;  %s2568_s14 = sphi %s2604_s14, %s4456_s14   ;;  %s2564_s13 = sphi %s2602_s13, %s4455_s13   ;;  %s2560_s12 = sphi %s2600_s12, %s4454_s12  }
   0x6   : > { %s22_s18 = ssub.s32 %s2572_s15, %s2622_s17  ;;  %s25_s19 = sadd.s32 1, %s2568_s14 }
   0x7   : > { %p23_p0 = scmp.eq.s32.totalorder %s22_s18, 0  ;;  %p32_p1 = scmp.ne.s32.totalorder %s2568_s14, %s2564_s13 }
   0x8   : > { %p33_p2 = scmp.eq.s32.totalorder %s2572_s15, 0  ;;  %p38_p3 = scmp.ne.s32.totalorder %s2564_s13, %s2560_s12 }
   0x9   : > { %s2632_s20 = scalar_select %p23_p0, %s2568_s14, %s25_s19  }
   0xa   : > { %p2634_p4 = por %p33_p2, %p32_p1  ;;  %p39_p5 = scmp.eq.s32.totalorder %s2619_s16, 0 }
   0xb   : > { %p2199_p6 = scmp.ge.s32.totalorder %s2572_s15, 1  ;;  %p117_p7 = scmp.lt.s32.totalorder %s2572_s15, 3 }
   0xc   : > { %p2643_p8 = por %p39_p5, %p38_p3  ;;  %s129_s26 = sshll.u32 %s4349_s1, 4  ;;  %s130_s26 = int_to_ptr.hbm [resolvable:$true] %s129_s26 }
   0xd   : > { %p2647_p9 = pnand %p2199_p6, %p117_p7  ;;  %p2425_p11 = scmp.lt.s32.totalorder %s2572_s15, 2 }
   0xe   : > { %s139_s29 = sshll.u32 %s4350_s2, 4  ;;  %s150_s4 = sand.u32 1, %s2568_s14   ;;  %s140_s29 = int_to_ptr.vmem [resolvable:$true] %s139_s29 }
   0xf   : > { %p2412_p10 = pneg %p2647_p9  ;;  %p2664_p13 = pnand %p2425_p11, %p2634_p4 }
  0x10   : > { %s2574_s5 = smov [#allocation6]   ;;  %s2575_s6 = smov [#allocation7]  }
  0x11   : > { %p2413_p12 = pnand %p2412_p10, %p39_p5  ;;  %s2398_s7 = smul.u32 48, %s150_s4 }
  0x12   : > { %s2399_s8 = smul.u32 48, %s2572_s15  ;;  %s151_s21 = scalar_lea.sflag [#allocation3], %s150_s4 }
  0x13   : > { %2415 = dma.hbm_to_smem (!%p2413_p12), %s130_s26, 32, %s2574_s5, [#allocation4]  }
  0x14   : > { %2418 = dma.vmem_to_smem (!%p2413_p12), %s140_s29, 16, %s2575_s6, [#allocation5]  }
  0x15   : > { %s159_s11 = scalar_lea.hbm %s4348_s0, %s2399_s8  ;;  %s154_s12 = scalar_lea.vmem [#allocation2], %s2398_s7 }
  0x16   : > { %s162_s18 = sshll.u32 %s154_s12, 4  ;;  %s160_s19 = sshll.u32 %s159_s11, 4  ;;  %s163_s18 = int_to_ptr.vmem [resolvable:$true] %s162_s18  ;;  %s161_s19 = int_to_ptr.hbm [resolvable:$true] %s160_s19 }
  0x17   : > { %s2500_s24 = sshra.s32 %s161_s19, 4  ;;  %p2504_p1 = pneg %p2664_p13  ;;  %s2501_s24 = int_to_ptr.hbm [resolvable:$true] %s2500_s24 }
  0x18   : > { %s2502_s25 = scalar_lea.hbm %s2501_s24, 48  ;;  %s2507_s27 = scalar_lea.hbm %s4348_s0, 96 }
  0x19   : > { %p2503_p0 = scmp.ne.s32.totalorder %s2501_s24, %s2502_s25  ;;  %p2508_p4 = scmp.lt.s32.totalorder %s2501_s24, %s4348_s0 }
  0x1a   : > { %p2509_p6 = scmp.lt.s32.totalorder %s2507_s27, %s2502_s25 }
  0x1b   : > { %p2505_p2 = pnand %p2504_p1, %p2503_p0 }
  0x1c   : > { %p2510_p7 = por %p2509_p6, %p2508_p4 }
  0x1d   : > { %p2506_p3 = pneg %p2505_p2 }
  0x1f   : > { %p2511_p10 = pnand %p2510_p7, %p2506_p3 }
  0x21   : > { %2514 = shalt.err (!%p2511_p10)
}
  0x22   : > { %s2576_s4 = smov 128   ;;  %s2577_s5 = smov 8  }
  0x23   : > { %2422 = dma.hbm_to_vmem [thread:$0]  (!%p2664_p13), %s161_s19, 768, %s163_s18, %s151_s21, %s2576_s4, %s2576_s4, %s2577_s5  }
  0x24   : > { %174 = sbr.rel (%p2647_p9) target bundleno = 749 (0x2ed), region = 32 }
  0x29   : > { %s176_s6 = sand.u32 1, %s2564_s13  }
  0x2a   : > { %s2400_s7 = smul.u32 48, %s176_s6  ;;  %s177_s8 = scalar_lea.sflag [#allocation3], %s176_s6 }
  0x2c   : > { %s2686_s9 = scalar_lea.vmem [#allocation2], %s2400_s7 }
  0x2d   : > { %2547 = dma.done.wait (%p2643_p8), %s177_s8, 768  }
  0x2e   : > { %2549 = vsyncadd (%p2643_p8), %s177_s8, 4294966528 }
  0x2f   : > { %2551 = dma.done.wait (%p39_p5), [#allocation4], 32  }
  0x30   : > { %2553 = vsyncadd (%p39_p5), [#allocation4], 4294967264 }
  0x31   : > { %2555 = dma.done.wait (%p39_p5), [#allocation5], 16  }
  0x32   : > { %2557 = vsyncadd (%p39_p5), [#allocation5], 4294967280 }
  0x33   : > { %196 = sfence }
  0x34   : > { %s2220_s23 = sld [smem:[#allocation6 + $0x37]]  ;;  %v2701_v0 = vld [vmem:[%s2686_s9] sm:$0xff]  ;;  %s2578_s22 = smov 127   ;;  %v2708_v7 = vld [vmem:[%s2686_s9 + $0x8] sm:$0x3f]  ;;  %vm2088_vm0 = vcmask 113664  }
  0x35   : > { %s2219_s30 = sld [smem:[#allocation6 + $0x1c]]  ;;  %s2579_s25 = smov 126   ;;  %v2754_v38 = vld [vmem:[%s2686_s9 + $0x1] sm:$0xff]  ;;  %v2758_v40 = vld [vmem:[%s2686_s9 + $0x9] sm:$0x3f]  ;;  %vm2090_vm1 = vcmask 111616  }
  0x36   : > { %s2218_s10 = sld [smem:[#allocation6 + $0x1]]  ;;  %p215_p5 = scmp.lt.s32.totalorder %s2619_s16, 1 }
  0x37   : > { %s2222_s11 = sld [smem:[#allocation6 + $0x6d]] }
  0x38   : > { %s2221_s12 = sld [smem:[#allocation6 + $0x52]]  ;;  %s4459_s16 = smov (!%p215_p5, %s2619_s16), 1 }
  0x39   : > { %s2223_s18 = sld [smem:[#allocation6 + $0x88]] }
  0x3a   : > { %v299_v1 = vstv %s2220_s23  ;;  %s2225_s19 = sld [smem:[#allocation6 + $0x1d]] }
  0x3b   : > { %v300_v2 = vmul.f32 %v299_v1, %v2701_v0  ;;  %v285_v3 = vstv %s2219_s30  ;;  %v301_v8 = vmul.f32 %v299_v1, %v2708_v7  ;;  %s2224_s21 = sld [smem:[#allocation6 + $0x2]] }
  0x3c   : > { %v286_v4 = vmul.f32 %v285_v3, %v2701_v0  ;;  %v271_v5 = vstv %s2218_s10  ;;  %v287_v9 = vmul.f32 %v285_v3, %v2708_v7  ;;  %s2226_s24 = sld [smem:[#allocation6 + $0x38]] }
  0x3d   : > { %304 = vrot.lane.b32.xlu2 %v300_v2, %s2578_s22  ;;  %v272_v6 = vmul.f32 %v271_v5, %v2701_v0  ;;  %v273_v10 = vmul.f32 %v271_v5, %v2708_v7  ;;  %v327_v11 = vstv %s2222_s11  ;;  %s2228_s26 = sld [smem:[#allocation6 + $0x6e]] }
  0x3e   : > { %290 = vrot.lane.b32.xlu1 %v286_v4, %s2578_s22  ;;  %v313_v12 = vstv %s2221_s12  ;;  %v328_v13 = vmul.f32 %v327_v11, %v2701_v0  ;;  %v329_v19 = vmul.f32 %v327_v11, %v2708_v7  ;;  %s2227_s15 = sld [smem:[#allocation6 + $0x53]] }
  0x3f   : > { %276 = vrot.lane.b32.xlu0 %v272_v6, %s2578_s22  ;;  %v315_v14 = vmul.f32 %v313_v12, %v2708_v7  ;;  %v314_v15 = vmul.f32 %v313_v12, %v2701_v0  ;;  %v341_v16 = vstv %s2223_s18  ;;  %s2229_s27 = sld [smem:[#allocation6 + $0x89]] }
  0x40   : > { %v343_v17 = vmul.f32 %v341_v16, %v2708_v7  ;;  %v342_v18 = vmul.f32 %v341_v16, %v2701_v0  ;;  %v369_v20 = vstv %s2225_s19  ;;  %s2237_s28 = sld [smem:[#allocation6 + $0x1f]] }
  0x41   : > { %v355_v21 = vstv %s2224_s21  ;;  %v370_v22 = vmul.f32 %v369_v20, %v2701_v0  ;;  %v371_v28 = vmul.f32 %v369_v20, %v2708_v7  ;;  %s2236_s29 = sld [smem:[#allocation6 + $0x4]]  ;;  %v2822_v20 = vld [vmem:[%s2686_s9 + $0x2] sm:$0xff] }
  0x42   : > { %v357_v23 = vmul.f32 %v355_v21, %v2708_v7  ;;  %v356_v24 = vmul.f32 %v355_v21, %v2701_v0  ;;  %v383_v25 = vstv %s2226_s24  ;;  %s2238_s4 = sld [smem:[#allocation6 + $0x3a]] }
  0x43   : > { %v385_v26 = vmul.f32 %v383_v25, %v2708_v7  ;;  %v384_v27 = vmul.f32 %v383_v25, %v2701_v0  ;;  %v411_v29 = vstv %s2228_s26  ;;  %s2240_s5 = sld [smem:[#allocation6 + $0x70]] }
  0x44   : > { %v397_v30 = vstv %s2227_s15  ;;  %v412_v31 = vmul.f32 %v411_v29, %v2701_v0  ;;  %v413_v37 = vmul.f32 %v411_v29, %v2708_v7  ;;  %s2239_s6 = sld [smem:[#allocation6 + $0x55]] }
  0x45   : > { %306 = vrot.lane.b32.xlu2 %v301_v8, %s2578_s22  ;;  %v399_v32 = vmul.f32 %v397_v30, %v2708_v7  ;;  %v398_v33 = vmul.f32 %v397_v30, %v2701_v0  ;;  %v425_v34 = vstv %s2229_s27  ;;  %s2241_s7 = sld [smem:[#allocation6 + $0x8b]] }
  0x46   : > { %292 = vrot.lane.b32.xlu1 %v287_v9, %s2578_s22  ;;  %v427_v35 = vmul.f32 %v425_v34, %v2708_v7  ;;  %v426_v36 = vmul.f32 %v425_v34, %v2701_v0  ;;  %v491_v39 = vstv %s2237_s28  ;;  %s2243_s8 = sld [smem:[#allocation6 + $0x20]] }
  0x47   : > { %278 = vrot.lane.b32.xlu0 %v273_v10, %s2578_s22  ;;  %v477_v41 = vstv %s2236_s29  ;;  %v492_v42 = vmul.f32 %v491_v39, %v2754_v38  ;;  %v493_v48 = vmul.f32 %v491_v39, %v2758_v40  ;;  %s2242_s23 = sld [smem:[#allocation6 + $0x5]] }
  0x48   : > { %v479_v43 = vmul.f32 %v477_v41, %v2758_v40  ;;  %v478_v44 = vmul.f32 %v477_v41, %v2754_v38  ;;  %v505_v45 = vstv %s2238_s4  ;;  %s2244_s30 = sld [smem:[#allocation6 + $0x3b]] }
  0x49   : > { %v507_v46 = vmul.f32 %v505_v45, %v2758_v40  ;;  %v506_v47 = vmul.f32 %v505_v45, %v2754_v38  ;;  %v533_v49 = vstv %s2240_s5  ;;  %s2246_s10 = sld [smem:[#allocation6 + $0x71]] }
  0x4a   : > { %v519_v50 = vstv %s2239_s6  ;;  %v534_v51 = vmul.f32 %v533_v49, %v2754_v38  ;;  %v535_v57 = vmul.f32 %v533_v49, %v2758_v40  ;;  %s2245_s11 = sld [smem:[#allocation6 + $0x56]] }
  0x4b   : > { %v521_v52 = vmul.f32 %v519_v50, %v2758_v40  ;;  %v520_v53 = vmul.f32 %v519_v50, %v2754_v38  ;;  %v547_v54 = vstv %s2241_s7  ;;  %s2247_s12 = sld [smem:[#allocation6 + $0x8c]] }
  0x4c   : > { %v549_v55 = vmul.f32 %v547_v54, %v2758_v40  ;;  %v548_v56 = vmul.f32 %v547_v54, %v2754_v38  ;;  %v575_v58 = vstv %s2243_s8  ;;  %s2807_s18 = sld [smem:[#allocation6 + $0x22]] }
  0x4d   : > { %332 = vrot.lane.b32.xlu2 %v328_v13, %s2578_s22  ;;  %v561_v60 = vstv %s2242_s23  ;;  %v576_v61 = vmul.f32 %v575_v58, %v2754_v38  ;;  %v577_v5 = vmul.f32 %v575_v58, %v2758_v40  ;;  %s2254_s19 = sld [smem:[#allocation6 + $0x7]] }
  0x4e   : > { %320 = vrot.lane.b32.xlu1 %v315_v14, %s2578_s22  ;;  %v563_v62 = vmul.f32 %v561_v60, %v2758_v40  ;;  %v562_v63 = vmul.f32 %v561_v60, %v2754_v38  ;;  %v589_v1 = vstv %s2244_s30  ;;  %s2256_s21 = sld [smem:[#allocation6 + $0x3d]] }
  0x4f   : > { %318 = vrot.lane.b32.xlu0 %v314_v15, %s2578_s22  ;;  %v591_v3 = vmul.f32 %v589_v1, %v2758_v40  ;;  %v590_v4 = vmul.f32 %v589_v1, %v2754_v38  ;;  %v617_v6 = vstv %s2246_s10  ;;  %s2840_s24 = sld [smem:[#allocation6 + $0x73]] }
  0x50   : > { %v603_v9 = vstv %s2245_s11  ;;  %v618_v10 = vmul.f32 %v617_v6, %v2754_v38  ;;  %s2257_s26 = sld [smem:[#allocation6 + $0x58]] }
  0x51   : > { %v605_v11 = vmul.f32 %v603_v9, %v2758_v40  ;;  %v604_v12 = vmul.f32 %v603_v9, %v2754_v38  ;;  %v631_v13 = vstv %s2247_s12  ;;  %s2259_s15 = sld [smem:[#allocation6 + $0x8e]] }
  0x52   : > { %v697_v21 = vstv %s2807_s18  ;;  %s2867_s27 = sld [smem:[#allocation6 + $0x23]] }
  0x53   : > { %s2260_s28 = sld [smem:[#allocation6 + $0x8]] }
  0x54   : > { %v711_v30 = vstv %s2256_s21  ;;  %s2262_s29 = sld [smem:[#allocation6 + $0x3e]] }
  0x55   : > { %348 = vrot.lane.b32.xlu2 %v343_v17, %s2578_s22  ;;  %v633_v17 = vmul.f32 %v631_v13, %v2758_v40  ;;  %s2894_s4 = sld [smem:[#allocation6 + $0x74]] }
  0x56   : > { %346 = vrot.lane.b32.xlu1 %v342_v18, %s2578_s22  ;;  %v632_v18 = vmul.f32 %v631_v13, %v2754_v38  ;;  %v725_v41 = vstv %s2257_s26  ;;  %s2263_s5 = sld [smem:[#allocation6 + $0x59]] }
  0x57   : > { %334 = vrot.lane.b32.xlu0 %v329_v19, %s2578_s22  ;;  %v619_v19 = vmul.f32 %v617_v6, %v2758_v40  ;;  %s2265_s6 = sld [smem:[#allocation6 + $0x8f]] }
  0x58   : > { %v781_v54 = vstv %s2867_s27  ;;  %s2921_s7 = sld [smem:[#allocation6 + $0x25]] }
  0x59   : > { %v782_v60 = vmul.f32 %v781_v54, %v2822_v20  ;;  %s2274_s8 = sld [smem:[#allocation6 + $0xa]] }
  0x5a   : > { %s2276_s23 = sld [smem:[#allocation6 + $0x40]] }
  0x5b   : > { %s2954_s30 = sld [smem:[#allocation6 + $0x76]] }
  0x5c   : > { %s2277_s10 = sld [smem:[#allocation6 + $0x5b]] }
  0x5d   : > { %374 = vrot.lane.b32.xlu2 %v370_v22, %s2579_s25  ;;  %s2279_s11 = sld [smem:[#allocation6 + $0x91]] }
  0x5e   : > { %362 = vrot.lane.b32.xlu1 %v357_v23, %s2579_s25  ;;  %v2829_v23 = vld [vmem:[%s2686_s9 + $0xa] sm:$0x3f]  ;;  %s2981_s12 = sld [smem:[#allocation6 + $0x26]] }
  0x5f   : > { %360 = vrot.lane.b32.xlu0 %v356_v24, %s2579_s25  ;;  %v683_v24 = vstv %s2254_s19  ;;  %v713_v34 = vmul.f32 %v711_v30, %v2829_v23  ;;  %v727_v45 = vmul.f32 %v725_v41, %v2829_v23  ;;  %v783_v9 = vmul.f32 %v781_v54, %v2829_v23  ;;  %s2280_s18 = sld [smem:[#allocation6 + $0xb]] }
  0x60   : > { %v684_v29 = vmul.f32 %v683_v24, %v2822_v20  ;;  %v918_v54 = vstv %s2276_s23  ;;  %s2282_s19 = sld [smem:[#allocation6 + $0x41]] }
  0x61   : > { %s3008_s21 = sld [smem:[#allocation6 + $0x77]] }
  0x62   : > { %s2285_s26 = sld [smem:[#allocation6 + $0x92]] }
  0x63   : > { %s2294_s27 = sld [smem:[#allocation6 + $0xd]] }
  0x64   : > { %s3099_s23 = sld [smem:[#allocation7 + $0x2]] }
  0x65   : > { %390 = vrot.lane.b32.xlu2 %v385_v26, %s2579_s25 }
  0x66   : > { %388 = vrot.lane.b32.xlu1 %v384_v27, %s2579_s25  ;;  %v698_v27 = vmul.f32 %v697_v21, %v2822_v20 }
  0x67   : > { %376 = vrot.lane.b32.xlu0 %v371_v28, %s2579_s25  ;;  %v685_v28 = vmul.f32 %v683_v24, %v2829_v23  ;;  %v837_v24 = vstv %s2265_s6  ;;  %s3085_s6 = sld [smem:[#allocation6 + $0x94]] }
  0x6d   : > { %416 = vrot.lane.b32.xlu2 %v412_v31, %s2579_s25 }
  0x6e   : > { %404 = vrot.lane.b32.xlu1 %v399_v32, %s2579_s25 }
  0x6f   : > { %402 = vrot.lane.b32.xlu0 %v398_v33, %s2579_s25 }
  0x75   : > { %432 = vrot.lane.b32.xlu2 %v427_v35, %s2579_s25  ;;  %v712_v35 = vmul.f32 %v711_v30, %v2822_v20  ;;  %v839_v30 = vmul.f32 %v837_v24, %v2829_v23 }
  0x76   : > { %430 = vrot.lane.b32.xlu1 %v426_v36, %s2579_s25  ;;  %v699_v36 = vmul.f32 %v697_v21, %v2829_v23 }
  0x77   : > { %418 = vrot.lane.b32.xlu0 %v413_v37, %s2579_s25  ;;  %v739_v37 = vstv %s2840_s24  ;;  %s2283_s24 = sld [smem:[#allocation6 + $0x5c]] }
  0x7d   : > { %496 = vrot.lane.b32.xlu2 %v492_v42, %s2578_s22 }
  0x7e   : > { %484 = vrot.lane.b32.xlu1 %v479_v43, %s2578_s22 }
  0x7f   : > { %482 = vrot.lane.b32.xlu0 %v478_v44, %s2578_s22  ;;  %v740_v44 = vmul.f32 %v739_v37, %v2822_v20 }
  0x85   : > { %512 = vrot.lane.b32.xlu2 %v507_v46, %s2578_s22  ;;  %v726_v46 = vmul.f32 %v725_v41, %v2822_v20 }
  0x86   : > { %510 = vrot.lane.b32.xlu1 %v506_v47, %s2578_s22  ;;  %v753_v47 = vstv %s2259_s15  ;;  %s3035_s15 = sld [smem:[#allocation6 + $0x28]] }
  0x87   : > { %498 = vrot.lane.b32.xlu0 %v493_v48, %s2578_s22 }
  0x8d   : > { %538 = vrot.lane.b32.xlu2 %v534_v51, %s2578_s22  ;;  %v755_v51 = vmul.f32 %v753_v47, %v2829_v23 }
  0x8e   : > { %526 = vrot.lane.b32.xlu1 %v521_v52, %s2578_s22  ;;  %v754_v52 = vmul.f32 %v753_v47, %v2822_v20 }
  0x8f   : > { %524 = vrot.lane.b32.xlu0 %v520_v53, %s2578_s22  ;;  %v741_v53 = vmul.f32 %v739_v37, %v2829_v23  ;;  %v904_v37 = vstv %s2921_s7  ;;  %s3090_s7 = sld [smem:[#allocation6 + $0x36]] }
  0x95   : > { %554 = vrot.lane.b32.xlu2 %v549_v55, %s2578_s22 }
  0x96   : > { %552 = vrot.lane.b32.xlu1 %v548_v56, %s2578_s22  ;;  %v767_v56 = vstv %s2260_s28  ;;  %s2296_s28 = sld [smem:[#allocation6 + $0x43]] }
  0x97   : > { %540 = vrot.lane.b32.xlu0 %v535_v57, %s2578_s22  ;;  %v2784_v59 = vpop.permute.xlu2 %304 }
  0x9d   : > { %580 = vrot.lane.b32.xlu2 %v576_v61, %s2579_s25  ;;  %v769_v61 = vmul.f32 %v767_v56, %v2829_v23 }
  0x9e   : > { %568 = vrot.lane.b32.xlu1 %v563_v62, %s2579_s25  ;;  %v768_v62 = vmul.f32 %v767_v56, %v2822_v20 }
  0x9f   : > { %566 = vrot.lane.b32.xlu0 %v562_v63, %s2579_s25  ;;  %v2792_v2 = vpop.permute.xlu2 %306  ;;  %v795_v63 = vstv %s2262_s29  ;;  %s3068_s29 = sld [smem:[#allocation6 + $0x79]] }
  0xa0   : > { %v796_v6 = vmul.f32 %v795_v63, %v2822_v20 }
  0xa5   : > { %596 = vrot.lane.b32.xlu2 %v591_v3, %s2579_s25 }
  0xa6   : > { %594 = vrot.lane.b32.xlu1 %v590_v4, %s2579_s25 }
  0xa7   : > { %582 = vrot.lane.b32.xlu0 %v577_v5, %s2579_s25  ;;  %v2800_v8 = vpop.permute.xlu2 %332  ;;  %v797_v5 = vmul.f32 %v795_v63, %v2829_v23 }
  0xad   : > { %622 = vrot.lane.b32.xlu2 %v618_v10, %s2579_s25  ;;  %v823_v10 = vstv %s2894_s4  ;;  %s2297_s4 = sld [smem:[#allocation6 + $0x5e]] }
  0xae   : > { %610 = vrot.lane.b32.xlu1 %v605_v11, %s2579_s25 }
  0xaf   : > { %608 = vrot.lane.b32.xlu0 %v604_v12, %s2579_s25  ;;  %v2810_v14 = vpop.permute.xlu2 %348  ;;  %v809_v12 = vstv %s2263_s5  ;;  %s3080_s5 = sld [smem:[#allocation6 + $0x87]] }
  0xb0   : > { %v2812_v15 = vpop.permute.xlu1 %290  ;;  %v810_v21 = vmul.f32 %v809_v12, %v2822_v20 }
  0xb1   : > { %v2814_v16 = vpop.permute.xlu0 %276 }
  0xb5   : > { %638 = vrot.lane.b32.xlu2 %v633_v17, %s2579_s25 }
  0xb6   : > { %636 = vrot.lane.b32.xlu1 %v632_v18, %s2579_s25  ;;  %v824_v18 = vmul.f32 %v823_v10, %v2822_v20 }
  0xb7   : > { %624 = vrot.lane.b32.xlu0 %v619_v19, %s2579_s25  ;;  %v2826_v22 = vpop.permute.xlu2 %374  ;;  %v811_v19 = vmul.f32 %v809_v12, %v2829_v23 }
  0xb8   : > { %v2831_v25 = vpop.permute.xlu1 %292 }
  0xb9   : > { %v2833_v26 = vpop.permute.xlu0 %278 }
  0xbd   : > { %702 = vrot.lane.b32.xlu2 %v698_v27, %s2578_s22 }
  0xbe   : > { %690 = vrot.lane.b32.xlu1 %v685_v28, %s2578_s22 }
  0xbf   : > { %688 = vrot.lane.b32.xlu0 %v684_v29, %s2578_s22  ;;  %v2843_v31 = vpop.permute.xlu2 %390 }
  0xc0   : > { %v2845_v32 = vpop.permute.xlu1 %320 }
  0xc1   : > { %v2847_v33 = vpop.permute.xlu0 %318 }
  0xc5   : > { %718 = vrot.lane.b32.xlu2 %v713_v34, %s2578_s22  ;;  %v838_v34 = vmul.f32 %v837_v24, %v2822_v20 }
  0xc6   : > { %716 = vrot.lane.b32.xlu1 %v712_v35, %s2578_s22  ;;  %v825_v35 = vmul.f32 %v823_v10, %v2829_v23  ;;  %v932_v10 = vstv %s2277_s10  ;;  %s3105_s10 = sld [smem:[#allocation7 + $0x1]] }
  0xc7   : > { %704 = vrot.lane.b32.xlu0 %v699_v36, %s2578_s22  ;;  %v2856_v39 = vpop.permute.xlu2 %416  ;;  %v2936_v36 = vld [vmem:[%s2686_s9 + $0x10] sm:$0xff] }
  0xc8   : > { %v2858_v42 = vpop.permute.xlu1 %346  ;;  %v919_v63 = vmul.f32 %v2936_v36, %v918_v54  ;;  %v933_v24 = vmul.f32 %v2936_v36, %v932_v10 }
  0xc9   : > { %v2860_v43 = vpop.permute.xlu0 %334 }
  0xcd   : > { %744 = vrot.lane.b32.xlu2 %v740_v44, %s2578_s22  ;;  %v2943_v44 = vld [vmem:[%s2686_s9 + $0x18] sm:$0x3f] }
  0xce   : > { %732 = vrot.lane.b32.xlu1 %v727_v45, %s2578_s22  ;;  %v890_v45 = vstv %s2274_s8  ;;  %s3094_s8 = sld [smem:[#allocation7 + $0x5]] }
  0xcf   : > { %730 = vrot.lane.b32.xlu0 %v726_v46, %s2578_s22  ;;  %v2870_v48 = vpop.permute.xlu2 %432 }
  0xd0   : > { %v2872_v49 = vpop.permute.xlu1 %362 }
  0xd1   : > { %v2874_v50 = vpop.permute.xlu0 %360 }
  0xd5   : > { %760 = vrot.lane.b32.xlu2 %v755_v51, %s2578_s22  ;;  %v905_v51 = vmul.f32 %v2936_v36, %v904_v37 }
  0xd6   : > { %758 = vrot.lane.b32.xlu1 %v754_v52, %s2578_s22  ;;  %v892_v52 = vmul.f32 %v2943_v44, %v890_v45 }
  0xd7   : > { %746 = vrot.lane.b32.xlu0 %v741_v53, %s2578_s22  ;;  %v2883_v55 = vpop.permute.xlu2 %496  ;;  %v891_v53 = vmul.f32 %v2936_v36, %v890_v45 }
  0xd8   : > { %v2885_v57 = vpop.permute.xlu1 %388 }
  0xd9   : > { %4359 = vst [vmem:[#allocation11_spill] sm:$0xff] %v2885_v57  ;;  %v2887_v58 = vpop.permute.xlu0 %376 }
  0xda   : > { %4360 = vst [vmem:[#allocation12_spill] sm:$0xff] %v2887_v58 }
  0xdd   : > { %786 = vrot.lane.b32.xlu2 %v782_v60, %s2579_s25 }
  0xde   : > { %774 = vrot.lane.b32.xlu1 %v769_v61, %s2579_s25 }
  0xdf   : > { %772 = vrot.lane.b32.xlu0 %v768_v62, %s2579_s25  ;;  %v2897_v1 = vpop.permute.xlu2 %512  ;;  %v920_v62 = vmul.f32 %v2943_v44, %v918_v54 }
  0xe0   : > { %v2899_v3 = vpop.permute.xlu1 %404 }
  0xe1   : > { %4361 = vst [vmem:[#allocation13_spill] sm:$0xff] %v2899_v3  ;;  %v2901_v4 = vpop.permute.xlu0 %402 }
  0xe2   : > { %4362 = vst [vmem:[#allocation14_spill] sm:$0xff] %v2901_v4 }
  0xe5   : > { %802 = vrot.lane.b32.xlu2 %v797_v5, %s2579_s25  ;;  %v906_v5 = vmul.f32 %v2943_v44, %v904_v37 }
  0xe6   : > { %800 = vrot.lane.b32.xlu1 %v796_v6, %s2579_s25  ;;  %v946_v6 = vstv %s2954_s30  ;;  %s3102_s30 = sld [smem:[#allocation6 + $0x1b]] }
  0xe7   : > { %788 = vrot.lane.b32.xlu0 %v783_v9, %s2579_s25  ;;  %v2910_v11 = vpop.permute.xlu2 %538 }
  0xe8   : > { %4363 = vst [vmem:[#allocation15_spill] sm:$0xff] %v2910_v11  ;;  %v2912_v13 = vpop.permute.xlu1 %430 }
  0xe9   : > { %v2914_v17 = vpop.permute.xlu0 %418 }
  0xed   : > { %828 = vrot.lane.b32.xlu2 %v824_v18, %s2579_s25 }
  0xee   : > { %816 = vrot.lane.b32.xlu1 %v811_v19, %s2579_s25  ;;  %v947_v19 = vmul.f32 %v2936_v36, %v946_v6 }
  0xef   : > { %814 = vrot.lane.b32.xlu0 %v810_v21, %s2579_s25  ;;  %v2924_v27 = vpop.permute.xlu2 %554  ;;  %v934_v21 = vmul.f32 %v2943_v44, %v932_v10 }
  0xf0   : > { %v2926_v28 = vpop.permute.xlu1 %484 }
  0xf1   : > { %4364 = vst [vmem:[#allocation16_spill] sm:$0xff] %v2926_v28  ;;  %v2928_v29 = vpop.permute.xlu0 %482  ;;  %v247_v28 = vstv %s3090_s7  ;;  %s3178_s7 = sld [smem:[#allocation6 + $0x6f]] }
  0xf2   : > { %4365 = vst [vmem:[#allocation17_spill] sm:$0xff] %v2928_v29  ;;  %v241_v29 = vstv %s3102_s30  ;;  %s3188_s30 = sld [smem:[#allocation6 + $0x21]] }
  0xf5   : > { %844 = vrot.lane.b32.xlu2 %v839_v30, %s2579_s25  ;;  %v960_v30 = vstv %s2279_s11  ;;  %s3108_s11 = sld [smem:[#allocation6 + $0x8a]] }
  0xf6   : > { %842 = vrot.lane.b32.xlu1 %v838_v34, %s2579_s25  ;;  %v962_v45 = vmul.f32 %v2943_v44, %v960_v30 }
  0xf7   : > { %830 = vrot.lane.b32.xlu0 %v825_v35, %s2579_s25  ;;  %v2940_v41 = vpop.permute.xlu2 %580 }
  0xf8   : > { %v2945_v46 = vpop.permute.xlu1 %510 }
  0xf9   : > { %4366 = vst [vmem:[#allocation18_spill] sm:$0xff] %v2945_v46  ;;  %v2947_v47 = vpop.permute.xlu0 %498 }
  0xfa   : > { %4367 = vst [vmem:[#allocation19_spill] sm:$0xff] %v2947_v47 }
  0xfd   : > { %909 = vrot.lane.b32.xlu2 %v905_v51, %s2578_s22  ;;  %v961_v51 = vmul.f32 %v2936_v36, %v960_v30 }
  0xfe   : > { %897 = vrot.lane.b32.xlu1 %v892_v52, %s2578_s22  ;;  %v948_v52 = vmul.f32 %v2943_v44, %v946_v6 }
  0xff   : > { %895 = vrot.lane.b32.xlu0 %v891_v53, %s2578_s22  ;;  %v2957_v56 = vpop.permute.xlu2 %596  ;;  %v988_v53 = vstv %s2981_s12  ;;  %s3113_s12 = sld [smem:[#allocation6 + $0x29]] }
 0x100   : > { %v2959_v60 = vpop.permute.xlu1 %526  ;;  %v989_v10 = vmul.f32 %v2936_v36, %v988_v53 }
 0x101   : > { %4368 = vst [vmem:[#allocation20_spill] sm:$0xff] %v2959_v60  ;;  %v2961_v61 = vpop.permute.xlu0 %524 }
 0x102   : > { %4369 = vst [vmem:[#allocation21_spill] sm:$0xff] %v2961_v61 }
 0x105   : > { %925 = vrot.lane.b32.xlu2 %v920_v62, %s2578_s22  ;;  %v974_v62 = vstv %s2280_s18  ;;  %s3118_s18 = sld [smem:[#allocation6 + $0xe]]  ;;  %v4398_v4 = vstv %s3113_s12 }
 0x106   : > { %923 = vrot.lane.b32.xlu1 %v919_v63, %s2578_s22  ;;  %v975_v6 = vmul.f32 %v2936_v36, %v974_v62 }
 0x107   : > { %911 = vrot.lane.b32.xlu0 %v906_v5, %s2578_s22  ;;  %v2970_v9 = vpop.permute.xlu2 %622 }
 0x108   : > { %4370 = vst [vmem:[#allocation22_spill] sm:$0xff] %v2970_v9  ;;  %v2972_v12 = vpop.permute.xlu1 %552 }
 0x109   : > { %4371 = vst [vmem:[#allocation23_spill] sm:$0xff] %v2972_v12  ;;  %v2974_v18 = vpop.permute.xlu0 %540 }
 0x10a   : > { %4372 = vst [vmem:[#allocation24_spill] sm:$0xff] %v2974_v18 }
 0x10d   : > { %951 = vrot.lane.b32.xlu2 %v947_v19, %s2578_s22  ;;  %v976_v19 = vmul.f32 %v2943_v44, %v974_v62  ;;  %v990_v62 = vmul.f32 %v2943_v44, %v988_v53 }
 0x10e   : > { %939 = vrot.lane.b32.xlu1 %v934_v21, %s2578_s22  ;;  %v1002_v21 = vstv %s2282_s19  ;;  %s3120_s19 = sld [smem:[#allocation6 + $0x6c]] }
 0x10f   : > { %937 = vrot.lane.b32.xlu0 %v933_v24, %s2578_s22  ;;  %v2984_v34 = vpop.permute.xlu2 %638 }
 0x110   : > { %v2986_v35 = vpop.permute.xlu1 %568 }
 0x111   : > { %4373 = vst [vmem:[#allocation25_spill] sm:$0xff] %v2986_v35  ;;  %v2988_v37 = vpop.permute.xlu0 %566 }
 0x112   : > { %4374 = vst [vmem:[#allocation26_spill] sm:$0xff] %v2988_v37 }
 0x115   : > { %967 = vrot.lane.b32.xlu2 %v962_v45, %s2578_s22 }
 0x116   : > { %965 = vrot.lane.b32.xlu1 %v961_v51, %s2578_s22  ;;  %v1004_v51 = vmul.f32 %v2943_v44, %v1002_v21 }
 0x117   : > { %953 = vrot.lane.b32.xlu0 %v948_v52, %s2578_s22  ;;  %v2997_v54 = vpop.permute.xlu2 %702  ;;  %v1003_v52 = vmul.f32 %v2936_v36, %v1002_v21 }
 0x118   : > { %v2999_v63 = vpop.permute.xlu1 %594 }
 0x119   : > { %4375 = vst [vmem:[#allocation27_spill] sm:$0xff] %v2999_v63  ;;  %v3001_v5 = vpop.permute.xlu0 %582 }
 0x11a   : > { %4376 = vst [vmem:[#allocation28_spill] sm:$0xff] %v3001_v5  ;;  %v3050_v5 = vld [vmem:[%s2686_s9 + $0x11] sm:$0xff] }
 0x11b   : > { %v1195_v18 = vmul.f32 %v3050_v5, %v4398_v4 }
 0x11d   : > { %993 = vrot.lane.b32.xlu2 %v989_v10, %s2579_s25  ;;  %v1030_v10 = vstv %s3008_s21  ;;  %s3127_s21 = sld [smem:[#allocation7 + $0x4]] }
 0x11e   : > { %981 = vrot.lane.b32.xlu1 %v976_v19, %s2579_s25  ;;  %v1031_v61 = vmul.f32 %v2936_v36, %v1030_v10 }
 0x11f   : > { %979 = vrot.lane.b32.xlu0 %v975_v6, %s2579_s25  ;;  %v3011_v24 = vpop.permute.xlu2 %718  ;;  %v1016_v6 = vstv %s2283_s24  ;;  %s3133_s24 = sld [smem:[#allocation6]] }
 0x120   : > { %4377 = vst [vmem:[#allocation29_spill] sm:$0xff] %v3011_v24  ;;  %v3013_v30 = vpop.permute.xlu1 %610  ;;  %v1018_v21 = vmul.f32 %v2943_v44, %v1016_v6  ;;  %v1017_v53 = vmul.f32 %v2936_v36, %v1016_v6 }
 0x121   : > { %4378 = vst [vmem:[#allocation30_spill] sm:$0xff] %v3013_v30  ;;  %v3015_v45 = vpop.permute.xlu0 %608 }
 0x122   : > { %4379 = vst [vmem:[#allocation31_spill] sm:$0xff] %v3015_v45 }
 0x125   : > { %1009 = vrot.lane.b32.xlu2 %v1004_v51, %s2579_s25  ;;  %v1044_v51 = vstv %s2285_s26  ;;  %s3137_s26 = sld [smem:[#allocation7]]  ;;  %v235_v3 = vstv %s3133_s24 }
 0x126   : > { %1007 = vrot.lane.b32.xlu1 %v1003_v52, %s2579_s25  ;;  %v1046_v6 = vmul.f32 %v2943_v44, %v1044_v51  ;;  %s3240_s24 = sld [smem:[#allocation6 + $0x3c]] }
 0x127   : > { %995 = vrot.lane.b32.xlu0 %v990_v62, %s2579_s25  ;;  %v3024_v19 = vpop.permute.xlu2 %744 }
 0x128   : > { %4380 = vst [vmem:[#allocation32_spill] sm:$0xff] %v3024_v19  ;;  %v3026_v30 = vpop.permute.xlu1 %636  ;;  %v225_v19 = vstv %s3099_s23  ;;  %s3185_s23 = sld [smem:[#allocation6 + $0x3]] }
 0x129   : > { %4381 = vst [vmem:[#allocation33_spill] sm:$0xff] %v3026_v30  ;;  %v3028_v45 = vpop.permute.xlu0 %624  ;;  %v259_v30 = vstv %s3120_s19  ;;  %s3210_s19 = sld [smem:[#allocation6 + $0x5f]] }
 0x12a   : > { %4382 = vst [vmem:[#allocation34_spill] sm:$0xff] %v3028_v45  ;;  %v249_v45 = vmul.f32 %v247_v28, %v2708_v7  ;;  %v260_v4 = vmul.f32 %v259_v30, %v2701_v0 }
 0x12d   : > { %1035 = vrot.lane.b32.xlu2 %v1031_v61, %s2579_s25  ;;  %v1045_v61 = vmul.f32 %v2936_v36, %v1044_v51 }
 0x12e   : > { %1023 = vrot.lane.b32.xlu1 %v1018_v21, %s2579_s25  ;;  %v1032_v21 = vmul.f32 %v2943_v44, %v1030_v10 }
 0x12f   : > { %1021 = vrot.lane.b32.xlu0 %v1017_v53, %s2579_s25  ;;  %v3038_v52 = vpop.permute.xlu2 %760  ;;  %v1110_v53 = vstv %s3035_s15  ;;  %s3142_s15 = sld [smem:[#allocation6 + $0x51]] }
 0x130   : > { %v3040_v62 = vpop.permute.xlu1 %690  ;;  %v1111_v10 = vmul.f32 %v3050_v5, %v1110_v53 }
 0x131   : > { %4383 = vst [vmem:[#allocation35_spill] sm:$0xff] %v3040_v62  ;;  %v3042_v60 = vpop.permute.xlu0 %688  ;;  %v3057_v62 = vld [vmem:[%s2686_s9 + $0x19] sm:$0x3f] }
 0x132   : > { %4384 = vst [vmem:[#allocation36_spill] sm:$0xff] %v3042_v60  ;;  %v1096_v60 = vstv %s2294_s27  ;;  %s3145_s27 = sld [smem:[#allocation6 + $0x1e]] }
 0x135   : > { %1051 = vrot.lane.b32.xlu2 %v1046_v6, %s2579_s25  ;;  %v1098_v6 = vmul.f32 %v3057_v62, %v1096_v60 }
 0x136   : > { %1049 = vrot.lane.b32.xlu1 %v1045_v61, %s2579_s25  ;;  %v1097_v61 = vmul.f32 %v3050_v5, %v1096_v60 }
 0x137   : > { %1037 = vrot.lane.b32.xlu0 %v1032_v21, %s2579_s25  ;;  %v3054_v63 = vpop.permute.xlu2 %786  ;;  %v1124_v21 = vstv %s2296_s28  ;;  %s3151_s28 = sld [smem:[#allocation6 + $0x44]] }
 0x138   : > { %v3059_v47 = vpop.permute.xlu1 %716  ;;  %v1126_v37 = vmul.f32 %v3057_v62, %v1124_v21  ;;  %v1125_v60 = vmul.f32 %v3050_v5, %v1124_v21 }
 0x139   : > { %4385 = vst [vmem:[#allocation37_spill] sm:$0xff] %v3059_v47  ;;  %v3061_v51 = vpop.permute.xlu0 %704 }
 0x13a   : > { %4386 = vst [vmem:[#allocation38_spill] sm:$0xff] %v3061_v51 }
 0x13d   : > { %1115 = vrot.lane.b32.xlu2 %v1111_v10, %s2578_s22  ;;  %v1112_v10 = vmul.f32 %v3057_v62, %v1110_v53 }
 0x13e   : > { %1103 = vrot.lane.b32.xlu1 %v1098_v6, %s2578_s22  ;;  %v1152_v6 = vstv %s3068_s29  ;;  %s3155_s29 = sld [smem:[#allocation6 + $0x8d]] }
 0x13f   : > { %1101 = vrot.lane.b32.xlu0 %v1097_v61, %s2578_s22  ;;  %v3071_v46 = vpop.permute.xlu2 %802 }
 0x140   : > { %4387 = vst [vmem:[#allocation39_spill] sm:$0xff] %v3071_v46  ;;  %v3073_v51 = vpop.permute.xlu1 %732  ;;  %v251_v46 = vadd.f32 %v249_v45, %v225_v19  ;;  %v1208_v45 = vstv %s3151_s28  ;;  %s3368_s28 = sld [smem:[#allocation6 + $0x6]] }
 0x141   : > { %4388 = vst [vmem:[#allocation40_spill] sm:$0xff] %v3073_v51  ;;  %v3075_v47 = vpop.permute.xlu0 %730  ;;  %v4352_v51 = vstv %s3080_s5 }
 0x142   : > { %4389 = vst [vmem:[#allocation41_spill] sm:$0xff] %v3075_v47  ;;  %v1138_v47 = vstv %s2297_s4  ;;  %s3164_s4 = sld [smem:[#allocation7 + $0x3]] }
 0x145   : > { %1131 = vrot.lane.b32.xlu2 %v1126_v37, %s2578_s22  ;;  %v1153_v37 = vmul.f32 %v3050_v5, %v1152_v6 }
 0x146   : > { %1129 = vrot.lane.b32.xlu1 %v1125_v60, %s2578_s22  ;;  %v1140_v60 = vmul.f32 %v3057_v62, %v1138_v47 }
 0x147   : > { %1117 = vrot.lane.b32.xlu0 %v1112_v10, %s2578_s22  ;;  %v3088_v61 = vpop.permute.xlu2 %828  ;;  %v1139_v10 = vmul.f32 %v3050_v5, %v1138_v47  ;;  %v267_v47 = vmul.f32 %v4352_v51, %v2708_v7  ;;  %v1154_v51 = vmul.f32 %v3057_v62, %v1152_v6  ;;  %v223_v6 = vstv %s3105_s10  ;;  %s3195_s10 = sld [smem:[#allocation6 + $0x90]] }
 0x148   : > { %4390 = vst [vmem:[#allocation42_spill] sm:$0xff] %v3088_v61  ;;  %v3092_v21 = vpop.permute.xlu1 %758 }
 0x149   : > { %4391 = vst [vmem:[#allocation43_spill] sm:$0xff] %v3092_v21  ;;  %v3096_v53 = vpop.permute.xlu0 %746 }
 0x14a   : > { %4392 = vst [vmem:[#allocation44_spill] sm:$0xff] %v3096_v53  ;;  %v1166_v53 = vstv %s3085_s6  ;;  %s3170_s6 = sld [smem:[#allocation6 + $0x39]] }
 0x14b   : > { %v1167_v61 = vmul.f32 %v3050_v5, %v1166_v53 }
 0x14d   : > { %1157 = vrot.lane.b32.xlu2 %v1153_v37, %s2578_s22 }
 0x14e   : > { %1145 = vrot.lane.b32.xlu1 %v1140_v60, %s2578_s22  ;;  %v4353_v60 = vstv %s3094_s8 }
 0x14f   : > { %1143 = vrot.lane.b32.xlu0 %v1139_v10, %s2578_s22  ;;  %v3116_v21 = vpop.permute.xlu2 %844  ;;  %v1168_v10 = vmul.f32 %v3057_v62, %v1166_v53 }
 0x150   : > { %v3125_v37 = vpop.permute.xlu1 %774 }
 0x151   : > { %4393 = vst [vmem:[#allocation45_spill] sm:$0xff] %v3125_v37  ;;  %v3130_v35 = vpop.permute.xlu0 %772  ;;  %v269_v37 = vadd.f32 %v267_v47, %v4353_v60  ;;  %v248_v60 = vmul.f32 %v247_v28, %v2701_v0 }
 0x152   : > { %4394 = vst [vmem:[#allocation46_spill] sm:$0xff] %v3130_v35  ;;  %v242_v35 = vmul.f32 %v241_v29, %v2701_v0 }
 0x153   : > { %v250_v58 = vadd.f32 %v248_v60, %v225_v19  ;;  %v221_v19 = vstv %s3137_s26  ;;  %v243_v60 = vmul.f32 %v241_v29, %v2708_v7  ;;  %s3260_s26 = sld [smem:[#allocation6 + $0x54]] }
 0x154   : > { %v244_v12 = vadd.f32 %v242_v35, %v223_v6  ;;  %v253_v35 = vstv %s3142_s15  ;;  %s3324_s15 = sld [smem:[#allocation6 + $0x2b]] }
 0x155   : > { %1173 = vrot.lane.b32.xlu2 %v1168_v10, %s2578_s22  ;;  %v1180_v10 = vstv %s3118_s18  ;;  %s3201_s18 = sld [smem:[#allocation6 + $0x7a]] }
 0x156   : > { %1171 = vrot.lane.b32.xlu1 %v1167_v61, %s2578_s22  ;;  %v353_v61 = vadd.f32 %v2810_v14, %v269_v37  ;;  %v4399_v14 = vstv %s3108_s11 }
 0x157   : > { %1159 = vrot.lane.b32.xlu0 %v1154_v51, %s2578_s22  ;;  %v3158_v47 = vpop.permute.xlu2 %909  ;;  %v473_v37 = vmul.f32 %v4399_v14, %v2758_v40  ;;  %v296_v14 = vadd.f32 %v2812_v15, %v244_v12 }
 0x158   : > { %4395 = vst [vmem:[#allocation47_spill] sm:$0xff] %v3158_v47  ;;  %v3166_v53 = vpop.permute.xlu1 %800  ;;  %v437_v28 = vadd.f32 %v2870_v48, %v353_v61  ;;  %v4354_v61 = vstv %s3145_s27 }
 0x159   : > { %4396 = vst [vmem:[#allocation48_spill] sm:$0xff] %v3166_v53  ;;  %v3172_v51 = vpop.permute.xlu0 %788  ;;  %v1182_v53 = vmul.f32 %v3057_v62, %v1180_v10  ;;  %v380_v12 = vadd.f32 %v2826_v22, %v296_v14  ;;  %v1210_v22 = vmul.f32 %v3057_v62, %v1208_v45 }
 0x15a   : > { %4397 = vst [vmem:[#allocation49_spill] sm:$0xff] %v3172_v51  ;;  %v1181_v51 = vmul.f32 %v3050_v5, %v1180_v10  ;;  %v236_v10 = vmul.f32 %v235_v3, %v2701_v0  ;;  %v475_v9 = vadd.f32 %v473_v37, %v437_v28  ;;  %v448_v28 = vmul.f32 %v4354_v61, %v2754_v38 }
 0x15b   : > { %v4404_v61 = vstv %s3155_s29 }
 0x15c   : > { %v559_v29 = vadd.f32 %v2924_v27, %v475_v9  ;;  %v238_v14 = vadd.f32 %v236_v10, %v221_v19  ;;  %v679_v27 = vmul.f32 %v4404_v61, %v2829_v23  ;;  %v1209_v9 = vmul.f32 %v3050_v5, %v1208_v45 }
 0x15d   : > { %1199 = vrot.lane.b32.xlu2 %v1195_v18, %s2579_s25  ;;  %v237_v18 = vmul.f32 %v235_v3, %v2708_v7  ;;  %v4402_v3 = vstv %s3127_s21  ;;  %v311_v10 = vadd.f32 %v2792_v2, %v251_v46  ;;  %v450_v57 = vadd.f32 %v448_v28, %v380_v12 }
 0x15e   : > { %1187 = vrot.lane.b32.xlu1 %v1182_v53, %s2579_s25  ;;  %v255_v53 = vmul.f32 %v253_v35, %v2708_v7  ;;  %v262_v48 = vadd.f32 %v260_v4, %v4402_v3  ;;  %v643_v24 = vadd.f32 %v2984_v34, %v559_v29  ;;  %v3233_v4 = vadd.f32 %v2784_v59, %v250_v58 }
 0x15f   : > { %1185 = vrot.lane.b32.xlu0 %v1181_v51, %s2579_s25  ;;  %v3208_v15 = vpop.permute.xlu2 %925  ;;  %v227_v51 = vstv %s3164_s4  ;;  %v245_v3 = vadd.f32 %v243_v60, %v223_v6  ;;  %v453_v34 = vstv %s3170_s6  ;;  %v4406_v59 = vstv %s3080_s5  ;;  %s3256_s5 = sld [smem:[#allocation6 + $0x95]] }
 0x160   : > { %4400 = vst [vmem:[#allocation50_spill] sm:$0xff] %v3208_v15  ;;  %v3218_v37 = vpop.permute.xlu1 %816  ;;  %v254_v15 = vmul.f32 %v253_v35, %v2701_v0  ;;  %v239_v35 = vadd.f32 %v237_v18, %v221_v19  ;;  %v257_v11 = vadd.f32 %v255_v53, %v227_v51  ;;  %v266_v58 = vmul.f32 %v4406_v59, %v2701_v0  ;;  %s3386_s4 = sld [smem:[#allocation6 + $0x46]] }
 0x161   : > { %4401 = vst [vmem:[#allocation51_spill] sm:$0xff] %v3218_v37  ;;  %v3224_v47 = vpop.permute.xlu0 %814  ;;  %v4405_v37 = vstv %s3113_s12  ;;  %v261_v6 = vmul.f32 %v259_v30, %v2708_v7  ;;  %v653_v45 = vstv %s3188_s30  ;;  %s3249_s12 = sld [smem:[#allocation6 + $0x24]]  ;;  %v502_v2 = vadd.f32 %v2883_v55, %v450_v57 }
 0x162   : > { %4403 = vst [vmem:[#allocation52_spill] sm:$0xff] %v3224_v47  ;;  %v1196_v47 = vmul.f32 %v3057_v62, %v4405_v37  ;;  %v3242_v61 = vadd.f32 %v254_v15, %v227_v51  ;;  %v465_v46 = vstv %s3178_s7  ;;  %v681_v19 = vadd.f32 %v679_v27, %v643_v24  ;;  %s3423_s6 = sld [smem:[#allocation6 + $0x57]] }
 0x163   : > { %v1236_v60 = vstv %s3201_s18  ;;  %v455_v0 = vmul.f32 %v453_v34, %v2758_v40  ;;  %v441_v7 = vstv %s3185_s23  ;;  %v1222_v55 = vstv %s3210_s19  ;;  %s3439_s7 = sld [smem:[#allocation6 + $0x7c]] }
 0x164   : > { %v884_v57 = vstv %s3195_s10  ;;  %v395_v24 = vadd.f32 %v2843_v31, %v311_v10  ;;  %v586_v18 = vadd.f32 %v2940_v41, %v502_v2  ;;  %v654_v15 = vmul.f32 %v653_v45, %v2822_v20  ;;  %s3445_s23 = sld [smem:[#allocation6 + $0x61]] }
 0x165   : > { %1215 = vrot.lane.b32.xlu2 %v1210_v22, %s2579_s25  ;;  %v765_v12 = vadd.f32 %v3038_v52, %v681_v19  ;;  %v338_v28 = vadd.f32 %v2800_v8, %v262_v48  ;;  %v4407_v29 = vstv %s3094_s8  ;;  %v4408_v37 = vstv %s3127_s21  ;;  %s3305_s8 = sld [smem:[#allocation6 + $0x72]] }
 0x166   : > { %1213 = vrot.lane.b32.xlu1 %v1209_v9, %s2579_s25  ;;  %v263_v51 = vadd.f32 %v261_v6, %v4408_v37  ;;  %v1237_v31 = vmul.f32 %v3050_v5, %v1236_v60  ;;  %v466_v41 = vmul.f32 %v465_v46, %v2754_v38  ;;  %v1224_v27 = vmul.f32 %v3057_v62, %v1222_v55  ;;  %s3317_s21 = sld [smem:[#allocation6 + $0x3f]] }
 0x167   : > { %1201 = vrot.lane.b32.xlu0 %v1196_v47, %s2579_s25  ;;  %v3263_v30 = vpop.permute.xlu2 %951  ;;  %v268_v47 = vadd.f32 %v266_v58, %v4407_v29  ;;  %v849_v52 = vadd.f32 %v3116_v21, %v765_v12  ;;  %v886_v8 = vmul.f32 %v2943_v44, %v884_v57  ;;  %v282_v48 = vadd.f32 %v2814_v16, %v238_v14  ;;  %s3486_s10 = sld [smem:[#allocation6 + $0x97]] }
 0x168   : > { %v3273_v53 = vpop.permute.xlu1 %842  ;;  %v3295_v9 = vmul.f32 %v441_v7, %v2758_v40  ;;  %v3298_v10 = vmul.f32 %v441_v7, %v2754_v38  ;;  %v1223_v59 = vmul.f32 %v3050_v5, %v1222_v55  ;;  %v3302_v58 = vadd.f32 %v2831_v25, %v245_v3  ;;  %s3492_s30 = sld [smem:[#allocation6 + $0x27]] }
 0x169   : > { %v3280_v22 = vpop.permute.xlu0 %830  ;;  %v457_v21 = vadd.f32 %v455_v0, %v395_v24  ;;  %v656_v6 = vadd.f32 %v654_v15, %v586_v18  ;;  %v659_v2 = vstv %s3240_s24  ;;  %v283_v16 = vadd.f32 %v2833_v26, %v239_v35  ;;  %s3512_s18 = sld [smem:[#allocation6 + $0x5a]] }
 0x16a   : > { %v3309_v14 = vmul.f32 %v453_v34, %v2754_v38  ;;  %v4409_v19 = vstv %s3145_s27  ;;  %v860_v55 = vstv %s3249_s12  ;;  %v888_v26 = vadd.f32 %v886_v8, %v849_v52  ;;  %s3333_s27 = sld [smem:[#allocation6 + $0x10]] }
 0x16b   : > { %v3314_v7 = vmul.f32 %v4409_v19, %v2758_v40  ;;  %v517_v25 = vadd.f32 %v2897_v1, %v457_v21  ;;  %v708_v3 = vadd.f32 %v2997_v54, %v656_v6  ;;  %v1250_v35 = vstv %s3256_s5  ;;  %s3517_s19 = sld [smem:[#allocation6 + $0x42]] }
 0x16c   : > { %v325_v34 = vadd.f32 %v2845_v32, %v257_v11  ;;  %v422_v0 = vadd.f32 %v2856_v39, %v338_v28  ;;  %v459_v24 = vstv %s3260_s26  ;;  %v661_v18 = vmul.f32 %v659_v2, %v2829_v23  ;;  %s3522_s24 = sld [smem:[#allocation6 + $0x2c]] }
 0x16d   : > { %1241 = vrot.lane.b32.xlu2 %v1237_v31, %s2579_s25  ;;  %v601_v54 = vadd.f32 %v2957_v56, %v517_v25  ;;  %v792_v15 = vadd.f32 %v3054_v63, %v708_v3  ;;  %v861_v32 = vmul.f32 %v2936_v36, %v860_v55  ;;  %v324_v12 = vadd.f32 %v2847_v33, %v3242_v61  ;;  %v4414_v25 = vld [vmem:[#allocation47_spill] sm:$0xff]  ;;  %s3529_s5 = sld [smem:[#allocation6 + $0x11]] }
 0x16e   : > { %1229 = vrot.lane.b32.xlu1 %v1224_v27, %s2579_s25  ;;  %v352_v28 = vadd.f32 %v2858_v42, %v268_v47  ;;  %v339_v29 = vadd.f32 %v2860_v43, %v263_v51  ;;  %v1252_v63 = vmul.f32 %v3057_v62, %v1250_v35  ;;  %v461_v37 = vmul.f32 %v459_v24, %v2758_v40  ;;  %s3559_s12 = sld [smem:[#allocation6 + $0x47]] }
 0x16f   : > { %1227 = vrot.lane.b32.xlu0 %v1223_v59, %s2579_s25  ;;  %v968_v1 = vpop.permute.xlu2 %967  ;;  %v3353_v31 = vmul.f32 %v459_v24, %v2754_v38  ;;  %v4410_v52 = vstv %s3108_s11  ;;  %v1251_v8 = vmul.f32 %v3050_v5, %v1250_v35  ;;  %v467_v43 = vmul.f32 %v465_v46, %v2758_v40  ;;  %s3375_s11 = sld [smem:[#allocation6 + $0x75]]  ;;  %v4412_v46 = vld [vmem:[#allocation15_spill] sm:$0xff]  ;;  %v3391_v35 = vld [vmem:[%s2686_s9 + $0x1a] sm:$0x3f] }
 0x170   : > { %v3340_v39 = vadd.f32 %v968_v1, %v888_v26  ;;  %v3342_v11 = vpop.permute.xlu1 %897  ;;  %v472_v27 = vmul.f32 %v4410_v52, %v2754_v38  ;;  %v436_v33 = vadd.f32 %v2912_v13, %v352_v28  ;;  %v423_v42 = vadd.f32 %v2914_v17, %v339_v29  ;;  %v4411_v17 = vld [vmem:[#allocation11_spill] sm:$0xff]  ;;  %v4415_v24 = vld [vmem:[#allocation22_spill] sm:$0xff]  ;;  %v4417_v29 = vld [vmem:[#allocation12_spill] sm:$0xff]  ;;  %s3566_s26 = sld [smem:[#allocation6 + $0x78]] }
 0x171   : > { %v3348_v56 = vpop.permute.xlu0 %895  ;;  %v1238_v61 = vmul.f32 %v3057_v62, %v1236_v60  ;;  %v468_v47 = vadd.f32 %v466_v41, %v422_v0  ;;  %v663_v51 = vadd.f32 %v661_v18, %v601_v54  ;;  %v671_v59 = vstv %s3305_s8  ;;  %v4413_v41 = vld [vmem:[#allocation29_spill] sm:$0xff]  ;;  %v4416_v1 = vld [vmem:[#allocation39_spill] sm:$0xff]  ;;  %s3587_s8 = sld [smem:[#allocation6 + $0x93]] }
 0x172   : > { %v863_v38 = vadd.f32 %v861_v32, %v792_v15  ;;  %v367_v21 = vadd.f32 %v2872_v49, %v283_v16  ;;  %v366_v13 = vadd.f32 %v2874_v50, %v282_v48  ;;  %v394_v6 = vadd.f32 %v4411_v17, %v3233_v4  ;;  %v3383_v49 = vld [vmem:[%s2686_s9 + $0x12] sm:$0xff] }
 0x173   : > { %v866_v40 = vstv %s3317_s21  ;;  %v544_v60 = vadd.f32 %v4412_v46, %v468_v47  ;;  %v723_v19 = vadd.f32 %v4413_v41, %v663_v51  ;;  %v1316_v50 = vstv %s3324_s15  ;;  %v4418_v52 = vld [vmem:[#allocation13_spill] sm:$0xff]  ;;  %v4420_v51 = vld [vmem:[#allocation24_spill] sm:$0xff]  ;;  %v4421_v46 = vld [vmem:[#allocation14_spill] sm:$0xff]  ;;  %s3592_s21 = sld [smem:[#allocation6 + $0x7d]] }
 0x174   : > { %v915_v3 = vadd.f32 %v4414_v25, %v863_v38  ;;  %v474_v4 = vadd.f32 %v472_v27, %v436_v33  ;;  %v469_v48 = vadd.f32 %v467_v43, %v423_v42  ;;  %v672_v16 = vmul.f32 %v671_v59, %v2822_v20  ;;  %s2323_s15 = sld [smem:[#allocation6 + $0x62]] }
 0x175   : > { %1257 = vrot.lane.b32.xlu2 %v1252_v63, %s2579_s25  ;;  %v1302_v0 = vstv %s3333_s27  ;;  %v628_v18 = vadd.f32 %v4415_v24, %v544_v60  ;;  %v807_v54 = vadd.f32 %v4416_v1, %v723_v19  ;;  %v868_v15 = vmul.f32 %v2943_v44, %v866_v40  ;;  %v4422_v60 = vld [vmem:[#allocation33_spill] sm:$0xff]  ;;  %s2288_s27 = sld [smem:[#allocation6 + $0xc]] }
 0x176   : > { %1255 = vrot.lane.b32.xlu1 %v1251_v8, %s2579_s25  ;;  %v381_v63 = vadd.f32 %v4417_v29, %v3302_v58  ;;  %v409_v27 = vadd.f32 %v4418_v52, %v325_v34  ;;  %v4419_v8 = vld [vmem:[#allocation23_spill] sm:$0xff]  ;;  %v1317_v43 = vmul.f32 %v3383_v49, %v1316_v50  ;;  %v444_v47 = vadd.f32 %v3298_v10, %v366_v13 }
 0x177   : > { %1243 = vrot.lane.b32.xlu0 %v1238_v61, %s2579_s25  ;;  %v994_v26 = vpop.permute.xlu2 %993  ;;  %v558_v33 = vadd.f32 %v4419_v8, %v474_v4  ;;  %v445_v61 = vadd.f32 %v3295_v9, %v367_v21  ;;  %v545_v38 = vadd.f32 %v4420_v51, %v469_v48  ;;  %v1304_v17 = vmul.f32 %v3391_v35, %v1302_v0  ;;  %v4424_v9 = vld [vmem:[#allocation34_spill] sm:$0xff]  ;;  %v4431_v51 = vld [vmem:[#allocation43_spill] sm:$0xff] }
 0x178   : > { %v3399_v32 = vadd.f32 %v994_v26, %v915_v3  ;;  %v3401_v28 = vpop.permute.xlu1 %923  ;;  %v408_v58 = vadd.f32 %v4421_v46, %v324_v12  ;;  %v4423_v41 = vstv %s3155_s29  ;;  %v1303_v25 = vmul.f32 %v3383_v49, %v1302_v0  ;;  %s3431_s29 = sld [smem:[#allocation6 + $0x9]]  ;;  %v4425_v0 = vld [vmem:[#allocation32_spill] sm:$0xff] }
 0x179   : > { %v3407_v42 = vpop.permute.xlu0 %911  ;;  %v642_v34 = vadd.f32 %v4422_v60, %v558_v33  ;;  %v678_v19 = vmul.f32 %v4423_v41, %v2822_v20  ;;  %v674_v3 = vadd.f32 %v672_v16, %v628_v18  ;;  %v629_v21 = vadd.f32 %v4424_v9, %v545_v38  ;;  %v4426_v18 = vld [vmem:[#allocation50_spill] sm:$0xff]  ;;  %v4433_v41 = vld [vmem:[#allocation44_spill] sm:$0xff] }
 0x17a   : > { %v673_v10 = vmul.f32 %v671_v59, %v2829_v23  ;;  %v870_v13 = vadd.f32 %v868_v15, %v807_v54  ;;  %v456_v4 = vadd.f32 %v3309_v14, %v394_v6  ;;  %v451_v12 = vadd.f32 %v3314_v7, %v381_v63  ;;  %v4427_v14 = vld [vmem:[#allocation16_spill] sm:$0xff]  ;;  %v4428_v7 = vld [vmem:[#allocation17_spill] sm:$0xff]  ;;  %v4429_v63 = vld [vmem:[#allocation42_spill] sm:$0xff] }
 0x17b   : > { %v3428_v48 = vadd.f32 %v461_v37, %v409_v27  ;;  %v878_v26 = vstv %s3375_s11  ;;  %v750_v16 = vadd.f32 %v4425_v0, %v674_v3  ;;  %v647_v24 = vstv %s3368_s28  ;;  %v4434_v3 = vld [vmem:[#allocation18_spill] sm:$0xff]  ;;  %v4435_v0 = vld [vmem:[#allocation19_spill] sm:$0xff]  ;;  %s3614_s28 = sld [smem:[#allocation6 + $0x98]] }
 0x17c   : > { %v930_v1 = vadd.f32 %v4426_v18, %v870_v13  ;;  %v1330_v59 = vstv %s3386_s4  ;;  %v489_v6 = vadd.f32 %v4427_v14, %v445_v61  ;;  %v488_v37 = vadd.f32 %v4428_v7, %v444_v47  ;;  %v4430_v61 = vld [vmem:[#allocation25_spill] sm:$0xff]  ;;  %v4437_v7 = vld [vmem:[#allocation35_spill] sm:$0xff]  ;;  %s3638_s11 = sld [smem:[#allocation6 + $0x2e]] }
 0x17d   : > { %1321 = vrot.lane.b32.xlu2 %v1317_v43, %s2578_s22  ;;  %v462_v54 = vadd.f32 %v3353_v31, %v408_v58  ;;  %v680_v15 = vadd.f32 %v678_v19, %v642_v34  ;;  %v834_v52 = vadd.f32 %v4429_v63, %v750_v16  ;;  %v675_v27 = vadd.f32 %v673_v10, %v629_v21  ;;  %v4432_v58 = vld [vmem:[#allocation26_spill] sm:$0xff]  ;;  %s3642_s4 = sld [smem:[#allocation6 + $0x13]] }
 0x17e   : > { %1309 = vrot.lane.b32.xlu1 %v1304_v17, %s2578_s22  ;;  %v879_v8 = vmul.f32 %v2936_v36, %v878_v26  ;;  %v573_v47 = vadd.f32 %v4430_v61, %v489_v6  ;;  %v649_v31 = vmul.f32 %v647_v24, %v2829_v23  ;;  %v1332_v46 = vmul.f32 %v3391_v35, %v1330_v59 }
 0x17f   : > { %1307 = vrot.lane.b32.xlu0 %v1303_v25, %s2578_s22  ;;  %v1010_v29 = vpop.permute.xlu2 %1009  ;;  %v764_v38 = vadd.f32 %v4431_v51, %v680_v15  ;;  %v572_v60 = vadd.f32 %v4432_v58, %v488_v37  ;;  %v648_v34 = vmul.f32 %v647_v24, %v2822_v20  ;;  %v751_v19 = vadd.f32 %v4433_v41, %v675_v27 }
 0x180   : > { %v3449_v33 = vadd.f32 %v1010_v29, %v930_v1  ;;  %v3451_v43 = vpop.permute.xlu1 %939  ;;  %v1331_v25 = vmul.f32 %v3383_v49, %v1330_v59  ;;  %v516_v9 = vadd.f32 %v4434_v3, %v456_v4  ;;  %v1318_v10 = vmul.f32 %v3391_v35, %v1316_v50 }
 0x181   : > { %v3456_v17 = vpop.permute.xlu0 %937  ;;  %v848_v21 = vadd.f32 %v3273_v53, %v764_v38  ;;  %v885_v13 = vmul.f32 %v2936_v36, %v884_v57  ;;  %v503_v16 = vadd.f32 %v4435_v0, %v451_v12  ;;  %v881_v18 = vadd.f32 %v879_v8, %v834_v52  ;;  %v4440_v8 = vld [vmem:[#allocation45_spill] sm:$0xff] }
 0x182   : > { %v835_v24 = vadd.f32 %v3280_v22, %v751_v19  ;;  %v880_v1 = vmul.f32 %v2943_v44, %v878_v26  ;;  %v651_v59 = vadd.f32 %v649_v31, %v573_v47  ;;  %v660_v4 = vmul.f32 %v659_v2, %v2822_v20  ;;  %v4436_v26 = vld [vmem:[#allocation27_spill] sm:$0xff]  ;;  %v4438_v2 = vld [vmem:[#allocation28_spill] sm:$0xff] }
 0x183   : > { %v655_v53 = vmul.f32 %v653_v45, %v2829_v23  ;;  %v665_v14 = vstv %s3423_s6  ;;  %v650_v50 = vadd.f32 %v648_v34, %v572_v60  ;;  %v957_v57 = vadd.f32 %v3263_v30, %v881_v18  ;;  %v4439_v30 = vld [vmem:[#allocation36_spill] sm:$0xff]  ;;  %s2291_s6 = sld [smem:[#allocation6 + $0x5d]] }
 0x184   : > { %v854_v12 = vstv %s3431_s29  ;;  %v1358_v22 = vstv %s3439_s7  ;;  %v600_v6 = vadd.f32 %v4436_v26, %v516_v9  ;;  %v695_v37 = vadd.f32 %v4437_v7, %v651_v59  ;;  %v4443_v9 = vld [vmem:[#allocation21_spill] sm:$0xff]  ;;  %s3666_s29 = sld [smem:[#allocation6 + $0x49]] }
 0x185   : > { %1337 = vrot.lane.b32.xlu2 %v1332_v46, %s2578_s22  ;;  %v887_v23 = vadd.f32 %v885_v13, %v848_v21  ;;  %v1344_v45 = vstv %s3445_s23  ;;  %v587_v15 = vadd.f32 %v4438_v2, %v503_v16  ;;  %v694_v29 = vadd.f32 %v4439_v30, %v650_v50  ;;  %v4441_v46 = vld [vmem:[#allocation46_spill] sm:$0xff]  ;;  %s3690_s7 = sld [smem:[#allocation6 + $0x7f]] }
 0x186   : > { %1335 = vrot.lane.b32.xlu1 %v1331_v25, %s2578_s22  ;;  %v882_v27 = vadd.f32 %v880_v1, %v835_v24  ;;  %v779_v61 = vadd.f32 %v4440_v8, %v695_v37  ;;  %v856_v47 = vmul.f32 %v2943_v44, %v854_v12  ;;  %v1359_v38 = vmul.f32 %v3383_v49, %v1358_v22  ;;  %v4442_v25 = vld [vmem:[#allocation20_spill] sm:$0xff]  ;;  %v4444_v1 = vld [vmem:[#allocation30_spill] sm:$0xff]  ;;  %s3694_s23 = sld [smem:[#allocation6 + $0x64]] }
 0x187   : > { %1323 = vrot.lane.b32.xlu0 %v1318_v10, %s2578_s22  ;;  %v1036_v20 = vpop.permute.xlu2 %1035  ;;  %v778_v58 = vadd.f32 %v4441_v46, %v694_v29  ;;  %v855_v60 = vmul.f32 %v2936_v36, %v854_v12  ;;  %v1346_v41 = vmul.f32 %v3391_v35, %v1344_v45  ;;  %v1345_v19 = vmul.f32 %v3383_v49, %v1344_v45  ;;  %v2466_v13 = vld [vmem:[%s2686_s9 + $0xa] sm:$0x3f]  ;;  %v2467_v16 = vld [vmem:[%s2686_s9 + $0x2] sm:$0xff] }
 0x188   : > { %v3496_v63 = vadd.f32 %v1036_v20, %v957_v57  ;;  %v966_v52 = vpop.permute.xlu1 %965  ;;  %v531_v3 = vadd.f32 %v4442_v25, %v3428_v48  ;;  %v530_v21 = vadd.f32 %v4443_v9, %v462_v54  ;;  %v662_v10 = vadd.f32 %v660_v4, %v600_v6  ;;  %v4445_v4 = vld [vmem:[#allocation31_spill] sm:$0xff]  ;;  %v4446_v12 = vld [vmem:[#allocation37_spill] sm:$0xff] }
 0x189   : > { %v3500_v31 = vadd.f32 %v966_v52, %v887_v23  ;;  %v954_v51 = vpop.permute.xlu0 %953  ;;  %v667_v0 = vmul.f32 %v2466_v13, %v665_v14  ;;  %v666_v18 = vmul.f32 %v2467_v16, %v665_v14  ;;  %v858_v24 = vadd.f32 %v856_v47, %v779_v61 }
 0x18a   : > { %v3505_v34 = vadd.f32 %v954_v51, %v882_v27  ;;  %v615_v59 = vadd.f32 %v4444_v1, %v531_v3  ;;  %v657_v50 = vadd.f32 %v655_v53, %v587_v15  ;;  %v857_v48 = vadd.f32 %v855_v60, %v778_v58  ;;  %v4447_v53 = vld [vmem:[#allocation38_spill] sm:$0xff] }
 0x18b   : > { %v1372_v54 = vstv %s3486_s10  ;;  %v614_v57 = vadd.f32 %v4445_v4, %v530_v21  ;;  %v722_v14 = vadd.f32 %v4446_v12, %v662_v10  ;;  %v902_v26 = vadd.f32 %v3342_v11, %v858_v24  ;;  %v4448_v11 = vld [vmem:[#allocation48_spill] sm:$0xff]  ;;  %v4451_v10 = vld [vmem:[#allocation41_spill] sm:$0xff]  ;;  %v4452_v24 = vld [vmem:[#allocation51_spill] sm:$0xff]  ;;  %s2339_s10 = sld [smem:[#allocation6 + $0x9a]] }
 0x18c   : > { %v1066_v7 = vstv %s3492_s30  ;;  %v709_v37 = vadd.f32 %v4447_v53, %v657_v50  ;;  %v901_v20 = vadd.f32 %v3348_v56, %v857_v48  ;;  %v867_v23 = vmul.f32 %v2936_v36, %v866_v40  ;;  %v4449_v56 = vld [vmem:[#allocation49_spill] sm:$0xff]  ;;  %s3719_s30 = sld [smem:[#allocation6 + $0x2a]] }
 0x18d   : > { %1363 = vrot.lane.b32.xlu2 %v1359_v38, %s2578_s22  ;;  %v806_v15 = vadd.f32 %v4448_v11, %v722_v14  ;;  %v862_v30 = vmul.f32 %v2943_v44, %v860_v55  ;;  %v1374_v27 = vmul.f32 %v3391_v35, %v1372_v54  ;;  %v1373_v40 = vmul.f32 %v3383_v49, %v1372_v54  ;;  %v4453_v54 = vld [vmem:[#allocation52_spill] sm:$0xff] }
 0x18e   : > { %1351 = vrot.lane.b32.xlu1 %v1346_v41, %s2578_s22  ;;  %v793_v8 = vadd.f32 %v4449_v56, %v709_v37  ;;  %v1360_v47 = vmul.f32 %v3391_v35, %v1358_v22  ;;  %v669_v55 = vadd.f32 %v667_v0, %v615_v59  ;;  %v872_v38 = vstv %s3512_s18  ;;  %s3733_s18 = sld [smem:[#allocation6 + $0x45]] }
 0x18f   : > { %1349 = vrot.lane.b32.xlu0 %v1345_v19, %s2578_s22  ;;  %v1052_v6 = vpop.permute.xlu2 %1051  ;;  %v869_v51 = vadd.f32 %v867_v23, %v806_v15  ;;  %v668_v46 = vadd.f32 %v666_v18, %v614_v57  ;;  %v1400_v41 = vstv %s3522_s24  ;;  %v4450_v19 = vld [vmem:[#allocation40_spill] sm:$0xff]  ;;  %v1386_v9 = vstv %s3529_s5  ;;  %s2340_s24 = sld [smem:[#allocation6 + $0x14]] }
 0x190   : > { %v3537_v45 = vadd.f32 %v1052_v6, %v3340_v39  ;;  %v982_v2 = vpop.permute.xlu1 %981  ;;  %v1067_v39 = vmul.f32 %v3050_v5, %v1066_v7  ;;  %v864_v58 = vadd.f32 %v862_v30, %v793_v8  ;;  %v737_v25 = vadd.f32 %v4450_v19, %v669_v55  ;;  %s3759_s5 = sld [smem:[#allocation6 + $0x4a]] }
 0x191   : > { %v3543_v29 = vadd.f32 %v982_v2, %v902_v26  ;;  %v980_v52 = vpop.permute.xlu0 %979  ;;  %v929_v3 = vadd.f32 %v3401_v28, %v869_v51  ;;  %v1072_v21 = vstv %s3517_s19  ;;  %v736_v13 = vadd.f32 %v4451_v10, %v668_v46  ;;  %s3736_s19 = sld [smem:[#allocation6 + $0x2f]] }
 0x192   : > { %v3547_v61 = vadd.f32 %v980_v52, %v901_v20  ;;  %v1069_v60 = vadd.f32 %v1067_v39, %v3399_v32  ;;  %v916_v0 = vadd.f32 %v3407_v42, %v864_v58  ;;  %v874_v32 = vmul.f32 %v2943_v44, %v872_v38 }
 0x193   : > { %v821_v1 = vadd.f32 %v4452_v24, %v737_v25  ;;  %v873_v28 = vmul.f32 %v2936_v36, %v872_v38  ;;  %v1401_v48 = vmul.f32 %v3383_v49, %v1400_v41  ;;  %v820_v4 = vadd.f32 %v4453_v54, %v736_v13 }
 0x194   : > { %v1388_v44 = vmul.f32 %v3391_v35, %v1386_v9  ;;  %v1074_v42 = vmul.f32 %v3057_v62, %v1072_v21  ;;  %v1387_v12 = vmul.f32 %v3383_v49, %v1386_v9  ;;  %v1414_v6 = vstv %s3559_s12  ;;  %s3763_s12 = sld [smem:[#allocation6 + $0x7b]] }
 0x195   : > { %1379 = vrot.lane.b32.xlu2 %v1374_v27, %s2578_s22  ;;  %v876_v14 = vadd.f32 %v874_v32, %v821_v1  ;;  %v875_v36 = vadd.f32 %v873_v28, %v820_v4  ;;  %v1084_v20 = vstv %s3566_s26  ;;  %v1416_v30 = vmul.f32 %v3391_v35, %v1414_v6  ;;  %s3780_s26 = sld [smem:[#allocation6 + $0x96]] }
 0x196   : > { %1377 = vrot.lane.b32.xlu1 %v1373_v40, %s2578_s22  ;;  %v1076_v26 = vadd.f32 %v1074_v42, %v3449_v33  ;;  %v1085_v27 = vmul.f32 %v3050_v5, %v1084_v20  ;;  %v1402_v56 = vmul.f32 %v3391_v35, %v1400_v41  ;;  %v1442_v8 = vstv %s3592_s21  ;;  %v3671_v42 = vld [vmem:[%s2686_s9 + $0x28] sm:$0x3f]  ;;  %s2343_s21 = sld [smem:[#allocation6 + $0x65]] }
 0x197   : > { %1365 = vrot.lane.b32.xlu0 %v1360_v47, %s2578_s22  ;;  %v1116_v22 = vpop.permute.xlu2 %1115  ;;  %v944_v53 = vadd.f32 %v3451_v43, %v876_v14  ;;  %v943_v23 = vadd.f32 %v3456_v17, %v875_v36  ;;  %v1415_v43 = vmul.f32 %v3383_v49, %v1414_v6  ;;  %v1428_v39 = vstv %s2323_s15  ;;  %s2308_s15 = sld [smem:[#allocation6 + $0xf]] }
 0x198   : > { %v3571_v16 = vadd.f32 %v1116_v22, %v1069_v60  ;;  %v1008_v18 = vpop.permute.xlu1 %1007  ;;  %v1087_v17 = vadd.f32 %v1085_v27, %v3496_v63  ;;  %v1090_v47 = vstv %s3587_s8  ;;  %v1060_v38 = vstv %s2288_s27  ;;  %s3785_s8 = sld [smem:[#allocation6 + $0x80]] }
 0x199   : > { %v3575_v59 = vadd.f32 %v1008_v18, %v929_v3  ;;  %v996_v50 = vpop.permute.xlu0 %995  ;;  %v1443_v60 = vmul.f32 %v3383_v49, %v1442_v8  ;;  %v1430_v41 = vmul.f32 %v3391_v35, %v1428_v39  ;;  %v1092_v19 = vmul.f32 %v3057_v62, %v1090_v47  ;;  %s3807_s27 = sld [smem:[#allocation6 + $0x9b]] }
 0x19a   : > { %v3579_v57 = vadd.f32 %v996_v50, %v916_v0  ;;  %v1429_v25 = vmul.f32 %v3383_v49, %v1428_v39  ;;  %v1062_v3 = vmul.f32 %v3057_v62, %v1060_v38  ;;  %v1061_v22 = vmul.f32 %v3050_v5, %v1060_v38  ;;  %v2468_v39 = vld [vmem:[%s2686_s9 + $0x11] sm:$0xff] }
 0x19b   : > { %v1456_v9 = vstv %s3614_s28  ;;  %v1444_v28 = vmul.f32 %v3391_v35, %v1442_v8  ;;  %v1073_v50 = vmul.f32 %v3050_v5, %v1072_v21  ;;  %v1523_v54 = vstv %s3638_s11  ;;  %s3831_s28 = sld [smem:[#allocation6 + $0x31]] }
 0x19c   : > { %v1064_v10 = vadd.f32 %v1062_v3, %v3543_v29  ;;  %v1063_v32 = vadd.f32 %v1061_v22, %v3547_v61  ;;  %v1458_v24 = vmul.f32 %v3391_v35, %v1456_v9  ;;  %v1457_v29 = vmul.f32 %v3383_v49, %v1456_v9  ;;  %s3835_s11 = sld [smem:[#allocation6 + $0x16]] }
 0x19d   : > { %1405 = vrot.lane.b32.xlu2 %v1401_v48, %s2579_s25  ;;  %v1068_v61 = vmul.f32 %v3057_v62, %v1066_v7  ;;  %v3663_v48 = vld [vmem:[%s2686_s9 + $0x20] sm:$0xff]  ;;  %v1509_v21 = vstv %s3642_s4  ;;  %v1078_v36 = vstv %s2291_s6  ;;  %s2311_s4 = sld [smem:[#allocation6 + $0x60]] }
 0x19e   : > { %1393 = vrot.lane.b32.xlu1 %v1388_v44, %s2579_s25  ;;  %v1075_v44 = vadd.f32 %v1073_v50, %v3575_v59  ;;  %v1511_v59 = vmul.f32 %v3671_v42, %v1509_v21  ;;  %s3859_s6 = sld [smem:[#allocation6 + $0x4c]] }
 0x19f   : > { %1391 = vrot.lane.b32.xlu0 %v1387_v12, %s2579_s25  ;;  %v1132_v37 = vpop.permute.xlu2 %1131  ;;  %v1070_v14 = vadd.f32 %v1068_v61, %v3579_v57  ;;  %v1537_v57 = vstv %s3666_s29  ;;  %s3883_s29 = sld [smem:[#allocation6 + $0x82]] }
 0x1a0   : > { %v3598_v2 = vadd.f32 %v1132_v37, %v1076_v26  ;;  %v1024_v11 = vpop.permute.xlu1 %1023 }
 0x1a1   : > { %v3600_v33 = vadd.f32 %v1024_v11, %v944_v53  ;;  %v1022_v15 = vpop.permute.xlu0 %1021  ;;  %v1524_v53 = vmul.f32 %v3663_v48, %v1523_v54  ;;  %v1080_v11 = vmul.f32 %v3057_v62, %v1078_v36 }
 0x1a2   : > { %v3603_v52 = vadd.f32 %v1022_v15, %v943_v23  ;;  %v1510_v23 = vmul.f32 %v3663_v48, %v1509_v21 }
 0x1a5   : > { %1421 = vrot.lane.b32.xlu2 %v1416_v30, %s2579_s25  ;;  %v1082_v30 = vadd.f32 %v1080_v11, %v3600_v33  ;;  %v1525_v33 = vmul.f32 %v3671_v42, %v1523_v54  ;;  %v1593_v54 = vstv %s2340_s24  ;;  %v1290_v11 = vstv %s3763_s12  ;;  %s3949_s24 = sld [smem:[#allocation6 + $0x4d]] }
 0x1a6   : > { %1419 = vrot.lane.b32.xlu1 %v1415_v43, %s2579_s25  ;;  %s3970_s12 = sld [smem:[#allocation6 + $0x99]] }
 0x1a7   : > { %1407 = vrot.lane.b32.xlu0 %v1402_v56, %s2579_s25  ;;  %v1158_v40 = vpop.permute.xlu2 %1157 }
 0x1a8   : > { %v3618_v55 = vadd.f32 %v1158_v40, %v1087_v17  ;;  %v1050_v51 = vpop.permute.xlu1 %1049  ;;  %v1539_v17 = vmul.f32 %v3671_v42, %v1537_v57  ;;  %v1538_v40 = vmul.f32 %v3663_v48, %v1537_v57 }
 0x1a9   : > { %v3621_v46 = vadd.f32 %v1050_v51, %v3500_v31  ;;  %v1038_v58 = vpop.permute.xlu0 %1037  ;;  %v1094_v31 = vadd.f32 %v1092_v19, %v3537_v45  ;;  %v1091_v51 = vmul.f32 %v2468_v39, %v1090_v47  ;;  %v1296_v39 = vstv %s3780_s26  ;;  %s3975_s26 = sld [smem:[#allocation6 + $0x83]] }
 0x1aa   : > { %v3625_v63 = vadd.f32 %v1038_v58, %v3505_v34 }
 0x1ad   : > { %1447 = vrot.lane.b32.xlu2 %v1443_v60, %s2579_s25  ;;  %v1093_v60 = vadd.f32 %v1091_v51, %v3621_v46 }
 0x1ae   : > { %1435 = vrot.lane.b32.xlu1 %v1430_v41, %s2579_s25  ;;  %v1551_v41 = vstv %s3694_s23  ;;  %s2359_s23 = sld [smem:[#allocation6 + $0x9d]] }
 0x1af   : > { %1433 = vrot.lane.b32.xlu0 %v1429_v25, %s2579_s25  ;;  %v1174_v34 = vpop.permute.xlu2 %1173  ;;  %v1553_v9 = vmul.f32 %v3671_v42, %v1551_v41  ;;  %v1552_v46 = vmul.f32 %v3663_v48, %v1551_v41 }
 0x1b0   : > { %v3644_v13 = vadd.f32 %v1174_v34, %v1094_v31  ;;  %v1104_v0 = vpop.permute.xlu1 %1103  ;;  %v1272_v34 = vstv %s3719_s30  ;;  %s3923_s30 = sld [smem:[#allocation6 + $0x48]] }
 0x1b1   : > { %v3647_v45 = vadd.f32 %v1104_v0, %v1064_v10  ;;  %v1102_v18 = vpop.permute.xlu0 %1101  ;;  %v1273_v50 = vmul.f32 %v3383_v49, %v1272_v34 }
 0x1b2   : > { %v3650_v1 = vadd.f32 %v1102_v18, %v1063_v32 }
 0x1b5   : > { %1463 = vrot.lane.b32.xlu2 %v1458_v24, %s2579_s25 }
 0x1b6   : > { %1461 = vrot.lane.b32.xlu1 %v1457_v29, %s2579_s25 }
 0x1b7   : > { %1449 = vrot.lane.b32.xlu0 %v1444_v28, %s2579_s25  ;;  %v1200_v4 = vpop.permute.xlu2 %1199 }
 0x1b8   : > { %v3675_v7 = vadd.f32 %v1200_v4, %v3571_v16  ;;  %v1130_v12 = vpop.permute.xlu1 %1129  ;;  %v1079_v16 = vmul.f32 %v3050_v5, %v1078_v36  ;;  %v1278_v4 = vstv %s3733_s18  ;;  %s3926_s18 = sld [smem:[#allocation6 + $0x32]] }
 0x1b9   : > { %v3678_v26 = vadd.f32 %v1130_v12, %v1075_v44  ;;  %v1118_v6 = vpop.permute.xlu0 %1117 }
 0x1ba   : > { %v3681_v37 = vadd.f32 %v1118_v6, %v1070_v14  ;;  %v1081_v43 = vadd.f32 %v1079_v16, %v3603_v52  ;;  %v1565_v52 = vstv %s3690_s7  ;;  %v1595_v6 = vmul.f32 %v3671_v42, %v1593_v54  ;;  %s2357_s7 = sld [smem:[#allocation6 + $0x67]] }
 0x1bb   : > { %v1566_v22 = vmul.f32 %v3663_v48, %v1565_v52  ;;  %v1567_v61 = vmul.f32 %v3671_v42, %v1565_v52 }
 0x1bd   : > { %1528 = vrot.lane.b32.xlu2 %v1524_v53, %s2578_s22  ;;  %v1280_v53 = vmul.f32 %v3391_v35, %v1278_v4 }
 0x1be   : > { %1516 = vrot.lane.b32.xlu1 %v1511_v59, %s2578_s22  ;;  %v1594_v59 = vmul.f32 %v3663_v48, %v1593_v54 }
 0x1bf   : > { %1514 = vrot.lane.b32.xlu0 %v1510_v23, %s2578_s22  ;;  %v1216_v15 = vpop.permute.xlu2 %1215  ;;  %v1621_v23 = vstv %s3759_s5  ;;  %s3953_s5 = sld [smem:[#allocation6 + $0x7e]] }
 0x1c0   : > { %v3697_v5 = vadd.f32 %v1216_v15, %v3598_v2  ;;  %v1146_v62 = vpop.permute.xlu1 %1145  ;;  %v2469_v2 = vld [vmem:[%s2686_s9 + $0x19] sm:$0x3f] }
 0x1c1   : > { %v3700_v27 = vadd.f32 %v1146_v62, %v1082_v30  ;;  %v1144_v56 = vpop.permute.xlu0 %1143  ;;  %v1086_v38 = vmul.f32 %v2469_v2, %v1084_v20 }
 0x1c2   : > { %v3703_v8 = vadd.f32 %v1144_v56, %v1081_v43  ;;  %v1622_v43 = vmul.f32 %v3663_v48, %v1621_v23  ;;  %v1291_v56 = vmul.f32 %v3383_v49, %v1290_v11 }
 0x1c3   : > { %v1088_v20 = vadd.f32 %v1086_v38, %v3625_v63  ;;  %v1266_v38 = vstv %s2308_s15  ;;  %s3997_s15 = sld [smem:[#allocation6 + $0x9e]] }
 0x1c5   : > { %1544 = vrot.lane.b32.xlu2 %v1539_v17, %s2578_s22 }
 0x1c6   : > { %1542 = vrot.lane.b32.xlu1 %v1538_v40, %s2578_s22  ;;  %v1649_v40 = vstv %s3785_s8  ;;  %s2363_s8 = sld [smem:[#allocation6 + $0x68]] }
 0x1c7   : > { %1530 = vrot.lane.b32.xlu0 %v1525_v33, %s2578_s22  ;;  %v1242_v58 = vpop.permute.xlu2 %1241  ;;  %v1635_v33 = vstv %s2343_s21  ;;  %s2328_s21 = sld [smem:[#allocation6 + $0x12]] }
 0x1c8   : > { %v3722_v19 = vadd.f32 %v1242_v58, %v3618_v55  ;;  %v1172_v47 = vpop.permute.xlu1 %1171  ;;  %v1579_v55 = vstv %s2339_s10  ;;  %s3909_s10 = sld [smem:[#allocation6 + $0x2d]] }
 0x1c9   : > { %v3725_v25 = vadd.f32 %v1172_v47, %v1093_v60  ;;  %v1160_v3 = vpop.permute.xlu0 %1159  ;;  %v1581_v24 = vmul.f32 %v3671_v42, %v1579_v55  ;;  %v1580_v28 = vmul.f32 %v3663_v48, %v1579_v55  ;;  %v1650_v60 = vmul.f32 %v3663_v48, %v1649_v40 }
 0x1ca   : > { %v3728_v31 = vadd.f32 %v1160_v3, %v1088_v20  ;;  %v1298_v47 = vmul.f32 %v3391_v35, %v1296_v39  ;;  %v1636_v20 = vmul.f32 %v3663_v48, %v1635_v33  ;;  %v1268_v3 = vmul.f32 %v3391_v35, %v1266_v38 }
 0x1cd   : > { %1570 = vrot.lane.b32.xlu2 %v1566_v22, %s2578_s22  ;;  %v1267_v22 = vmul.f32 %v3383_v49, %v1266_v38 }
 0x1ce   : > { %1558 = vrot.lane.b32.xlu1 %v1553_v9, %s2578_s22  ;;  %v1663_v9 = vstv %s3807_s27  ;;  %s4021_s27 = sld [smem:[#allocation6 + $0x34]] }
 0x1cf   : > { %1556 = vrot.lane.b32.xlu0 %v1552_v46, %s2578_s22  ;;  %v1258_v63 = vpop.permute.xlu2 %1257 }
 0x1d0   : > { %v3741_v10 = vadd.f32 %v1258_v63, %v3644_v13  ;;  %v1188_v0 = vpop.permute.xlu1 %1187  ;;  %v1275_v13 = vadd.f32 %v1273_v50, %v3675_v7  ;;  %v1651_v50 = vmul.f32 %v3671_v42, %v1649_v40 }
 0x1d1   : > { %v3744_v32 = vadd.f32 %v1188_v0, %v3647_v45  ;;  %v1186_v18 = vpop.permute.xlu0 %1185  ;;  %v1607_v45 = vstv %s3736_s19  ;;  %s2360_s19 = sld [smem:[#allocation6 + $0x17]] }
 0x1d2   : > { %v3748_v29 = vadd.f32 %v1186_v18, %v3650_v1  ;;  %v1608_v7 = vmul.f32 %v3663_v48, %v1607_v45  ;;  %v1609_v17 = vmul.f32 %v3671_v42, %v1607_v45  ;;  %v1729_v45 = vstv %s3831_s28  ;;  %s4025_s28 = sld [smem:[#allocation6 + $0x19]] }
 0x1d3   : > { %v1270_v46 = vadd.f32 %v1268_v3, %v3744_v32  ;;  %v1664_v32 = vmul.f32 %v3663_v48, %v1663_v9 }
 0x1d4   : > { %v1269_v0 = vadd.f32 %v1267_v22, %v3748_v29  ;;  %v1274_v29 = vmul.f32 %v3391_v35, %v1272_v34 }
 0x1d5   : > { %1586 = vrot.lane.b32.xlu2 %v1581_v24, %s2578_s22  ;;  %v1665_v24 = vmul.f32 %v3671_v42, %v1663_v9 }
 0x1d6   : > { %1584 = vrot.lane.b32.xlu1 %v1580_v28, %s2578_s22 }
 0x1d7   : > { %1572 = vrot.lane.b32.xlu0 %v1567_v61, %s2578_s22  ;;  %v1322_v1 = vpop.permute.xlu2 %1321  ;;  %v1279_v61 = vmul.f32 %v3383_v49, %v1278_v4  ;;  %v1715_v4 = vstv %s3835_s11  ;;  %s2331_s11 = sld [smem:[#allocation6 + $0x63]] }
 0x1d8   : > { %v3765_v44 = vadd.f32 %v1322_v1, %v1275_v13  ;;  %v1214_v21 = vpop.permute.xlu1 %1213  ;;  %v3856_v13 = vld [vmem:[%s2686_s9 + $0x21] sm:$0xff] }
 0x1d9   : > { %v3768_v12 = vadd.f32 %v1214_v21, %v3678_v26  ;;  %v1202_v14 = vpop.permute.xlu0 %1201  ;;  %v1282_v26 = vadd.f32 %v1280_v53, %v3697_v5  ;;  %v1623_v5 = vmul.f32 %v3671_v42, %v1621_v23  ;;  %v3864_v21 = vld [vmem:[%s2686_s9 + $0x29] sm:$0x3f] }
 0x1da   : > { %v3772_v36 = vadd.f32 %v1202_v14, %v3681_v37  ;;  %v1731_v38 = vmul.f32 %v3864_v21, %v1729_v45 }
 0x1db   : > { %v1281_v54 = vadd.f32 %v1279_v61, %v3768_v12  ;;  %v1717_v12 = vmul.f32 %v3864_v21, %v1715_v4  ;;  %v1799_v61 = vstv %s2360_s19  ;;  %s4143_s19 = sld [smem:[#allocation6 + $0x81]] }
 0x1dd   : > { %1612 = vrot.lane.b32.xlu2 %v1608_v7, %s2579_s25  ;;  %v1276_v7 = vadd.f32 %v1274_v29, %v3772_v36  ;;  %v1743_v36 = vstv %s3859_s6  ;;  %v1485_v29 = vstv %s3923_s30  ;;  %s2377_s6 = sld [smem:[#allocation6 + $0x6a]] }
 0x1de   : > { %1600 = vrot.lane.b32.xlu1 %v1595_v6, %s2579_s25  ;;  %v1284_v6 = vstv %s2311_s4  ;;  %s4049_s4 = sld [smem:[#allocation6 + $0x4f]] }
 0x1df   : > { %1598 = vrot.lane.b32.xlu0 %v1594_v59, %s2579_s25  ;;  %v1338_v37 = vpop.permute.xlu2 %1337  ;;  %s2380_s30 = sld [smem:[#allocation6 + $0x1a]] }
 0x1e0   : > { %v3789_v16 = vadd.f32 %v1338_v37, %v1282_v26  ;;  %v1230_v57 = vpop.permute.xlu1 %1229  ;;  %v1730_v26 = vmul.f32 %v3856_v13, %v1729_v45  ;;  %v1716_v37 = vmul.f32 %v3856_v13, %v1715_v4 }
 0x1e1   : > { %v3792_v15 = vadd.f32 %v1230_v57, %v3700_v27  ;;  %v1228_v30 = vpop.permute.xlu0 %1227  ;;  %v1293_v27 = vadd.f32 %v1291_v56, %v3722_v19  ;;  %v1637_v19 = vmul.f32 %v3671_v42, %v1635_v33  ;;  %v1286_v57 = vmul.f32 %v3391_v35, %v1284_v6 }
 0x1e2   : > { %v3796_v62 = vadd.f32 %v1228_v30, %v3703_v8 }
 0x1e5   : > { %1628 = vrot.lane.b32.xlu2 %v1623_v5, %s2579_s25  ;;  %v1288_v5 = vadd.f32 %v1286_v57, %v3792_v15  ;;  %v1297_v15 = vmul.f32 %v3383_v49, %v1296_v39 }
 0x1e6   : > { %1626 = vrot.lane.b32.xlu1 %v1622_v43, %s2579_s25 }
 0x1e7   : > { %1614 = vrot.lane.b32.xlu0 %v1609_v17, %s2579_s25  ;;  %v1364_v8 = vpop.permute.xlu2 %1363 }
 0x1e8   : > { %v3811_v51 = vadd.f32 %v1364_v8, %v1293_v27  ;;  %v1256_v2 = vpop.permute.xlu1 %1255  ;;  %v1745_v8 = vmul.f32 %v3864_v21, %v1743_v36 }
 0x1e9   : > { %v3814_v52 = vadd.f32 %v1256_v2, %v3725_v25  ;;  %v1244_v58 = vpop.permute.xlu0 %1243  ;;  %v1300_v25 = vadd.f32 %v1298_v47, %v3741_v10  ;;  %v1744_v2 = vmul.f32 %v3856_v13, %v1743_v36 }
 0x1ea   : > { %v3818_v41 = vadd.f32 %v1244_v58, %v3728_v31 }
 0x1ed   : > { %1654 = vrot.lane.b32.xlu2 %v1650_v60, %s2579_s25  ;;  %v1299_v60 = vadd.f32 %v1297_v15, %v3814_v52 }
 0x1ee   : > { %1642 = vrot.lane.b32.xlu1 %v1637_v19, %s2579_s25  ;;  %v1757_v19 = vstv %s2357_s7  ;;  %s4099_s7 = sld [smem:[#allocation6 + $0x30]] }
 0x1ef   : > { %1640 = vrot.lane.b32.xlu0 %v1636_v20, %s2579_s25  ;;  %v1380_v31 = vpop.permute.xlu2 %1379  ;;  %v1759_v22 = vmul.f32 %v3864_v21, %v1757_v19  ;;  %v1758_v52 = vmul.f32 %v3856_v13, %v1757_v19 }
 0x1f0   : > { %v3837_v55 = vadd.f32 %v1380_v31, %v1300_v25  ;;  %v1310_v63 = vpop.permute.xlu1 %1309  ;;  %v1479_v25 = vstv %s3909_s10  ;;  %s4116_s10 = sld [smem:[#allocation6 + $0x35]] }
 0x1f1   : > { %v3840_v10 = vadd.f32 %v1310_v63, %v1270_v46  ;;  %v1308_v18 = vpop.permute.xlu0 %1307 }
 0x1f2   : > { %v3843_v28 = vadd.f32 %v1308_v18, %v1269_v0 }
 0x1f5   : > { %1670 = vrot.lane.b32.xlu2 %v1665_v24, %s2579_s25 }
 0x1f6   : > { %1668 = vrot.lane.b32.xlu1 %v1664_v32, %s2579_s25  ;;  %v1480_v32 = vmul.f32 %v3663_v48, %v1479_v25 }
 0x1f7   : > { %1656 = vrot.lane.b32.xlu0 %v1651_v50, %s2579_s25  ;;  %v1406_v1 = vpop.permute.xlu2 %1405 }
 0x1f8   : > { %v3868_v34 = vadd.f32 %v1406_v1, %v3765_v44  ;;  %v1336_v14 = vpop.permute.xlu1 %1335  ;;  %v1285_v44 = vmul.f32 %v3383_v49, %v1284_v6  ;;  %v1487_v6 = vmul.f32 %v3671_v42, %v1485_v29 }
 0x1f9   : > { %v3871_v53 = vadd.f32 %v1336_v14, %v1281_v54  ;;  %v1324_v59 = vpop.permute.xlu0 %1323 }
 0x1fa   : > { %v3874_v23 = vadd.f32 %v1324_v59, %v1276_v7  ;;  %v1287_v17 = vadd.f32 %v1285_v44, %v3796_v62  ;;  %v1771_v62 = vstv %s3883_s29  ;;  %v1801_v7 = vmul.f32 %v3864_v21, %v1799_v61  ;;  %s2379_s29 = sld [smem:[#allocation6 + $0xa0]] }
 0x1fb   : > { %v1772_v20 = vmul.f32 %v3856_v13, %v1771_v62  ;;  %v1773_v50 = vmul.f32 %v3864_v21, %v1771_v62  ;;  %v1800_v59 = vmul.f32 %v3856_v13, %v1799_v61 }
 0x1fd   : > { %1734 = vrot.lane.b32.xlu2 %v1730_v26, %s2578_s22  ;;  %v1827_v26 = vstv %s3949_s24  ;;  %s4165_s24 = sld [smem:[#allocation6 + $0x86]] }
 0x1fe   : > { %1722 = vrot.lane.b32.xlu1 %v1717_v12, %s2578_s22  ;;  %v1497_v12 = vstv %s3953_s5  ;;  %s2383_s5 = sld [smem:[#allocation6 + $0x6b]] }
 0x1ff   : > { %1720 = vrot.lane.b32.xlu0 %v1716_v37, %s2578_s22  ;;  %v1422_v30 = vpop.permute.xlu2 %1421 }
 0x200   : > { %v3888_v43 = vadd.f32 %v1422_v30, %v3789_v16  ;;  %v1352_v56 = vpop.permute.xlu1 %1351  ;;  %v1292_v16 = vmul.f32 %v3391_v35, %v1290_v11  ;;  %v1829_v30 = vmul.f32 %v3864_v21, %v1827_v26 }
 0x201   : > { %v3891_v27 = vadd.f32 %v1352_v56, %v1288_v5  ;;  %v1350_v40 = vpop.permute.xlu0 %1349  ;;  %v1498_v56 = vmul.f32 %v3663_v48, %v1497_v12 }
 0x202   : > { %v3894_v33 = vadd.f32 %v1350_v40, %v1287_v17  ;;  %v1294_v35 = vadd.f32 %v1292_v16, %v3818_v41  ;;  %v1855_v40 = vstv %s3975_s26  ;;  %v1473_v16 = vstv %s2328_s21  ;;  %s4183_s26 = sld [smem:[#allocation6 + $0xa1]] }
 0x203   : > { %s4258_s21 = sld [smem:[#allocation6 + $0x4e]] }
 0x205   : > { %1750 = vrot.lane.b32.xlu2 %v1745_v8, %s2578_s22 }
 0x206   : > { %1748 = vrot.lane.b32.xlu1 %v1744_v2, %s2578_s22  ;;  %v1503_v2 = vstv %s3970_s12  ;;  %s2348_s12 = sld [smem:[#allocation6 + $0x15]] }
 0x207   : > { %1736 = vrot.lane.b32.xlu0 %v1731_v38, %s2578_s22  ;;  %v1448_v58 = vpop.permute.xlu2 %1447 }
 0x208   : > { %v3912_v47 = vadd.f32 %v1448_v58, %v3811_v51  ;;  %v1378_v49 = vpop.permute.xlu1 %1377  ;;  %v1785_v51 = vstv %s2359_s23  ;;  %s4113_s23 = sld [smem:[#allocation6 + $0x4b]] }
 0x209   : > { %v3915_v11 = vadd.f32 %v1378_v49, %v1299_v60  ;;  %v1366_v39 = vpop.permute.xlu0 %1365  ;;  %v1787_v0 = vmul.f32 %v3864_v21, %v1785_v51  ;;  %v1786_v24 = vmul.f32 %v3856_v13, %v1785_v51  ;;  %v1856_v60 = vmul.f32 %v3856_v13, %v1855_v40 }
 0x20a   : > { %v3918_v3 = vadd.f32 %v1366_v39, %v1294_v35  ;;  %v1505_v49 = vmul.f32 %v3671_v42, %v1503_v2  ;;  %v1475_v39 = vmul.f32 %v3671_v42, %v1473_v16 }
 0x20d   : > { %1776 = vrot.lane.b32.xlu2 %v1772_v20, %s2578_s22  ;;  %v1474_v20 = vmul.f32 %v3663_v48, %v1473_v16 }
 0x20e   : > { %1764 = vrot.lane.b32.xlu1 %v1759_v22, %s2578_s22  ;;  %v1869_v22 = vstv %s3997_s15  ;;  %s2401_s15 = smul.u32 96, %s4459_s16  ;;  %s4278_s16 = sld [smem:[#allocation6 + $0x9f]] }
 0x20f   : > { %1762 = vrot.lane.b32.xlu0 %v1758_v52, %s2578_s22  ;;  %v1464_v41 = vpop.permute.xlu2 %1463 }
 0x210   : > { %v3931_v9 = vadd.f32 %v1464_v41, %v3837_v55  ;;  %v1394_v31 = vpop.permute.xlu1 %1393  ;;  %v1482_v55 = vadd.f32 %v1480_v32, %v3868_v34  ;;  %v1857_v32 = vmul.f32 %v3864_v21, %v1855_v40 }
 0x211   : > { %v3934_v46 = vadd.f32 %v1394_v31, %v3840_v10  ;;  %v1392_v63 = vpop.permute.xlu0 %1391  ;;  %v1813_v10 = vstv %s3926_s18  ;;  %s4139_s18 = sld [smem:[#allocation6 + $0x50]] }
 0x212   : > { %v3938_v18 = vadd.f32 %v1392_v63, %v3843_v28  ;;  %v1814_v34 = vmul.f32 %v3856_v13, %v1813_v10  ;;  %v1815_v17 = vmul.f32 %v3864_v21, %v1813_v10  ;;  %v1935_v10 = vstv %s4021_s27  ;;  %s4266_s27 = sld [smem:[#allocation6 + $0x84]] }
 0x213   : > { %v1477_v52 = vadd.f32 %v1475_v39, %v3934_v46  ;;  %v1870_v46 = vmul.f32 %v3856_v13, %v1869_v22 }
 0x214   : > { %v1476_v31 = vadd.f32 %v1474_v20, %v3938_v18  ;;  %v1481_v18 = vmul.f32 %v3671_v42, %v1479_v25 }
 0x215   : > { %1792 = vrot.lane.b32.xlu2 %v1787_v0, %s2578_s22  ;;  %v1871_v0 = vmul.f32 %v3864_v21, %v1869_v22 }
 0x216   : > { %1790 = vrot.lane.b32.xlu1 %v1786_v24, %s2578_s22 }
 0x217   : > { %1778 = vrot.lane.b32.xlu0 %v1773_v50, %s2578_s22  ;;  %v1529_v28 = vpop.permute.xlu2 %1528  ;;  %v1486_v50 = vmul.f32 %v3663_v48, %v1485_v29  ;;  %v1921_v29 = vstv %s4025_s28 }
 0x218   : > { %v3955_v45 = vadd.f32 %v1529_v28, %v1482_v55  ;;  %v1420_v1 = vpop.permute.xlu1 %1419  ;;  %v4046_v55 = vld [vmem:[%s2686_s9 + $0x22] sm:$0xff] }
 0x219   : > { %v3958_v54 = vadd.f32 %v1420_v1, %v3871_v53  ;;  %v1408_v4 = vpop.permute.xlu0 %1407  ;;  %v1489_v53 = vadd.f32 %v1487_v6, %v3888_v43  ;;  %v1828_v43 = vmul.f32 %v3856_v13, %v1827_v26  ;;  %v4054_v1 = vld [vmem:[%s2686_s9 + $0x2a] sm:$0x3f]  ;;  %s4073_s9 = sld [smem:[#allocation6 + $0x85]] }
 0x21a   : > { %v3962_v14 = vadd.f32 %v1408_v4, %v3874_v23  ;;  %v1937_v16 = vmul.f32 %v4054_v1, %v1935_v10 }
 0x21b   : > { %v1488_v61 = vadd.f32 %v1486_v50, %v3958_v54  ;;  %v1923_v54 = vmul.f32 %v4054_v1, %v1921_v29  ;;  %v2005_v50 = vstv %s2380_s30 }
 0x21d   : > { %1818 = vrot.lane.b32.xlu2 %v1814_v34, %s2579_s25  ;;  %v1483_v34 = vadd.f32 %v1481_v18, %v3962_v14  ;;  %v1949_v14 = vstv %s4049_s4  ;;  %v1691_v18 = vstv %s4113_s23  ;;  %s4271_s4 = scalar_lea.vmem %s4351_s3, %s2401_s15 }
 0x21e   : > { %1806 = vrot.lane.b32.xlu1 %v1801_v7, %s2579_s25  ;;  %v1491_v7 = vstv %s2331_s11 }
 0x21f   : > { %1804 = vrot.lane.b32.xlu0 %v1800_v59, %s2579_s25  ;;  %v1545_v23 = vpop.permute.xlu2 %1544 }
 0x220   : > { %v3979_v37 = vadd.f32 %v1545_v23, %v1489_v53  ;;  %v1436_v57 = vpop.permute.xlu1 %1435  ;;  %v1936_v53 = vmul.f32 %v4046_v55, %v1935_v10  ;;  %v1922_v23 = vmul.f32 %v4046_v55, %v1921_v29 }
 0x221   : > { %v3982_v44 = vadd.f32 %v1436_v57, %v3891_v27  ;;  %v1434_v36 = vpop.permute.xlu0 %1433  ;;  %v1500_v27 = vadd.f32 %v1498_v56, %v3912_v47  ;;  %v1493_v57 = vmul.f32 %v3671_v42, %v1491_v7 }
 0x222   : > { %v3986_v5 = vadd.f32 %v1434_v36, %v3894_v33  ;;  %v1841_v33 = vstv %s2363_s8  ;;  %s2351_s8 = sld [smem:[#allocation6 + $0x66]] }
 0x223   : > { %v1843_v47 = vmul.f32 %v3864_v21, %v1841_v33  ;;  %v1842_v35 = vmul.f32 %v3856_v13, %v1841_v33 }
 0x225   : > { %1834 = vrot.lane.b32.xlu2 %v1829_v30, %s2579_s25  ;;  %v1495_v30 = vadd.f32 %v1493_v57, %v3982_v44  ;;  %v1504_v44 = vmul.f32 %v3663_v48, %v1503_v2 }
 0x226   : > { %1832 = vrot.lane.b32.xlu1 %v1828_v43, %s2579_s25 }
 0x227   : > { %1820 = vrot.lane.b32.xlu0 %v1815_v17, %s2579_s25  ;;  %v1571_v8 = vpop.permute.xlu2 %1570 }
 0x228   : > { %v4001_v38 = vadd.f32 %v1571_v8, %v1500_v27  ;;  %v1462_v15 = vpop.permute.xlu1 %1461  ;;  %v1951_v8 = vmul.f32 %v4054_v1, %v1949_v14 }
 0x229   : > { %v4004_v62 = vadd.f32 %v1462_v15, %v3915_v11  ;;  %v1450_v58 = vpop.permute.xlu0 %1449  ;;  %v1507_v11 = vadd.f32 %v1505_v49, %v3931_v9  ;;  %v1950_v15 = vmul.f32 %v4046_v55, %v1949_v14 }
 0x22a   : > { %v4008_v19 = vadd.f32 %v1450_v58, %v3918_v3 }
 0x22d   : > { %1860 = vrot.lane.b32.xlu2 %v1856_v60, %s2579_s25  ;;  %v1506_v60 = vadd.f32 %v1504_v44, %v4004_v62 }
 0x22e   : > { %1848 = vrot.lane.b32.xlu1 %v1843_v47, %s2579_s25  ;;  %v1963_v47 = vstv %s2377_s6  ;;  %s2371_s6 = sld [smem:[#allocation6 + $0x69]] }
 0x22f   : > { %1846 = vrot.lane.b32.xlu0 %v1842_v35, %s2579_s25  ;;  %v1587_v3 = vpop.permute.xlu2 %1586  ;;  %v1965_v20 = vmul.f32 %v4054_v1, %v1963_v47  ;;  %v1964_v62 = vmul.f32 %v4046_v55, %v1963_v47 }
 0x230   : > { %v4027_v51 = vadd.f32 %v1587_v3, %v1507_v11  ;;  %v1517_v41 = vpop.permute.xlu1 %1516  ;;  %v1685_v11 = vstv %s4099_s7 }
 0x231   : > { %v4030_v9 = vadd.f32 %v1517_v41, %v1477_v52  ;;  %v1515_v63 = vpop.permute.xlu0 %1514 }
 0x232   : > { %v4033_v24 = vadd.f32 %v1515_v63, %v1476_v31 }
 0x235   : > { %1876 = vrot.lane.b32.xlu2 %v1871_v0, %s2579_s25 }
 0x236   : > { %1874 = vrot.lane.b32.xlu1 %v1870_v46, %s2579_s25  ;;  %v1686_v46 = vmul.f32 %v3856_v13, %v1685_v11 }
 0x237   : > { %1862 = vrot.lane.b32.xlu0 %v1857_v32, %s2579_s25  ;;  %v1613_v28 = vpop.permute.xlu2 %1612 }
 0x238   : > { %v4058_v25 = vadd.f32 %v1613_v28, %v3955_v45  ;;  %v1543_v4 = vpop.permute.xlu1 %1542  ;;  %v1492_v45 = vmul.f32 %v3663_v48, %v1491_v7  ;;  %v1693_v7 = vmul.f32 %v3864_v21, %v1691_v18 }
 0x239   : > { %v4061_v6 = vadd.f32 %v1543_v4, %v1488_v61  ;;  %v1531_v59 = vpop.permute.xlu0 %1530 }
 0x23a   : > { %v4064_v26 = vadd.f32 %v1531_v59, %v1483_v34  ;;  %v1494_v17 = vadd.f32 %v1492_v45, %v3986_v5  ;;  %v1977_v5 = vstv %s4073_s9  ;;  %v2007_v34 = vmul.f32 %v4054_v1, %v2005_v50  ;;  %s2368_s9 = sld [smem:[#allocation6 + $0x18]] }
 0x23b   : > { %v1978_v35 = vmul.f32 %v4046_v55, %v1977_v5  ;;  %v1979_v32 = vmul.f32 %v4054_v1, %v1977_v5  ;;  %v2006_v59 = vmul.f32 %v4046_v55, %v2005_v50 }
 0x23d   : > { %1940 = vrot.lane.b32.xlu2 %v1936_v53, %s2578_s22  ;;  %v2033_v53 = vstv %s4139_s18 }
 0x23e   : > { %1928 = vrot.lane.b32.xlu1 %v1923_v54, %s2578_s22  ;;  %v1703_v54 = vstv %s4143_s19 }
 0x23f   : > { %1926 = vrot.lane.b32.xlu0 %v1922_v23, %s2578_s22  ;;  %v1629_v36 = vpop.permute.xlu2 %1628 }
 0x240   : > { %v4078_v43 = vadd.f32 %v1629_v36, %v3979_v37  ;;  %v1559_v56 = vpop.permute.xlu1 %1558  ;;  %v1499_v37 = vmul.f32 %v3671_v42, %v1497_v12  ;;  %v2035_v36 = vmul.f32 %v4054_v1, %v2033_v53 }
 0x241   : > { %v4081_v27 = vadd.f32 %v1559_v56, %v1495_v30  ;;  %v1557_v40 = vpop.permute.xlu0 %1556  ;;  %v1704_v56 = vmul.f32 %v3856_v13, %v1703_v54 }
 0x242   : > { %v4084_v33 = vadd.f32 %v1557_v40, %v1494_v17  ;;  %v1501_v42 = vadd.f32 %v1499_v37, %v4008_v19  ;;  %v1679_v37 = vstv %s2348_s12 }
 0x245   : > { %1956 = vrot.lane.b32.xlu2 %v1951_v8, %s2578_s22  ;;  %v2061_v8 = vstv %s4165_s24 }
 0x246   : > { %1954 = vrot.lane.b32.xlu1 %v1950_v15, %s2578_s22 }
 0x247   : > { %1942 = vrot.lane.b32.xlu0 %v1937_v16, %s2578_s22  ;;  %v1655_v58 = vpop.permute.xlu2 %1654 }
 0x248   : > { %v4102_v49 = vadd.f32 %v1655_v58, %v4001_v38  ;;  %v1585_v48 = vpop.permute.xlu1 %1584  ;;  %v1991_v38 = vstv %s2379_s29 }
 0x249   : > { %v4105_v12 = vadd.f32 %v1585_v48, %v1506_v60  ;;  %v1573_v2 = vpop.permute.xlu0 %1572  ;;  %v1993_v31 = vmul.f32 %v4054_v1, %v1991_v38  ;;  %v1992_v0 = vmul.f32 %v4046_v55, %v1991_v38  ;;  %v2062_v60 = vmul.f32 %v4046_v55, %v2061_v8 }
 0x24a   : > { %v4108_v39 = vadd.f32 %v1573_v2, %v1501_v42  ;;  %v1706_v40 = vadd.f32 %v1704_v56, %v4102_v49  ;;  %v1681_v2 = vmul.f32 %v3864_v21, %v1679_v37 }
 0x24d   : > { %1982 = vrot.lane.b32.xlu2 %v1978_v35, %s2578_s22  ;;  %v1680_v35 = vmul.f32 %v3856_v13, %v1679_v37 }
 0x24e   : > { %1970 = vrot.lane.b32.xlu1 %v1965_v20, %s2578_s22  ;;  %v2075_v20 = vstv %s4183_s26 }
 0x24f   : > { %1968 = vrot.lane.b32.xlu0 %v1964_v62, %s2578_s22  ;;  %v1671_v19 = vpop.permute.xlu2 %1670 }
 0x250   : > { %v4121_v22 = vadd.f32 %v1671_v19, %v4027_v51  ;;  %v1601_v3 = vpop.permute.xlu1 %1600  ;;  %v1688_v51 = vadd.f32 %v1686_v46, %v4058_v25 }
 0x251   : > { %v4124_v52 = vadd.f32 %v1601_v3, %v4030_v9  ;;  %v1599_v41 = vpop.permute.xlu0 %1598  ;;  %v2019_v9 = vstv %s4116_s10 }
 0x252   : > { %v4128_v63 = vadd.f32 %v1599_v41, %v4033_v24  ;;  %v2020_v25 = vmul.f32 %v4046_v55, %v2019_v9  ;;  %v2021_v17 = vmul.f32 %v4054_v1, %v2019_v9 }
 0x253   : > { %v1683_v62 = vadd.f32 %v1681_v2, %v4124_v52  ;;  %v1692_v52 = vmul.f32 %v3856_v13, %v1691_v18 }
 0x254   : > { %v1682_v3 = vadd.f32 %v1680_v35, %v4128_v63 }
 0x255   : > { %1998 = vrot.lane.b32.xlu2 %v1993_v31, %s2578_s22 }
 0x256   : > { %1996 = vrot.lane.b32.xlu1 %v1992_v0, %s2578_s22  ;;  %v2077_v0 = vmul.f32 %v4054_v1, %v2075_v20 }
 0x257   : > { %1984 = vrot.lane.b32.xlu0 %v1979_v32, %s2578_s22  ;;  %v1735_v24 = vpop.permute.xlu2 %1734  ;;  %s4160_s22 = sld [smem:[#allocation6 + $0x9c]]  ;;  %v2063_v32 = vmul.f32 %v4054_v1, %v2061_v8 }
 0x258   : > { %v4145_v10 = vadd.f32 %v1735_v24, %v1688_v51  ;;  %v1627_v28 = vpop.permute.xlu1 %1626  ;;  %v1687_v51 = vmul.f32 %v3864_v21, %v1685_v11 }
 0x259   : > { %v4148_v61 = vadd.f32 %v1627_v28, %v4061_v6  ;;  %v1615_v29 = vpop.permute.xlu0 %1614  ;;  %v1695_v6 = vadd.f32 %v1693_v7, %v4078_v43  ;;  %v2034_v43 = vmul.f32 %v4046_v55, %v2033_v53  ;;  %v1697_v28 = vstv %s2351_s8 }
 0x25a   : > { %v4152_v4 = vadd.f32 %v1615_v29, %v4064_v26  ;;  %v1699_v11 = vmul.f32 %v3864_v21, %v1697_v28 }
 0x25b   : > { %v1694_v9 = vadd.f32 %v1692_v52, %v4148_v61 }
 0x25c   : > { %v1689_v50 = vadd.f32 %v1687_v51, %v4152_v4 }
 0x25d   : > { %2024 = vrot.lane.b32.xlu2 %v2020_v25, %s2579_s25  ;;  %v1709_v15 = vstv %s4160_s22 }
 0x25e   : > { %2012 = vrot.lane.b32.xlu1 %v2007_v34, %s2579_s25  ;;  %v1711_v48 = vmul.f32 %v3864_v21, %v1709_v15  ;;  %v1698_v34 = vmul.f32 %v3856_v13, %v1697_v28  ;;  %v1710_v4 = vmul.f32 %v3856_v13, %v1709_v15 }
 0x25f   : > { %2010 = vrot.lane.b32.xlu0 %v2006_v59, %s2579_s25  ;;  %v1751_v26 = vpop.permute.xlu2 %1750 }
 0x260   : > { %v4169_v23 = vadd.f32 %v1751_v26, %v1695_v6  ;;  %v1643_v57 = vpop.permute.xlu1 %1642 }
 0x261   : > { %v1647_v45 = vadd.f32 %v1643_v57, %v4081_v27  ;;  %v1641_v14 = vpop.permute.xlu0 %1640 }
 0x262   : > { %v1646_v30 = vadd.f32 %v1641_v14, %v4084_v33  ;;  %v2047_v33 = vstv %s2383_s5  ;;  %v1705_v14 = vmul.f32 %v3864_v21, %v1703_v54 }
 0x263   : > { %v2049_v49 = vmul.f32 %v4054_v1, %v2047_v33  ;;  %v2048_v42 = vmul.f32 %v4046_v55, %v2047_v33  ;;  %v1701_v59 = vadd.f32 %v1699_v11, %v1647_v45 }
 0x264   : > { %v1700_v53 = vadd.f32 %v1698_v34, %v1646_v30  ;;  %v1885_v34 = vstv %s2368_s9 }
 0x265   : > { %2040 = vrot.lane.b32.xlu2 %v2035_v36, %s2579_s25 }
 0x266   : > { %2038 = vrot.lane.b32.xlu1 %v2034_v43, %s2579_s25 }
 0x267   : > { %2026 = vrot.lane.b32.xlu0 %v2021_v17, %s2579_s25  ;;  %v1777_v27 = vpop.permute.xlu2 %1776 }
 0x268   : > { %v4187_v16 = vadd.f32 %v1777_v27, %v1706_v40  ;;  %v1669_v44 = vpop.permute.xlu1 %1668 }
 0x269   : > { %v1674_v5 = vadd.f32 %v1669_v44, %v4105_v12  ;;  %v1657_v58 = vpop.permute.xlu0 %1656  ;;  %v1713_v12 = vadd.f32 %v1711_v48, %v4121_v22  ;;  %v2076_v22 = vmul.f32 %v4046_v55, %v2075_v20  ;;  %v1897_v20 = vstv %s4258_s21 }
 0x26a   : > { %v1661_v47 = vadd.f32 %v1657_v58, %v4108_v39 }
 0x26b   : > { %v1712_v43 = vadd.f32 %v1710_v4, %v1674_v5  ;;  %v1887_v4 = vmul.f32 %v4054_v1, %v1885_v34 }
 0x26c   : > { %v1707_v17 = vadd.f32 %v1705_v14, %v1661_v47 }
 0x26d   : > { %2066 = vrot.lane.b32.xlu2 %v2062_v60, %s2579_s25 }
 0x26e   : > { %2054 = vrot.lane.b32.xlu1 %v2049_v49, %s2579_s25 }
 0x26f   : > { %2052 = vrot.lane.b32.xlu0 %v2048_v42, %s2579_s25  ;;  %v1793_v39 = vpop.permute.xlu2 %1792 }
 0x270   : > { %v4203_v38 = vadd.f32 %v1793_v39, %v1713_v12  ;;  %v1723_v19 = vpop.permute.xlu1 %1722 }
 0x271   : > { %v4206_v41 = vadd.f32 %v1723_v19, %v1683_v62  ;;  %v1721_v31 = vpop.permute.xlu0 %1720  ;;  %v1899_v19 = vmul.f32 %v4054_v1, %v1897_v20 }
 0x272   : > { %v4209_v46 = vadd.f32 %v1721_v31, %v1682_v3 }
 0x275   : > { %2082 = vrot.lane.b32.xlu2 %v2077_v0, %s2579_s25 }
 0x276   : > { %2080 = vrot.lane.b32.xlu1 %v2076_v22, %s2579_s25 }
 0x277   : > { %2068 = vrot.lane.b32.xlu0 %v2063_v32, %s2579_s25  ;;  %v1819_v63 = vpop.permute.xlu2 %1818  ;;  %s4250_s25 = sld [smem:[#allocation6 + $0x33]]  ;;  %v1909_v32 = vstv %s4266_s27 }
 0x278   : > { %v1749_v24 = vpop.permute.xlu1 %1748  ;;  %v1824_v48 = vadd.f32 %v1819_v63, %v4145_v10 }
 0x279   : > { %v4224_v29 = vadd.f32 %v1749_v24, %v1694_v9  ;;  %v1737_v18 = vpop.permute.xlu0 %1736 }
 0x27a   : > { %v4226_v25 = vadd.f32 %v1737_v18, %v1689_v50  ;;  %v1915_v18 = vstv %s4278_s16 }
 0x27d   : > { %v1891_v47 = vstv %s4250_s25 }
 0x27e   : > { %v1892_v42 = vmul.f32 %v4046_v55, %v1891_v47 }
 0x27f   : > { %v1835_v7 = vpop.permute.xlu2 %1834 }
 0x280   : > { %v1765_v6 = vpop.permute.xlu1 %1764  ;;  %v1894_v12 = vadd.f32 %v1892_v42, %v1824_v48  ;;  %v1839_v10 = vadd.f32 %v1835_v7, %v4169_v23  ;;  %v1910_v23 = vmul.f32 %v4046_v55, %v1909_v32 }
 0x281   : > { %v4230_v26 = vadd.f32 %v1765_v6, %v1701_v59  ;;  %v1763_v61 = vpop.permute.xlu0 %1762  ;;  %v1917_v6 = vmul.f32 %v4054_v1, %v1915_v18 }
 0x282   : > { %v4232_v57 = vadd.f32 %v1763_v61, %v1700_v53  ;;  %v1901_v22 = vadd.f32 %v1899_v19, %v1839_v10 }
 0x287   : > { %v1861_v36 = vpop.permute.xlu2 %1860 }
 0x288   : > { %v1791_v56 = vpop.permute.xlu1 %1790  ;;  %v1866_v63 = vadd.f32 %v1861_v36, %v4187_v16 }
 0x289   : > { %v4238_v40 = vadd.f32 %v1791_v56, %v1712_v43  ;;  %v1779_v45 = vpop.permute.xlu0 %1778  ;;  %v1886_v43 = vmul.f32 %v4046_v55, %v1885_v34 }
 0x28a   : > { %v4240_v8 = vadd.f32 %v1779_v45, %v1707_v17  ;;  %v1912_v28 = vadd.f32 %v1910_v23, %v1866_v63  ;;  %v1911_v23 = vmul.f32 %v4054_v1, %v1909_v32 }
 0x28f   : > { %v1877_v30 = vpop.permute.xlu2 %1876 }
 0x290   : > { %v1807_v27 = vpop.permute.xlu1 %1806  ;;  %v1881_v59 = vadd.f32 %v1877_v30, %v4203_v38 }
 0x291   : > { %v1805_v33 = vpop.permute.xlu0 %1804  ;;  %v1811_v61 = vadd.f32 %v1807_v27, %v4206_v41 }
 0x292   : > { %v1810_v36 = vadd.f32 %v1805_v33, %v4209_v46  ;;  %v1919_v56 = vadd.f32 %v1917_v6, %v1881_v59  ;;  %v1898_v33 = vmul.f32 %v4046_v55, %v1897_v20 }
 0x293   : > { %v1889_v17 = vadd.f32 %v1887_v4, %v1811_v61 }
 0x294   : > { %v1888_v45 = vadd.f32 %v1886_v43, %v1810_v36 }
 0x297   : > { %v1941_v44 = vpop.permute.xlu2 %1940 }
 0x298   : > { %v4242_v37 = vpop.permute.xlu1 %1832  ;;  %v1946_v39 = vadd.f32 %v1941_v44, %v1894_v12 }
 0x299   : > { %v4244_v13 = vpop.permute.xlu0 %1820  ;;  %v1838_v46 = vadd.f32 %v4242_v37, %v4224_v29 }
 0x29a   : > { %v1825_v42 = vadd.f32 %v4244_v13, %v4226_v25 }
 0x29b   : > { %v1900_v29 = vadd.f32 %v1898_v33, %v1838_v46 }
 0x29f   : > { %v1957_v21 = vpop.permute.xlu2 %1956 }
 0x2a0   : > { %v4246_v54 = vpop.permute.xlu1 %1848  ;;  %v1961_v52 = vadd.f32 %v1957_v21, %v1901_v22 }
 0x2a1   : > { %v4248_v15 = vpop.permute.xlu0 %1846  ;;  %v1853_v25 = vadd.f32 %v4246_v54, %v4230_v26 }
 0x2a2   : > { %v1852_v10 = vadd.f32 %v4248_v15, %v4232_v57 }
 0x2a7   : > { %v1983_v5 = vpop.permute.xlu2 %1982 }
 0x2a8   : > { %v4252_v58 = vpop.permute.xlu1 %1874  ;;  %v1988_v11 = vadd.f32 %v1983_v5, %v1912_v28 }
 0x2a9   : > { %v4254_v60 = vpop.permute.xlu0 %1862 }
 0x2aa   : > { %v1867_v63 = vadd.f32 %v4254_v60, %v4240_v8 }
 0x2af   : > { %v1999_v49 = vpop.permute.xlu2 %1998 }
 0x2b0   : > { %v1929_v2 = vpop.permute.xlu1 %1928  ;;  %v2003_v38 = vadd.f32 %v1999_v49, %v1919_v56  ;;  %v1893_v49 = vmul.f32 %v4054_v1, %v1891_v47 }
 0x2b1   : > { %v1927_v35 = vpop.permute.xlu0 %1926  ;;  %v1933_v30 = vadd.f32 %v1929_v2, %v1889_v17 }
 0x2b2   : > { %v1932_v27 = vadd.f32 %v1927_v35, %v1888_v45  ;;  %v1895_v37 = vadd.f32 %v1893_v49, %v1825_v42  ;;  %v1903_v35 = vstv %s2371_s6 }
 0x2b3   : > { %v1905_v13 = vmul.f32 %v4054_v1, %v1903_v35  ;;  %v1904_v19 = vmul.f32 %v4046_v55, %v1903_v35 }
 0x2b7   : > { %v2025_v62 = vpop.permute.xlu2 %2024 }
 0x2b8   : > { %v2030_v3 = vadd.f32 %v2025_v62, %v1946_v39  ;;  %v1955_v31 = vpop.permute.xlu1 %1954 }
 0x2b9   : > { %v1943_v0 = vpop.permute.xlu0 %1942  ;;  %v1960_v12 = vadd.f32 %v1955_v31, %v1900_v29  ;;  %v1907_v31 = vadd.f32 %v1905_v13, %v1853_v25 }
 0x2ba   : > { %2386 = vst.msk [vmem:[%s4271_s4 + $0x10] sm:$0xff] %vm2088_vm0, %v2030_v3  ;;  %v1947_v20 = vadd.f32 %v1943_v0, %v1895_v37  ;;  %v1906_v0 = vadd.f32 %v1904_v19, %v1852_v10 }
 0x2bf   : > { %v2041_v51 = vpop.permute.xlu2 %2040 }
 0x2c0   : > { %v2045_v9 = vadd.f32 %v2041_v51, %v1961_v52  ;;  %v1971_v24 = vpop.permute.xlu1 %1970  ;;  %v1880_v52 = vadd.f32 %v4252_v58, %v4238_v40  ;;  %v1916_v51 = vmul.f32 %v4046_v55, %v1915_v18 }
 0x2c1   : > { %v1969_v50 = vpop.permute.xlu0 %1968  ;;  %v1975_v26 = vadd.f32 %v1971_v24, %v1907_v31 }
 0x2c2   : > { %2389 = vst.msk [vmem:[%s4271_s4 + $0x28] sm:$0x3f] %vm2090_vm1, %v2045_v9  ;;  %v1974_v54 = vadd.f32 %v1969_v50, %v1906_v0  ;;  %v1918_v24 = vadd.f32 %v1916_v51, %v1880_v52  ;;  %v1913_v50 = vadd.f32 %v1911_v23, %v1867_v63 }
 0x2c7   : > { %v2067_v7 = vpop.permute.xlu2 %2066 }
 0x2c8   : > { %v2072_v53 = vadd.f32 %v2067_v7, %v1988_v11  ;;  %v1997_v16 = vpop.permute.xlu1 %1996 }
 0x2c9   : > { %v1985_v14 = vpop.permute.xlu0 %1984  ;;  %v2002_v40 = vadd.f32 %v1997_v16, %v1918_v24 }
 0x2ca   : > { %2392 = vst.msk [vmem:[%s4271_s4 + $0x40] sm:$0xff] %vm2088_vm0, %v2072_v53  ;;  %v1989_v58 = vadd.f32 %v1985_v14, %v1913_v50 }
 0x2cf   : > { %v2083_v41 = vpop.permute.xlu2 %2082 }
 0x2d0   : > { %v2087_v44 = vadd.f32 %v2083_v41, %v2003_v38  ;;  %v2013_v21 = vpop.permute.xlu1 %2012 }
 0x2d1   : > { %v2017_v5 = vadd.f32 %v2013_v21, %v1933_v30  ;;  %v2011_v48 = vpop.permute.xlu0 %2010 }
 0x2d2   : > { %2395 = vst.msk [vmem:[%s4271_s4 + $0x58] sm:$0x3f] %vm2090_vm1, %v2087_v44  ;;  %v2016_v2 = vadd.f32 %v2011_v48, %v1932_v27 }
 0x2d3   : > { %2091 = vst.msk [vmem:[%s4271_s4 + $0x8] sm:$0x3f] %vm2090_vm1, %v2017_v5 }
 0x2d4   : > { %2089 = vst.msk [vmem:[%s4271_s4] sm:$0xff] %vm2088_vm0, %v2016_v2 }
 0x2d8   : > { %v2039_v39 = vpop.permute.xlu1 %2038 }
 0x2d9   : > { %v2044_v47 = vadd.f32 %v2039_v39, %v1960_v12  ;;  %v2027_v62 = vpop.permute.xlu0 %2026 }
 0x2da   : > { %v2031_v3 = vadd.f32 %v2027_v62, %v1947_v20 }
 0x2db   : > { %2388 = vst.msk [vmem:[%s4271_s4 + $0x20] sm:$0xff] %vm2088_vm0, %v2044_v47 }
 0x2dc   : > { %2387 = vst.msk [vmem:[%s4271_s4 + $0x18] sm:$0x3f] %vm2090_vm1, %v2031_v3 }
 0x2e0   : > { %v2055_v22 = vpop.permute.xlu1 %2054 }
 0x2e1   : > { %v2059_v57 = vadd.f32 %v2055_v22, %v1975_v26  ;;  %v2053_v15 = vpop.permute.xlu0 %2052 }
 0x2e2   : > { %v2058_v9 = vadd.f32 %v2053_v15, %v1974_v54 }
 0x2e3   : > { %2391 = vst.msk [vmem:[%s4271_s4 + $0x38] sm:$0x3f] %vm2090_vm1, %v2059_v57 }
 0x2e4   : > { %2390 = vst.msk [vmem:[%s4271_s4 + $0x30] sm:$0xff] %vm2088_vm0, %v2058_v9 }
 0x2e8   : > { %v2081_v55 = vpop.permute.xlu1 %2080 }
 0x2e9   : > { %v2086_v28 = vadd.f32 %v2081_v55, %v2002_v40  ;;  %v2069_v18 = vpop.permute.xlu0 %2068 }
 0x2ea   : > { %v2073_v11 = vadd.f32 %v2069_v18, %v1989_v58 }
 0x2eb   : > { %2394 = vst.msk [vmem:[%s4271_s4 + $0x50] sm:$0xff] %vm2088_vm0, %v2086_v28 }
 0x2ec   : > { %2393 = vst.msk [vmem:[%s4271_s4 + $0x48] sm:$0x3f] %vm2090_vm1, %v2073_v11 }
 0x2ed PF: > { %p15_p8 = scmp.ge.s32.totalorder %s2622_s17, 4   ;;  %s4454_s12 = smov %s2564_s13 }
 0x2ee   : > { %s4455_s13 = smov %s2568_s14  ;;  %s4456_s14 = smov %s2632_s20 }
 0x2ef   : > { %s4457_s15 = smov %s2622_s17  ;;  %17 = sbr.rel (!%p15_p8) target bundleno = 5 (0x5), region = 89 }
 0x2f4   :  { %2128 = vsyncpa [#allocation3], 1 }
 0x2f5   :  { %2130 = vsyncpa [#allocation3 + $0x1], 1 }
 0x2f6   :  { %2131 = vsyncpa [#allocation4], 1 }
 0x2f7   :  { %2133 = vsyncpa [#allocation4 + $0x1], 1 }
 0x2f8   :  { %2134 = vsyncpa [#allocation5], 1 }
 0x2f9   :  { %2136 = vsyncpa [#allocation5 + $0x1], 1 }

</bundles_post_ra>
